<compile_context>
chip_gen: v7x
topology: tpu7x:2x2x1
jax: 0.10.0
libtpu: 0.0.40
codegen_flags: <defaults>
</compile_context>

<pallas_src>
import functools

import jax
import jax.numpy as jnp
from jax.experimental import pallas as pl
from jax.experimental.pallas import tpu as pltpu

BN_EPS = 1e-5  # PyTorch BatchNorm1d default eps


def _round_up(a, m):
    return ((a + m - 1) // m) * m


def gin_forward(params, x, edge_index, batch, num_graphs, *, row_tile=256):
    """Glue: densify + pad the graph structure, then run everything in one Pallas kernel."""
    n, f = x.shape
    nhid = params["wr"].shape[0]
    d_pad = max(128, _round_up(max(f, nhid), 128))      # lane-dense feature/hidden width
    n_pad = _round_up(max(n, row_tile), row_tile)       # node axis padded to the row tile
    num_tiles = n_pad // row_tile
    inv_n = 1.0 / float(n)                              # BN uses biased stats over real nodes
    T = row_tile

    # ---- densify graph structure (message-flow adjacency + identity), bf16, padded ----
    src, dst = edge_index[0], edge_index[1]
    adj = jnp.zeros((n_pad, n_pad), jnp.float32)
    adj = adj.at[dst, src].add(1.0)                     # sum aggregation over j -> i edges
    diag = jnp.arange(n)
    adj = adj.at[diag, diag].add(1.0)                   # (1 + eps) * x_i with eps = 0
    adj = adj.astype(jnp.bfloat16)

    # one-hot batch -> pooling matrix (G, n_pad), bf16; per-graph 1/count stays f32
    pool_f32 = (batch[None, :] == jnp.arange(num_graphs)[:, None]).astype(jnp.float32)
    counts = jnp.sum(pool_f32, axis=1, keepdims=True)
    inv_cnt = (1.0 / jnp.maximum(counts, 1.0)).astype(jnp.float32)        # (G, 1)
    pool = jnp.pad(pool_f32, ((0, 0), (0, n_pad - n))).astype(jnp.bfloat16)

    xp = jnp.pad(x.astype(jnp.float32),
                 ((0, n_pad - n), (0, d_pad - f))).astype(jnp.bfloat16)

    def pad_w(w):
        w = w.astype(jnp.float32)
        return jnp.pad(w, ((0, d_pad - w.shape[0]), (0, d_pad - w.shape[1]))
                       ).astype(jnp.bfloat16)

    w1a, w1b = pad_w(params["w1a"]), pad_w(params["w1b"])
    w2a, w2b = pad_w(params["w2a"]), pad_w(params["w2b"])
    wr = pad_w(params["wr"])
    wl = params["wl"]
    wl1, wl2 = pad_w(wl[:nhid, :]), pad_w(wl[nhid:, :])   # split: avoids lane-narrow concat

    def pad_v(v):
        v = v.astype(jnp.float32)
        return jnp.pad(v, ((0, 0), (0, d_pad - v.shape[1])))

    # pack the 9 tiny (1, nhid) vectors into one (16, d_pad) array (single DMA / VMEM tile)
    small = jnp.concatenate(
        [pad_v(params[k]) for k in
         ("b1a", "g1", "be1", "b1b", "b2a", "g2", "be2", "b2b", "bl")], axis=0)
    small = jnp.pad(small, ((0, 16 - small.shape[0]), (0, 0)))

    # ------------------------------ the kernel ------------------------------
    def kernel(adj_hbm, x_ref, pool_ref, invc_ref, small_ref,
               w1a_ref, w1b_ref, w2a_ref, w2b_ref, wr_ref, wl1_ref, wl2_ref,
               out_ref, agg_scr, abuf, asem):
        bf16 = jnp.bfloat16

        def adj_copy(t, slot):
            row0 = pl.multiple_of(t * T, T)
            return pltpu.make_async_copy(
                adj_hbm.at[pl.ds(row0, T), :], abuf.at[slot], asem.at[slot])

        def aggregate(h_src_bf16):
            """agg_scr[...] = (I + A) @ h_src with adjacency streamed from HBM (double buffer)."""
            adj_copy(0, 0).start()

            def body(t, carry):
                slot = t & 1
                adj_copy(t, slot).wait()

                @pl.when(t + 1 < num_tiles)
                def _():
                    adj_copy(t + 1, 1 - slot).start()

                row0 = pl.multiple_of(t * T, T)
                agg_scr[pl.ds(row0, T), :] = jnp.dot(
                    abuf[slot], h_src_bf16, preferred_element_type=jnp.float32)
                return carry

            jax.lax.fori_loop(0, num_tiles, body, 0)
            return agg_scr[...]

        # row mask for BN statistics: padded rows must not contribute
        mask = (jax.lax.broadcasted_iota(jnp.int32, (n_pad, 1), 0) < n
                ).astype(jnp.float32)

        def gin_mlp(h_src_bf16, w_a, b_a, gamma, beta, w_b, b_b):
            agg = aggregate(h_src_bf16)                                   # (n_pad, d_pad) f32
            z = jnp.dot(agg.astype(bf16), w_a,
                        preferred_element_type=jnp.float32) + b_a
            # BatchNorm1d, training-mode batch stats, one-pass variance, padded rows masked
            zm = z * mask
            mu = jnp.sum(zm, axis=0, keepdims=True) * inv_n
            ex2 = jnp.sum(zm * z, axis=0, keepdims=True) * inv_n
            var = jnp.maximum(ex2 - mu * mu, 0.0)
            zn = (z - mu) * jax.lax.rsqrt(var + BN_EPS) * gamma + beta
            h = jnp.maximum(zn, 0.0)                                      # ReLU
            h = jnp.dot(h.astype(bf16), w_b,
                        preferred_element_type=jnp.float32) + b_b
            return jnp.maximum(h, 0.0)                                    # ReLU

        sm = small_ref[...]
        b1a, g1, be1, b1b = sm[0:1], sm[1:2], sm[2:3], sm[3:4]
        b2a, g2, be2, b2b = sm[4:5], sm[5:6], sm[6:7], sm[7:8]
        bl = sm[8:9]

        h1 = gin_mlp(x_ref[...], w1a_ref[...], b1a, g1, be1, w1b_ref[...], b1b)
        h1_bf = h1.astype(bf16)
        h2 = gin_mlp(h1_bf, w2a_ref[...], b2a, g2, be2, w2b_ref[...], b2b)
        h2_bf = h2.astype(bf16)

        pool_bf = pool_ref[...]          # (G, n_pad) bf16
        invc = invc_ref[...]             # (G, 1) f32
        wr_bf = wr_ref[...]

        def readout(h_bf, h_f32):
            # global_mean_pool
            sums = jnp.dot(pool_bf, h_bf, preferred_element_type=jnp.float32)   # (G, d_pad)
            mean_pool = sums * invc
            tg = jnp.tanh(jnp.dot(mean_pool.astype(bf16), wr_bf,
                                  preferred_element_type=jnp.float32))
            # transformed_global[batch]  ==  pool^T @ tg  (dot_general, no pool_t input)
            tg_nodes = jax.lax.dot_general(
                pool_bf, tg.astype(bf16), (((0,), (0,)), ((), ())),
                preferred_element_type=jnp.float32)                             # (n_pad, d_pad)
            coefs = jax.nn.sigmoid(jnp.sum(h_f32 * tg_nodes, axis=1, keepdims=True))
            weighted = (coefs * h_f32).astype(bf16)
            # global_add_pool
            return jnp.dot(pool_bf, weighted, preferred_element_type=jnp.float32)

        r1 = readout(h1_bf, h1)
        r2 = readout(h2_bf, h2)
        # cat(r1, r2) @ wl  ==  r1 @ wl[:nhid] + r2 @ wl[nhid:]
        out = (jnp.dot(r1.astype(bf16), wl1_ref[...],
                       preferred_element_type=jnp.float32)
               + jnp.dot(r2.astype(bf16), wl2_ref[...],
                         preferred_element_type=jnp.float32)
               + bl)
        out_ref[...] = out

    # explicit scoped-VMEM budget (sized for the actual working set, headroom included,
    # capped well under the 64 MiB v7x VMEM)
    vmem_bytes = (2 * T * n_pad * 2                 # adjacency double buffer (bf16)
                  + n_pad * d_pad * 4               # aggregation scratch (f32)
                  + 4 * n_pad * d_pad * 4           # x / h1 / h2 temporaries (generous)
                  + 7 * d_pad * d_pad * 2           # weight matrices (bf16)
                  + num_graphs * n_pad * 2          # pooling matrix (bf16)
                  + 64 * d_pad * 4)                 # packed small params / outputs
    vmem_limit = int(min(48 * 2**20, max(32 * 2**20, 2 * vmem_bytes)))

    inputs = (adj, xp, pool, inv_cnt, small, w1a, w1b, w2a, w2b, wr, wl1, wl2)
    in_specs = ([pl.BlockSpec(memory_space=pl.ANY)]                       # adjacency in HBM
                + [pl.BlockSpec(memory_space=pltpu.MemorySpace.VMEM)] * (len(inputs) - 1))

    out_pad = pl.pallas_call(
        kernel,
        out_shape=jax.ShapeDtypeStruct((num_graphs, d_pad), jnp.float32),
        in_specs=in_specs,
        out_specs=pl.BlockSpec(memory_space=pltpu.MemorySpace.VMEM),
        scratch_shapes=[
            pltpu.VMEM((n_pad, d_pad), jnp.float32),          # aggregation result
            pltpu.VMEM((2, T, n_pad), jnp.bfloat16),          # adjacency row-tile double buffer
            pltpu.SemaphoreType.DMA((2,)),
        ],
        compiler_params=pltpu.CompilerParams(vmem_limit_bytes=vmem_limit),
    )(*inputs)
    return out_pad[:, :nhid]


def _xavier_uniform(key, fan_in, fan_out):
    bound = (6.0 / (fan_in + fan_out)) ** 0.5
    return jax.random.uniform(key, (fan_in, fan_out), jnp.float32, -bound, bound)


def _linear_init(key, fan_in, fan_out):
    kw, kb = jax.random.split(key)
    wb = (1.0 / fan_in) ** 0.5
    w = jax.random.uniform(kw, (fan_in, fan_out), jnp.float32,
                           -(3.0 ** 0.5) * wb, (3.0 ** 0.5) * wb)
    b = jax.random.uniform(kb, (1, fan_out), jnp.float32, -wb, wb)
    return w, b


def init_params(key, node_feature_dim, nhid):
    keys = jax.random.split(key, 8)
    w1a, b1a = _linear_init(keys[0], node_feature_dim, nhid)
    w1b, b1b = _linear_init(keys[1], nhid, nhid)
    w2a, b2a = _linear_init(keys[2], nhid, nhid)
    w2b, b2b = _linear_init(keys[3], nhid, nhid)
    wr = _xavier_uniform(keys[4], nhid, nhid)
    wl, bl = _linear_init(keys[5], 2 * nhid, nhid)
    return {
        "w1a": w1a, "b1a": b1a,
        "g1": jnp.ones((1, nhid), jnp.float32), "be1": jnp.zeros((1, nhid), jnp.float32),
        "w1b": w1b, "b1b": b1b,
        "w2a": w2a, "b2a": b2a,
        "g2": jnp.ones((1, nhid), jnp.float32), "be2": jnp.zeros((1, nhid), jnp.float32),
        "w2b": w2b, "b2b": b2b,
        "wr": wr, "wl": wl, "bl": bl,
    }


if __name__ == "__main__":
    key = jax.random.PRNGKey(0)
    k_param, k_feat = jax.random.split(key)

    node_feature_dim = 8
    nhid = 32
    num_graphs = 2
    nodes_per_graph = 6
    n_nodes = num_graphs * nodes_per_graph

    params = init_params(k_param, node_feature_dim, nhid)

    # deterministic node features
    x = jax.random.normal(k_feat, (n_nodes, node_feature_dim), jnp.float32)

    # batch vector: first 6 nodes -> graph 0, next 6 -> graph 1
    batch = jnp.array([0] * nodes_per_graph + [1] * nodes_per_graph, dtype=jnp.int32)

    # bidirectional ring edges inside each graph (COO edge_index [2, E])
    src_list, dst_list = [], []
    for g in range(num_graphs):
        base = g * nodes_per_graph
        for i in range(nodes_per_graph):
            a = base + i
            b = base + (i + 1) % nodes_per_graph
            src_list += [a, b]
            dst_list += [b, a]
    edge_index = jnp.array([src_list, dst_list], dtype=jnp.int32)

    out = gin_forward(params, x, edge_index, batch, num_graphs)
    out = jax.block_until_ready(out)
    assert out.shape == (num_graphs, nhid)
    assert bool(jnp.all(jnp.isfinite(out)))
    print("KERNEL_OK")
</pallas_src>

<mosaic_0001>
module attributes {stable_mosaic.version = 11 : i64} {
  func.func @kernel(%arg0: memref<256x256xbf16, #tpu.memory_space<any>>, %arg1: memref<256x128xbf16, #tpu.memory_space<vmem>>, %arg2: memref<2x256xbf16, #tpu.memory_space<vmem>>, %arg3: memref<2x1xf32, #tpu.memory_space<vmem>>, %arg4: memref<16x128xf32, #tpu.memory_space<vmem>>, %arg5: memref<128x128xbf16, #tpu.memory_space<vmem>>, %arg6: memref<128x128xbf16, #tpu.memory_space<vmem>>, %arg7: memref<128x128xbf16, #tpu.memory_space<vmem>>, %arg8: memref<128x128xbf16, #tpu.memory_space<vmem>>, %arg9: memref<128x128xbf16, #tpu.memory_space<vmem>>, %arg10: memref<128x128xbf16, #tpu.memory_space<vmem>>, %arg11: memref<128x128xbf16, #tpu.memory_space<vmem>>, %arg12: memref<2x128xf32, #tpu.memory_space<vmem>>, %arg13: memref<256x128xf32, #tpu.memory_space<vmem>>, %arg14: memref<2x256x256xbf16, #tpu.memory_space<vmem>>, %arg15: memref<2x!tpu.dma_semaphore, #tpu.memory_space<semaphore_mem>>) attributes {dimension_semantics = [], scalar_prefetch = 0 : i64, scratch_operands = 3 : i64, tpu.core_type = #tpu.core_type<tc>} {
    %0 = tpu.iota {dimensions = array<i32: 0>} : vector<256x1xi32>
    %c12_i32 = arith.constant 12 : i32
    %1 = vector.broadcast %c12_i32 : i32 to vector<256x1xi32>
    %2 = arith.cmpi slt, %0, %1 : vector<256x1xi32>
    %3 = arith.extui %2 : vector<256x1xi1> to vector<256x1xi32>
    %4 = arith.sitofp %3 : vector<256x1xi32> to vector<256x1xf32>
    %c0 = arith.constant 0 : index
    %c0_0 = arith.constant 0 : index
    %5 = vector.load %arg4[%c0, %c0_0] : memref<16x128xf32, #tpu.memory_space<vmem>>, vector<16x128xf32>
    %6 = vector.extract_strided_slice %5 {offsets = [0, 0], sizes = [1, 128], strides = [1, 1]} : vector<16x128xf32> to vector<1x128xf32>
    %7 = vector.extract_strided_slice %5 {offsets = [1, 0], sizes = [1, 128], strides = [1, 1]} : vector<16x128xf32> to vector<1x128xf32>
    %8 = vector.extract_strided_slice %5 {offsets = [2, 0], sizes = [1, 128], strides = [1, 1]} : vector<16x128xf32> to vector<1x128xf32>
    %9 = vector.extract_strided_slice %5 {offsets = [3, 0], sizes = [1, 128], strides = [1, 1]} : vector<16x128xf32> to vector<1x128xf32>
    %10 = vector.extract_strided_slice %5 {offsets = [4, 0], sizes = [1, 128], strides = [1, 1]} : vector<16x128xf32> to vector<1x128xf32>
    %11 = vector.extract_strided_slice %5 {offsets = [5, 0], sizes = [1, 128], strides = [1, 1]} : vector<16x128xf32> to vector<1x128xf32>
    %12 = vector.extract_strided_slice %5 {offsets = [6, 0], sizes = [1, 128], strides = [1, 1]} : vector<16x128xf32> to vector<1x128xf32>
    %13 = vector.extract_strided_slice %5 {offsets = [7, 0], sizes = [1, 128], strides = [1, 1]} : vector<16x128xf32> to vector<1x128xf32>
    %14 = vector.extract_strided_slice %5 {offsets = [8, 0], sizes = [1, 128], strides = [1, 1]} : vector<16x128xf32> to vector<1x128xf32>
    %c0_1 = arith.constant 0 : index
    %c0_2 = arith.constant 0 : index
    %15 = vector.load %arg1[%c0_1, %c0_2] : memref<256x128xbf16, #tpu.memory_space<vmem>>, vector<256x128xbf16>
    %c0_3 = arith.constant 0 : index
    %c0_4 = arith.constant 0 : index
    %16 = vector.load %arg5[%c0_3, %c0_4] : memref<128x128xbf16, #tpu.memory_space<vmem>>, vector<128x128xbf16>
    %c0_5 = arith.constant 0 : index
    %c0_6 = arith.constant 0 : index
    %17 = vector.load %arg6[%c0_5, %c0_6] : memref<128x128xbf16, #tpu.memory_space<vmem>>, vector<128x128xbf16>
    %c0_i32 = arith.constant 0 : i32
    %18 = tpu.assume_multiple %c0_i32, 256 : i32
    %c0_i32_7 = arith.constant 0 : i32
    %c0_i32_8 = arith.constant 0 : i32
    %c0_i32_9 = arith.constant 0 : i32
    %19 = tpu.memref_slice %arg0[%18, %c0_i32_9] : memref<256x256xbf16, #tpu.memory_space<any>> -> memref<256x256xbf16, #tpu.memory_space<any>>
    %c0_i32_10 = arith.constant 0 : i32
    %c0_i32_11 = arith.constant 0 : i32
    %20 = tpu.memref_slice %arg14[%c0_i32_7, %c0_i32_10, %c0_i32_11] : memref<2x256x256xbf16, #tpu.memory_space<vmem>> -> memref<1x256x256xbf16, #tpu.memory_space<vmem>>
    %21 = tpu.memref_squeeze %20 : memref<1x256x256xbf16, #tpu.memory_space<vmem>> -> memref<256x256xbf16, #tpu.memory_space<vmem>>
    %22 = tpu.memref_slice %arg15[%c0_i32_8] : memref<2x!tpu.dma_semaphore, #tpu.memory_space<semaphore_mem>> -> memref<1x!tpu.dma_semaphore, #tpu.memory_space<semaphore_mem>>
    %23 = tpu.memref_squeeze %22 : memref<1x!tpu.dma_semaphore, #tpu.memory_space<semaphore_mem>> -> memref<!tpu.dma_semaphore, #tpu.memory_space<semaphore_mem>>
    tpu.enqueue_dma source(%19 : memref<256x256xbf16, #tpu.memory_space<any>>) target(%21 : memref<256x256xbf16, #tpu.memory_space<vmem>>) target_semaphore(%23 : memref<!tpu.dma_semaphore, #tpu.memory_space<semaphore_mem>>)
    %c0_i32_12 = arith.constant 0 : i32
    %c1_i32 = arith.constant 1 : i32
    %24 = arith.andi %c0_i32_12, %c1_i32 : i32
    %c256_i32 = arith.constant 256 : i32
    %25 = arith.muli %c0_i32_12, %c256_i32 : i32
    %26 = tpu.assume_multiple %25, 256 : i32
    %c0_i32_13 = arith.constant 0 : i32
    %27 = tpu.memref_slice %arg0[%26, %c0_i32_13] : memref<256x256xbf16, #tpu.memory_space<any>> -> memref<256x256xbf16, #tpu.memory_space<any>>
    %c0_i32_14 = arith.constant 0 : i32
    %c0_i32_15 = arith.constant 0 : i32
    %28 = tpu.memref_slice %arg14[%24, %c0_i32_14, %c0_i32_15] : memref<2x256x256xbf16, #tpu.memory_space<vmem>> -> memref<1x256x256xbf16, #tpu.memory_space<vmem>>
    %29 = tpu.memref_squeeze %28 : memref<1x256x256xbf16, #tpu.memory_space<vmem>> -> memref<256x256xbf16, #tpu.memory_space<vmem>>
    %30 = tpu.memref_slice %arg15[%24] : memref<2x!tpu.dma_semaphore, #tpu.memory_space<semaphore_mem>> -> memref<1x!tpu.dma_semaphore, #tpu.memory_space<semaphore_mem>>
    %31 = tpu.memref_squeeze %30 : memref<1x!tpu.dma_semaphore, #tpu.memory_space<semaphore_mem>> -> memref<!tpu.dma_semaphore, #tpu.memory_space<semaphore_mem>>
    tpu.wait_dma2 semaphore(%31 : memref<!tpu.dma_semaphore, #tpu.memory_space<semaphore_mem>>) src(%27 : memref<256x256xbf16, #tpu.memory_space<any>>) dst(%29 : memref<256x256xbf16, #tpu.memory_space<vmem>>)
    %c1_i32_16 = arith.constant 1 : i32
    %32 = arith.addi %c0_i32_12, %c1_i32_16 : i32
    %c1_i32_17 = arith.constant 1 : i32
    %33 = arith.cmpi slt, %32, %c1_i32_17 : i32
    %34 = arith.extui %33 : i1 to i32
    %c0_i32_18 = arith.constant 0 : i32
    %35 = arith.cmpi ne, %34, %c0_i32_18 : i32
    scf.if %35 {
      %c1_i32_99 = arith.constant 1 : i32
      %205 = arith.addi %c0_i32_12, %c1_i32_99 : i32
      %c1_i32_100 = arith.constant 1 : i32
      %206 = arith.subi %c1_i32_100, %24 : i32
      %c256_i32_101 = arith.constant 256 : i32
      %207 = arith.muli %205, %c256_i32_101 : i32
      %208 = tpu.assume_multiple %207, 256 : i32
      %c0_i32_102 = arith.constant 0 : i32
      %209 = tpu.memref_slice %arg0[%208, %c0_i32_102] : memref<256x256xbf16, #tpu.memory_space<any>> -> memref<256x256xbf16, #tpu.memory_space<any>>
      %c0_i32_103 = arith.constant 0 : i32
      %c0_i32_104 = arith.constant 0 : i32
      %210 = tpu.memref_slice %arg14[%206, %c0_i32_103, %c0_i32_104] : memref<2x256x256xbf16, #tpu.memory_space<vmem>> -> memref<1x256x256xbf16, #tpu.memory_space<vmem>>
      %211 = tpu.memref_squeeze %210 : memref<1x256x256xbf16, #tpu.memory_space<vmem>> -> memref<256x256xbf16, #tpu.memory_space<vmem>>
      %212 = tpu.memref_slice %arg15[%206] : memref<2x!tpu.dma_semaphore, #tpu.memory_space<semaphore_mem>> -> memref<1x!tpu.dma_semaphore, #tpu.memory_space<semaphore_mem>>
      %213 = tpu.memref_squeeze %212 : memref<1x!tpu.dma_semaphore, #tpu.memory_space<semaphore_mem>> -> memref<!tpu.dma_semaphore, #tpu.memory_space<semaphore_mem>>
      tpu.enqueue_dma source(%209 : memref<256x256xbf16, #tpu.memory_space<any>>) target(%211 : memref<256x256xbf16, #tpu.memory_space<vmem>>) target_semaphore(%213 : memref<!tpu.dma_semaphore, #tpu.memory_space<semaphore_mem>>)
    } else {
    }
    %c256_i32_19 = arith.constant 256 : i32
    %36 = arith.muli %c0_i32_12, %c256_i32_19 : i32
    %37 = tpu.assume_multiple %36, 256 : i32
    %38 = arith.index_cast %24 : i32 to index
    %c0_20 = arith.constant 0 : index
    %c0_21 = arith.constant 0 : index
    %39 = vector.load %arg14[%38, %c0_20, %c0_21] : memref<2x256x256xbf16, #tpu.memory_space<vmem>>, vector<1x256x256xbf16>
    %40 = vector.shape_cast %39 : vector<1x256x256xbf16> to vector<256x256xbf16>
    %cst = arith.constant dense<0.000000e+00> : vector<256x128xf32>
    %41 = tpu.matmul %40, %15, %cst {dimension_numbers = #tpu.dot_dimension_numbers<[1], [0], [0], [1], [0, 0, 1, 1], [], []>} : vector<256x256xbf16>, vector<256x128xbf16>, vector<256x128xf32> -> vector<256x128xf32>
    %42 = arith.index_cast %37 : i32 to index
    %c0_22 = arith.constant 0 : index
    %43 = vector.load %arg13[%42, %c0_22] : memref<256x128xf32, #tpu.memory_space<vmem>>, vector<256x128xf32>
    tpu.vector_store %arg13[%42, %c0_22], %41 {strides = array<i32>} : memref<256x128xf32, #tpu.memory_space<vmem>>, vector<256x128xf32>,
    %c1_i32_23 = arith.constant 1 : i32
    %c0_24 = arith.constant 0 : index
    %c0_25 = arith.constant 0 : index
    %44 = vector.load %arg13[%c0_24, %c0_25] : memref<256x128xf32, #tpu.memory_space<vmem>>, vector<256x128xf32>
    %45 = arith.truncf %44 : vector<256x128xf32> to vector<256x128xbf16>
    %cst_26 = arith.constant dense<0.000000e+00> : vector<256x128xf32>
    %46 = tpu.matmul %45, %16, %cst_26 {dimension_numbers = #tpu.dot_dimension_numbers<[1], [0], [0], [1], [0, 0, 1, 1], [], []>} : vector<256x128xbf16>, vector<128x128xbf16>, vector<256x128xf32> -> vector<256x128xf32>
    %47 = vector.broadcast %6 : vector<1x128xf32> to vector<256x128xf32>
    %48 = arith.addf %46, %47 : vector<256x128xf32>
    %49 = vector.broadcast %4 : vector<256x1xf32> to vector<256x128xf32>
    %50 = arith.mulf %48, %49 : vector<256x128xf32>
    %cst_27 = arith.constant dense<0.000000e+00> : vector<128xf32>
    %51 = vector.multi_reduction <add>, %50, %cst_27 [0] : vector<256x128xf32> to vector<128xf32>
    %52 = vector.shape_cast %51 : vector<128xf32> to vector<1x128xf32>
    %cst_28 = arith.constant 0.0833333358 : f32
    %53 = vector.broadcast %cst_28 : f32 to vector<1x128xf32>
    %54 = arith.mulf %52, %53 : vector<1x128xf32>
    %55 = arith.mulf %50, %48 : vector<256x128xf32>
    %cst_29 = arith.constant dense<0.000000e+00> : vector<128xf32>
    %56 = vector.multi_reduction <add>, %55, %cst_29 [0] : vector<256x128xf32> to vector<128xf32>
    %57 = vector.shape_cast %56 : vector<128xf32> to vector<1x128xf32>
    %cst_30 = arith.constant 0.0833333358 : f32
    %58 = vector.broadcast %cst_30 : f32 to vector<1x128xf32>
    %59 = arith.mulf %57, %58 : vector<1x128xf32>
    %60 = arith.mulf %54, %54 : vector<1x128xf32>
    %61 = arith.subf %59, %60 : vector<1x128xf32>
    %cst_31 = arith.constant 0.000000e+00 : f32
    %62 = vector.broadcast %cst_31 : f32 to vector<1x128xf32>
    %63 = arith.maximumf %61, %62 : vector<1x128xf32>
    %64 = vector.broadcast %54 : vector<1x128xf32> to vector<256x128xf32>
    %65 = arith.subf %48, %64 : vector<256x128xf32>
    %cst_32 = arith.constant 9.99999974E-6 : f32
    %66 = vector.broadcast %cst_32 : f32 to vector<1x128xf32>
    %67 = arith.addf %63, %66 : vector<1x128xf32>
    %68 = math.rsqrt %67 : vector<1x128xf32>
    %69 = vector.broadcast %68 : vector<1x128xf32> to vector<256x128xf32>
    %70 = arith.mulf %65, %69 : vector<256x128xf32>
    %71 = vector.broadcast %7 : vector<1x128xf32> to vector<256x128xf32>
    %72 = arith.mulf %70, %71 : vector<256x128xf32>
    %73 = vector.broadcast %8 : vector<1x128xf32> to vector<256x128xf32>
    %74 = arith.addf %72, %73 : vector<256x128xf32>
    %cst_33 = arith.constant 0.000000e+00 : f32
    %75 = vector.broadcast %cst_33 : f32 to vector<256x128xf32>
    %76 = arith.maximumf %74, %75 : vector<256x128xf32>
    %77 = arith.truncf %76 : vector<256x128xf32> to vector<256x128xbf16>
    %cst_34 = arith.constant dense<0.000000e+00> : vector<256x128xf32>
    %78 = tpu.matmul %77, %17, %cst_34 {dimension_numbers = #tpu.dot_dimension_numbers<[1], [0], [0], [1], [0, 0, 1, 1], [], []>} : vector<256x128xbf16>, vector<128x128xbf16>, vector<256x128xf32> -> vector<256x128xf32>
    %79 = vector.broadcast %9 : vector<1x128xf32> to vector<256x128xf32>
    %80 = arith.addf %78, %79 : vector<256x128xf32>
    %cst_35 = arith.constant 0.000000e+00 : f32
    %81 = vector.broadcast %cst_35 : f32 to vector<256x128xf32>
    %82 = arith.maximumf %80, %81 : vector<256x128xf32>
    %83 = arith.truncf %82 : vector<256x128xf32> to vector<256x128xbf16>
    %c0_36 = arith.constant 0 : index
    %c0_37 = arith.constant 0 : index
    %84 = vector.load %arg7[%c0_36, %c0_37] : memref<128x128xbf16, #tpu.memory_space<vmem>>, vector<128x128xbf16>
    %c0_38 = arith.constant 0 : index
    %c0_39 = arith.constant 0 : index
    %85 = vector.load %arg8[%c0_38, %c0_39] : memref<128x128xbf16, #tpu.memory_space<vmem>>, vector<128x128xbf16>
    %c0_i32_40 = arith.constant 0 : i32
    %86 = tpu.assume_multiple %c0_i32_40, 256 : i32
    %c0_i32_41 = arith.constant 0 : i32
    %c0_i32_42 = arith.constant 0 : i32
    %c0_i32_43 = arith.constant 0 : i32
    %87 = tpu.memref_slice %arg0[%86, %c0_i32_43] : memref<256x256xbf16, #tpu.memory_space<any>> -> memref<256x256xbf16, #tpu.memory_space<any>>
    %c0_i32_44 = arith.constant 0 : i32
    %c0_i32_45 = arith.constant 0 : i32
    %88 = tpu.memref_slice %arg14[%c0_i32_41, %c0_i32_44, %c0_i32_45] : memref<2x256x256xbf16, #tpu.memory_space<vmem>> -> memref<1x256x256xbf16, #tpu.memory_space<vmem>>
    %89 = tpu.memref_squeeze %88 : memref<1x256x256xbf16, #tpu.memory_space<vmem>> -> memref<256x256xbf16, #tpu.memory_space<vmem>>
    %90 = tpu.memref_slice %arg15[%c0_i32_42] : memref<2x!tpu.dma_semaphore, #tpu.memory_space<semaphore_mem>> -> memref<1x!tpu.dma_semaphore, #tpu.memory_space<semaphore_mem>>
    %91 = tpu.memref_squeeze %90 : memref<1x!tpu.dma_semaphore, #tpu.memory_space<semaphore_mem>> -> memref<!tpu.dma_semaphore, #tpu.memory_space<semaphore_mem>>
    tpu.enqueue_dma source(%87 : memref<256x256xbf16, #tpu.memory_space<any>>) target(%89 : memref<256x256xbf16, #tpu.memory_space<vmem>>) target_semaphore(%91 : memref<!tpu.dma_semaphore, #tpu.memory_space<semaphore_mem>>)
    %c0_i32_46 = arith.constant 0 : i32
    %c1_i32_47 = arith.constant 1 : i32
    %92 = arith.andi %c0_i32_46, %c1_i32_47 : i32
    %c256_i32_48 = arith.constant 256 : i32
    %93 = arith.muli %c0_i32_46, %c256_i32_48 : i32
    %94 = tpu.assume_multiple %93, 256 : i32
    %c0_i32_49 = arith.constant 0 : i32
    %95 = tpu.memref_slice %arg0[%94, %c0_i32_49] : memref<256x256xbf16, #tpu.memory_space<any>> -> memref<256x256xbf16, #tpu.memory_space<any>>
    %c0_i32_50 = arith.constant 0 : i32
    %c0_i32_51 = arith.constant 0 : i32
    %96 = tpu.memref_slice %arg14[%92, %c0_i32_50, %c0_i32_51] : memref<2x256x256xbf16, #tpu.memory_space<vmem>> -> memref<1x256x256xbf16, #tpu.memory_space<vmem>>
    %97 = tpu.memref_squeeze %96 : memref<1x256x256xbf16, #tpu.memory_space<vmem>> -> memref<256x256xbf16, #tpu.memory_space<vmem>>
    %98 = tpu.memref_slice %arg15[%92] : memref<2x!tpu.dma_semaphore, #tpu.memory_space<semaphore_mem>> -> memref<1x!tpu.dma_semaphore, #tpu.memory_space<semaphore_mem>>
    %99 = tpu.memref_squeeze %98 : memref<1x!tpu.dma_semaphore, #tpu.memory_space<semaphore_mem>> -> memref<!tpu.dma_semaphore, #tpu.memory_space<semaphore_mem>>
    tpu.wait_dma2 semaphore(%99 : memref<!tpu.dma_semaphore, #tpu.memory_space<semaphore_mem>>) src(%95 : memref<256x256xbf16, #tpu.memory_space<any>>) dst(%97 : memref<256x256xbf16, #tpu.memory_space<vmem>>)
    %c1_i32_52 = arith.constant 1 : i32
    %100 = arith.addi %c0_i32_46, %c1_i32_52 : i32
    %c1_i32_53 = arith.constant 1 : i32
    %101 = arith.cmpi slt, %100, %c1_i32_53 : i32
    %102 = arith.extui %101 : i1 to i32
    %c0_i32_54 = arith.constant 0 : i32
    %103 = arith.cmpi ne, %102, %c0_i32_54 : i32
    scf.if %103 {
      %c1_i32_99 = arith.constant 1 : i32
      %205 = arith.addi %c0_i32_46, %c1_i32_99 : i32
      %c1_i32_100 = arith.constant 1 : i32
      %206 = arith.subi %c1_i32_100, %92 : i32
      %c256_i32_101 = arith.constant 256 : i32
      %207 = arith.muli %205, %c256_i32_101 : i32
      %208 = tpu.assume_multiple %207, 256 : i32
      %c0_i32_102 = arith.constant 0 : i32
      %209 = tpu.memref_slice %arg0[%208, %c0_i32_102] : memref<256x256xbf16, #tpu.memory_space<any>> -> memref<256x256xbf16, #tpu.memory_space<any>>
      %c0_i32_103 = arith.constant 0 : i32
      %c0_i32_104 = arith.constant 0 : i32
      %210 = tpu.memref_slice %arg14[%206, %c0_i32_103, %c0_i32_104] : memref<2x256x256xbf16, #tpu.memory_space<vmem>> -> memref<1x256x256xbf16, #tpu.memory_space<vmem>>
      %211 = tpu.memref_squeeze %210 : memref<1x256x256xbf16, #tpu.memory_space<vmem>> -> memref<256x256xbf16, #tpu.memory_space<vmem>>
      %212 = tpu.memref_slice %arg15[%206] : memref<2x!tpu.dma_semaphore, #tpu.memory_space<semaphore_mem>> -> memref<1x!tpu.dma_semaphore, #tpu.memory_space<semaphore_mem>>
      %213 = tpu.memref_squeeze %212 : memref<1x!tpu.dma_semaphore, #tpu.memory_space<semaphore_mem>> -> memref<!tpu.dma_semaphore, #tpu.memory_space<semaphore_mem>>
      tpu.enqueue_dma source(%209 : memref<256x256xbf16, #tpu.memory_space<any>>) target(%211 : memref<256x256xbf16, #tpu.memory_space<vmem>>) target_semaphore(%213 : memref<!tpu.dma_semaphore, #tpu.memory_space<semaphore_mem>>)
    } else {
    }
    %c256_i32_55 = arith.constant 256 : i32
    %104 = arith.muli %c0_i32_46, %c256_i32_55 : i32
    %105 = tpu.assume_multiple %104, 256 : i32
    %106 = arith.index_cast %92 : i32 to index
    %c0_56 = arith.constant 0 : index
    %c0_57 = arith.constant 0 : index
    %107 = vector.load %arg14[%106, %c0_56, %c0_57] : memref<2x256x256xbf16, #tpu.memory_space<vmem>>, vector<1x256x256xbf16>
    %108 = vector.shape_cast %107 : vector<1x256x256xbf16> to vector<256x256xbf16>
    %cst_58 = arith.constant dense<0.000000e+00> : vector<256x128xf32>
    %109 = tpu.matmul %108, %83, %cst_58 {dimension_numbers = #tpu.dot_dimension_numbers<[1], [0], [0], [1], [0, 0, 1, 1], [], []>} : vector<256x256xbf16>, vector<256x128xbf16>, vector<256x128xf32> -> vector<256x128xf32>
    %110 = arith.index_cast %105 : i32 to index
    %c0_59 = arith.constant 0 : index
    %111 = vector.load %arg13[%110, %c0_59] : memref<256x128xf32, #tpu.memory_space<vmem>>, vector<256x128xf32>
    tpu.vector_store %arg13[%110, %c0_59], %109 {strides = array<i32>} : memref<256x128xf32, #tpu.memory_space<vmem>>, vector<256x128xf32>,
    %c1_i32_60 = arith.constant 1 : i32
    %c0_61 = arith.constant 0 : index
    %c0_62 = arith.constant 0 : index
    %112 = vector.load %arg13[%c0_61, %c0_62] : memref<256x128xf32, #tpu.memory_space<vmem>>, vector<256x128xf32>
    %113 = arith.truncf %112 : vector<256x128xf32> to vector<256x128xbf16>
    %cst_63 = arith.constant dense<0.000000e+00> : vector<256x128xf32>
    %114 = tpu.matmul %113, %84, %cst_63 {dimension_numbers = #tpu.dot_dimension_numbers<[1], [0], [0], [1], [0, 0, 1, 1], [], []>} : vector<256x128xbf16>, vector<128x128xbf16>, vector<256x128xf32> -> vector<256x128xf32>
    %115 = vector.broadcast %10 : vector<1x128xf32> to vector<256x128xf32>
    %116 = arith.addf %114, %115 : vector<256x128xf32>
    %117 = vector.broadcast %4 : vector<256x1xf32> to vector<256x128xf32>
    %118 = arith.mulf %116, %117 : vector<256x128xf32>
    %cst_64 = arith.constant dense<0.000000e+00> : vector<128xf32>
    %119 = vector.multi_reduction <add>, %118, %cst_64 [0] : vector<256x128xf32> to vector<128xf32>
    %120 = vector.shape_cast %119 : vector<128xf32> to vector<1x128xf32>
    %cst_65 = arith.constant 0.0833333358 : f32
    %121 = vector.broadcast %cst_65 : f32 to vector<1x128xf32>
    %122 = arith.mulf %120, %121 : vector<1x128xf32>
    %123 = arith.mulf %118, %116 : vector<256x128xf32>
    %cst_66 = arith.constant dense<0.000000e+00> : vector<128xf32>
    %124 = vector.multi_reduction <add>, %123, %cst_66 [0] : vector<256x128xf32> to vector<128xf32>
    %125 = vector.shape_cast %124 : vector<128xf32> to vector<1x128xf32>
    %cst_67 = arith.constant 0.0833333358 : f32
    %126 = vector.broadcast %cst_67 : f32 to vector<1x128xf32>
    %127 = arith.mulf %125, %126 : vector<1x128xf32>
    %128 = arith.mulf %122, %122 : vector<1x128xf32>
    %129 = arith.subf %127, %128 : vector<1x128xf32>
    %cst_68 = arith.constant 0.000000e+00 : f32
    %130 = vector.broadcast %cst_68 : f32 to vector<1x128xf32>
    %131 = arith.maximumf %129, %130 : vector<1x128xf32>
    %132 = vector.broadcast %122 : vector<1x128xf32> to vector<256x128xf32>
    %133 = arith.subf %116, %132 : vector<256x128xf32>
    %cst_69 = arith.constant 9.99999974E-6 : f32
    %134 = vector.broadcast %cst_69 : f32 to vector<1x128xf32>
    %135 = arith.addf %131, %134 : vector<1x128xf32>
    %136 = math.rsqrt %135 : vector<1x128xf32>
    %137 = vector.broadcast %136 : vector<1x128xf32> to vector<256x128xf32>
    %138 = arith.mulf %133, %137 : vector<256x128xf32>
    %139 = vector.broadcast %11 : vector<1x128xf32> to vector<256x128xf32>
    %140 = arith.mulf %138, %139 : vector<256x128xf32>
    %141 = vector.broadcast %12 : vector<1x128xf32> to vector<256x128xf32>
    %142 = arith.addf %140, %141 : vector<256x128xf32>
    %cst_70 = arith.constant 0.000000e+00 : f32
    %143 = vector.broadcast %cst_70 : f32 to vector<256x128xf32>
    %144 = arith.maximumf %142, %143 : vector<256x128xf32>
    %145 = arith.truncf %144 : vector<256x128xf32> to vector<256x128xbf16>
    %cst_71 = arith.constant dense<0.000000e+00> : vector<256x128xf32>
    %146 = tpu.matmul %145, %85, %cst_71 {dimension_numbers = #tpu.dot_dimension_numbers<[1], [0], [0], [1], [0, 0, 1, 1], [], []>} : vector<256x128xbf16>, vector<128x128xbf16>, vector<256x128xf32> -> vector<256x128xf32>
    %147 = vector.broadcast %13 : vector<1x128xf32> to vector<256x128xf32>
    %148 = arith.addf %146, %147 : vector<256x128xf32>
    %cst_72 = arith.constant 0.000000e+00 : f32
    %149 = vector.broadcast %cst_72 : f32 to vector<256x128xf32>
    %150 = arith.maximumf %148, %149 : vector<256x128xf32>
    %151 = arith.truncf %150 : vector<256x128xf32> to vector<256x128xbf16>
    %c0_73 = arith.constant 0 : index
    %c0_74 = arith.constant 0 : index
    %152 = vector.load %arg2[%c0_73, %c0_74] : memref<2x256xbf16, #tpu.memory_space<vmem>>, vector<2x256xbf16>
    %c0_75 = arith.constant 0 : index
    %c0_76 = arith.constant 0 : index
    %153 = vector.load %arg3[%c0_75, %c0_76] : memref<2x1xf32, #tpu.memory_space<vmem>>, vector<2x1xf32>
    %c0_77 = arith.constant 0 : index
    %c0_78 = arith.constant 0 : index
    %154 = vector.load %arg9[%c0_77, %c0_78] : memref<128x128xbf16, #tpu.memory_space<vmem>>, vector<128x128xbf16>
    %cst_79 = arith.constant dense<0.000000e+00> : vector<2x128xf32>
    %155 = tpu.matmul %152, %83, %cst_79 {dimension_numbers = #tpu.dot_dimension_numbers<[1], [0], [0], [1], [0, 0, 1, 1], [], []>} : vector<2x256xbf16>, vector<256x128xbf16>, vector<2x128xf32> -> vector<2x128xf32>
    %156 = vector.broadcast %153 : vector<2x1xf32> to vector<2x128xf32>
    %157 = arith.mulf %155, %156 : vector<2x128xf32>
    %158 = arith.truncf %157 : vector<2x128xf32> to vector<2x128xbf16>
    %cst_80 = arith.constant dense<0.000000e+00> : vector<2x128xf32>
    %159 = tpu.matmul %158, %154, %cst_80 {dimension_numbers = #tpu.dot_dimension_numbers<[1], [0], [0], [1], [0, 0, 1, 1], [], []>} : vector<2x128xbf16>, vector<128x128xbf16>, vector<2x128xf32> -> vector<2x128xf32>
    %160 = math.tanh %159 : vector<2x128xf32>
    %161 = arith.truncf %160 : vector<2x128xf32> to vector<2x128xbf16>
    %cst_81 = arith.constant dense<0.000000e+00> : vector<256x128xf32>
    %162 = tpu.matmul %152, %161, %cst_81 {dimension_numbers = #tpu.dot_dimension_numbers<[0], [0], [1], [1], [0, 1, 1, 1], [], []>} : vector<2x256xbf16>, vector<2x128xbf16>, vector<256x128xf32> -> vector<256x128xf32>
    %163 = arith.mulf %82, %162 : vector<256x128xf32>
    %cst_82 = arith.constant dense<0.000000e+00> : vector<256xf32>
    %164 = vector.multi_reduction <add>, %163, %cst_82 [1] : vector<256x128xf32> to vector<256xf32>
    %165 = vector.shape_cast %164 : vector<256xf32> to vector<256x1xf32>
    %166 = arith.negf %165 : vector<256x1xf32>
    %167 = math.exp %166 : vector<256x1xf32>
    %cst_83 = arith.constant 1.000000e+00 : f32
    %168 = vector.broadcast %cst_83 : f32 to vector<256x1xf32>
    %169 = arith.addf %168, %167 : vector<256x1xf32>
    %170 = arith.divf %168, %169 : vector<256x1xf32>
    %171 = vector.broadcast %170 : vector<256x1xf32> to vector<256x128xf32>
    %172 = arith.mulf %171, %82 : vector<256x128xf32>
    %173 = arith.truncf %172 : vector<256x128xf32> to vector<256x128xbf16>
    %cst_84 = arith.constant dense<0.000000e+00> : vector<2x128xf32>
    %174 = tpu.matmul %152, %173, %cst_84 {dimension_numbers = #tpu.dot_dimension_numbers<[1], [0], [0], [1], [0, 0, 1, 1], [], []>} : vector<2x256xbf16>, vector<256x128xbf16>, vector<2x128xf32> -> vector<2x128xf32>
    %cst_85 = arith.constant dense<0.000000e+00> : vector<2x128xf32>
    %175 = tpu.matmul %152, %151, %cst_85 {dimension_numbers = #tpu.dot_dimension_numbers<[1], [0], [0], [1], [0, 0, 1, 1], [], []>} : vector<2x256xbf16>, vector<256x128xbf16>, vector<2x128xf32> -> vector<2x128xf32>
    %176 = vector.broadcast %153 : vector<2x1xf32> to vector<2x128xf32>
    %177 = arith.mulf %175, %176 : vector<2x128xf32>
    %178 = arith.truncf %177 : vector<2x128xf32> to vector<2x128xbf16>
    %cst_86 = arith.constant dense<0.000000e+00> : vector<2x128xf32>
    %179 = tpu.matmul %178, %154, %cst_86 {dimension_numbers = #tpu.dot_dimension_numbers<[1], [0], [0], [1], [0, 0, 1, 1], [], []>} : vector<2x128xbf16>, vector<128x128xbf16>, vector<2x128xf32> -> vector<2x128xf32>
    %180 = math.tanh %179 : vector<2x128xf32>
    %181 = arith.truncf %180 : vector<2x128xf32> to vector<2x128xbf16>
    %cst_87 = arith.constant dense<0.000000e+00> : vector<256x128xf32>
    %182 = tpu.matmul %152, %181, %cst_87 {dimension_numbers = #tpu.dot_dimension_numbers<[0], [0], [1], [1], [0, 1, 1, 1], [], []>} : vector<2x256xbf16>, vector<2x128xbf16>, vector<256x128xf32> -> vector<256x128xf32>
    %183 = arith.mulf %150, %182 : vector<256x128xf32>
    %cst_88 = arith.constant dense<0.000000e+00> : vector<256xf32>
    %184 = vector.multi_reduction <add>, %183, %cst_88 [1] : vector<256x128xf32> to vector<256xf32>
    %185 = vector.shape_cast %184 : vector<256xf32> to vector<256x1xf32>
    %186 = arith.negf %185 : vector<256x1xf32>
    %187 = math.exp %186 : vector<256x1xf32>
    %cst_89 = arith.constant 1.000000e+00 : f32
    %188 = vector.broadcast %cst_89 : f32 to vector<256x1xf32>
    %189 = arith.addf %188, %187 : vector<256x1xf32>
    %190 = arith.divf %188, %189 : vector<256x1xf32>
    %191 = vector.broadcast %190 : vector<256x1xf32> to vector<256x128xf32>
    %192 = arith.mulf %191, %150 : vector<256x128xf32>
    %193 = arith.truncf %192 : vector<256x128xf32> to vector<256x128xbf16>
    %cst_90 = arith.constant dense<0.000000e+00> : vector<2x128xf32>
    %194 = tpu.matmul %152, %193, %cst_90 {dimension_numbers = #tpu.dot_dimension_numbers<[1], [0], [0], [1], [0, 0, 1, 1], [], []>} : vector<2x256xbf16>, vector<256x128xbf16>, vector<2x128xf32> -> vector<2x128xf32>
    %195 = arith.truncf %174 : vector<2x128xf32> to vector<2x128xbf16>
    %c0_91 = arith.constant 0 : index
    %c0_92 = arith.constant 0 : index
    %196 = vector.load %arg10[%c0_91, %c0_92] : memref<128x128xbf16, #tpu.memory_space<vmem>>, vector<128x128xbf16>
    %cst_93 = arith.constant dense<0.000000e+00> : vector<2x128xf32>
    %197 = tpu.matmul %195, %196, %cst_93 {dimension_numbers = #tpu.dot_dimension_numbers<[1], [0], [0], [1], [0, 0, 1, 1], [], []>} : vector<2x128xbf16>, vector<128x128xbf16>, vector<2x128xf32> -> vector<2x128xf32>
    %198 = arith.truncf %194 : vector<2x128xf32> to vector<2x128xbf16>
    %c0_94 = arith.constant 0 : index
    %c0_95 = arith.constant 0 : index
    %199 = vector.load %arg11[%c0_94, %c0_95] : memref<128x128xbf16, #tpu.memory_space<vmem>>, vector<128x128xbf16>
    %cst_96 = arith.constant dense<0.000000e+00> : vector<2x128xf32>
    %200 = tpu.matmul %198, %199, %cst_96 {dimension_numbers = #tpu.dot_dimension_numbers<[1], [0], [0], [1], [0, 0, 1, 1], [], []>} : vector<2x128xbf16>, vector<128x128xbf16>, vector<2x128xf32> -> vector<2x128xf32>
    %201 = arith.addf %197, %200 : vector<2x128xf32>
    %202 = vector.broadcast %14 : vector<1x128xf32> to vector<2x128xf32>
    %203 = arith.addf %201, %202 : vector<2x128xf32>
    %c0_97 = arith.constant 0 : index
    %c0_98 = arith.constant 0 : index
    %204 = vector.load %arg12[%c0_97, %c0_98] : memref<2x128xf32, #tpu.memory_space<vmem>>, vector<2x128xf32>
    tpu.vector_store %arg12[%c0_97, %c0_98], %203 {strides = array<i32>} : memref<2x128xf32, #tpu.memory_space<vmem>>, vector<2x128xf32>,
    return
  }
}

</mosaic_0001>

<bundles_post_ra>
// kernel: tpu_custom_call.1
= control target key start
LH: loop header
LB: loop body
LE: loop exit
PB: predicated region body
PF: predicated region fallthrough
CT: control target
= control target key end

     0   :  { %17 = vsyncpa [#allocation6], 0  ;;  %s8002_s0 = inlined_call_operand.hbm [shape: bf16[256,256], index: 0, kind: input, shape index: {}]   ;;  %s8003_s1 = inlined_call_operand.hbm [shape: bf16[256,128], index: 1, kind: input, shape index: {}]   ;;  %s8004_s2 = inlined_call_operand.vmem [shape: bf16[2,256], index: 2, kind: input, shape index: {}]   ;;  %s8005_s3 = inlined_call_operand.vmem [shape: f32[2,1], index: 3, kind: input, shape index: {}]   ;;  %s8006_s4 = inlined_call_operand.vmem [shape: f32[16,128], index: 4, kind: input, shape index: {}]   ;;  %s8007_s5 = inlined_call_operand.hbm [shape: bf16[128,128], index: 5, kind: input, shape index: {}]   ;;  %s8008_s6 = inlined_call_operand.hbm [shape: bf16[128,128], index: 6, kind: input, shape index: {}]   ;;  %s8009_s7 = inlined_call_operand.hbm [shape: bf16[128,128], index: 7, kind: input, shape index: {}]   ;;  %s8010_s8 = inlined_call_operand.hbm [shape: bf16[128,128], index: 8, kind: input, shape index: {}]   ;;  %s8011_s9 = inlined_call_operand.hbm [shape: bf16[128,128], index: 9, kind: input, shape index: {}]   ;;  %s8012_s10 = inlined_call_operand.hbm [shape: bf16[128,128], index: 10, kind: input, shape index: {}]   ;;  %s8013_s11 = inlined_call_operand.hbm [shape: bf16[128,128], index: 11, kind: input, shape index: {}]   ;;  %s8014_s12 = inlined_call_operand.hbm [shape: f32[2,128], index: 12, kind: output, shape index: {}]  }
   0x1   :  { %18 = vsyncpa [#allocation9], 0 }
   0x2   :  { %19 = vsyncpa [#allocation12], 0 }
   0x3   :  { %20 = vsyncpa [#allocation15], 0 }
   0x4   :  { %21 = vsyncpa [#allocation18], 0 }
   0x5   :  { %22 = vsyncpa [#allocation7], 0  ;;  %s5898_s21 = smov [#allocation8]   ;;  %s5899_s23 = smov [#allocation11]  }
   0x6   :  { %s46_s22 = sshll.u32 %s5898_s21, 4  ;;  %s70_s24 = sshll.u32 %s5899_s23, 4  ;;  %s47_s22 = int_to_ptr.vmem [resolvable:$true] %s46_s22  ;;  %s5985_s24 = int_to_ptr.vmem [resolvable:$true] %s70_s24 }
   0x7   :  { %s5684_s27 = scalar_lea.hbm %s8007_s5, 1024 }
   0x8   :  { %p5685_p0 = scmp.ne.s32.totalorder %s8007_s5, %s5684_s27  ;;  %p5688_p1 = scmp.lt.u32.totalorder %s5684_s27, %s8007_s5 }
   0xa   :  { %p5690_p2 = pnand %p5688_p1, %p5685_p0 }
   0xc   :  { %5693 = shalt.err (!%p5690_p2)
}
   0xd   :  { %s5694_s14 = scalar_lea.vmem %s47_s22, 1024  ;;  %p5699_p4 = scmp.lt.s32.totalorder %s47_s22, %s47_s22 }
   0xe   :  { %p5695_p3 = scmp.ne.s32.totalorder %s47_s22, %s5694_s14  ;;  %p5700_p5 = scmp.lt.s32.totalorder %s5694_s14, %s5694_s14 }
  0x10   :  { %p5701_p6 = por %p5700_p5, %p5699_p4 }
  0x12   :  { %p5702_p7 = pnand %p5701_p6, %p5695_p3 }
  0x14   :  { %5705 = shalt.err (!%p5702_p7)
}
  0x15   :  { %s5900_s15 = smov 64   ;;  %s5901_s16 = smov 4  }
  0x16   :  { %52 = dma.hbm_to_vmem [thread:$0]  %s8007_s5, 1024, %s47_s22, [#allocation9], %s5900_s15, %s5900_s15, %s5901_s16  }
  0x17   :  { %s5706_s21 = scalar_lea.hbm %s8009_s7, 1024 }
  0x18   :  { %p5707_p8 = scmp.ne.s32.totalorder %s8009_s7, %s5706_s21  ;;  %p5710_p9 = scmp.lt.u32.totalorder %s5706_s21, %s8009_s7 }
  0x1a   :  { %p5712_p10 = pnand %p5710_p9, %p5707_p8 }
  0x1c   :  { %5715 = shalt.err (!%p5712_p10)
}
  0x1d   :  { %s5716_s28 = scalar_lea.vmem %s5985_s24, 1024  ;;  %p5721_p12 = scmp.lt.s32.totalorder %s5985_s24, %s5985_s24 }
  0x1e   :  { %p5717_p11 = scmp.ne.s32.totalorder %s5985_s24, %s5716_s28  ;;  %p5722_p13 = scmp.lt.s32.totalorder %s5716_s28, %s5716_s28 }
  0x20   :  { %p5723_p0 = por %p5722_p13, %p5721_p12 }
  0x22   :  { %p5724_p1 = pnand %p5723_p0, %p5717_p11 }
  0x24   :  { %5727 = shalt.err (!%p5724_p1)
}
  0x25   :  { %76 = dma.hbm_to_vmem [thread:$0]  %s8009_s7, 1024, %s5985_s24, [#allocation12], %s5900_s15, %s5900_s15, %s5901_s16  }
  0x26   :  { %s5902_s29 = smov [#allocation14]   ;;  %s5903_s13 = smov [#allocation5]  }
  0x27   :  { %s94_s30 = sshll.u32 %s5902_s29, 4  ;;  %s28_s14 = sshll.u32 %s5903_s13, 4  ;;  %s95_s30 = int_to_ptr.vmem [resolvable:$true] %s94_s30  ;;  %s6022_s14 = int_to_ptr.vmem [resolvable:$true] %s28_s14 }
  0x28   :  { %s5728_s19 = scalar_lea.hbm %s8011_s9, 1024 }
  0x29   :  { %p5729_p2 = scmp.ne.s32.totalorder %s8011_s9, %s5728_s19  ;;  %p5732_p3 = scmp.lt.u32.totalorder %s5728_s19, %s8011_s9 }
  0x2b   :  { %p5734_p4 = pnand %p5732_p3, %p5729_p2 }
  0x2d   :  { %5737 = shalt.err (!%p5734_p4)
}
  0x2e   :  { %s5738_s7 = scalar_lea.vmem %s95_s30, 1024  ;;  %p5743_p6 = scmp.lt.s32.totalorder %s95_s30, %s95_s30 }
  0x2f   :  { %p5739_p5 = scmp.ne.s32.totalorder %s95_s30, %s5738_s7  ;;  %p5744_p7 = scmp.lt.s32.totalorder %s5738_s7, %s5738_s7 }
  0x31   :  { %p5745_p8 = por %p5744_p7, %p5743_p6 }
  0x33   :  { %p5746_p9 = pnand %p5745_p8, %p5739_p5 }
  0x35   :  { %5749 = shalt.err (!%p5746_p9)
}
  0x36   :  { %100 = dma.hbm_to_vmem [thread:$0]  %s8011_s9, 1024, %s95_s30, [#allocation15], %s5900_s15, %s5900_s15, %s5901_s16  }
  0x37   :  { %s5750_s5 = scalar_lea.hbm %s8003_s1, 2048 }
  0x38   :  { %p5751_p10 = scmp.ne.s32.totalorder %s8003_s1, %s5750_s5  ;;  %p5754_p11 = scmp.lt.u32.totalorder %s5750_s5, %s8003_s1 }
  0x3a   :  { %p5756_p12 = pnand %p5754_p11, %p5751_p10 }
  0x3c   :  { %5759 = shalt.err (!%p5756_p12)
}
  0x3d   :  { %s5760_s18 = scalar_lea.vmem %s6022_s14, 2048  ;;  %p5765_p0 = scmp.lt.s32.totalorder %s6022_s14, %s6022_s14 }
  0x3e   :  { %p5761_p13 = scmp.ne.s32.totalorder %s6022_s14, %s5760_s18  ;;  %p5766_p1 = scmp.lt.s32.totalorder %s5760_s18, %s5760_s18 }
  0x40   :  { %p5767_p2 = por %p5766_p1, %p5765_p0 }
  0x42   :  { %p5768_p3 = pnand %p5767_p2, %p5761_p13 }
  0x44   :  { %5771 = shalt.err (!%p5768_p3)
}
  0x45   :  { %34 = dma.hbm_to_vmem [thread:$0]  %s8003_s1, 2048, %s6022_s14, [#allocation6], %s5900_s15, %s5900_s15, %s5901_s16  }
  0x46   :  { %s5904_s19 = smov [#allocation10]   ;;  %s5905_s21 = smov [#allocation13]  }
  0x47   :  { %s58_s20 = sshll.u32 %s5904_s19, 4  ;;  %s82_s23 = sshll.u32 %s5905_s21, 4  ;;  %s59_s20 = int_to_ptr.vmem [resolvable:$true] %s58_s20  ;;  %s6059_s23 = int_to_ptr.vmem [resolvable:$true] %s82_s23 }
  0x48   :  { %s5772_s24 = scalar_lea.hbm %s8008_s6, 1024 }
  0x49   :  { %p5773_p4 = scmp.ne.s32.totalorder %s8008_s6, %s5772_s24  ;;  %p5776_p5 = scmp.lt.u32.totalorder %s5772_s24, %s8008_s6 }
  0x4b   :  { %p5778_p6 = pnand %p5776_p5, %p5773_p4 }
  0x4d   :  { %5781 = shalt.err (!%p5778_p6)
}
  0x4e   :  { %s5782_s1 = scalar_lea.vmem %s59_s20, 1024  ;;  %p5787_p8 = scmp.lt.s32.totalorder %s59_s20, %s59_s20 }
  0x4f   :  { %p5783_p7 = scmp.ne.s32.totalorder %s59_s20, %s5782_s1  ;;  %p5788_p9 = scmp.lt.s32.totalorder %s5782_s1, %s5782_s1 }
  0x51   :  { %p5789_p10 = por %p5788_p9, %p5787_p8 }
  0x53   :  { %p5790_p11 = pnand %p5789_p10, %p5783_p7 }
  0x55   :  { %5793 = shalt.err (!%p5790_p11)
}
  0x56   :  { %64 = dma.hbm_to_vmem [thread:$0]  %s8008_s6, 1024, %s59_s20, [#allocation9], %s5900_s15, %s5900_s15, %s5901_s16  }
  0x57   :  { %s5794_s17 = scalar_lea.hbm %s8010_s8, 1024 }
  0x58   :  { %p5795_p12 = scmp.ne.s32.totalorder %s8010_s8, %s5794_s17  ;;  %p5798_p13 = scmp.lt.u32.totalorder %s5794_s17, %s8010_s8 }
  0x5a   :  { %p5800_p0 = pnand %p5798_p13, %p5795_p12 }
  0x5c   :  { %5803 = shalt.err (!%p5800_p0)
}
  0x5d   :  { %s5804_s21 = scalar_lea.vmem %s6059_s23, 1024  ;;  %p5809_p2 = scmp.lt.s32.totalorder %s6059_s23, %s6059_s23 }
  0x5e   :  { %p5805_p1 = scmp.ne.s32.totalorder %s6059_s23, %s5804_s21  ;;  %p5810_p3 = scmp.lt.s32.totalorder %s5804_s21, %s5804_s21 }
  0x60   :  { %p5811_p4 = por %p5810_p3, %p5809_p2 }
  0x62   :  { %p5812_p5 = pnand %p5811_p4, %p5805_p1 }
  0x64   :  { %5815 = shalt.err (!%p5812_p5)
}
  0x65   :  { %88 = dma.hbm_to_vmem [thread:$0]  %s8010_s8, 1024, %s6059_s23, [#allocation12], %s5900_s15, %s5900_s15, %s5901_s16  }
  0x66   :  { %s5906_s25 = smov [#allocation16]   ;;  %s5907_s24 = smov [#allocation17]  }
  0x67   :  { %s106_s7 = sshll.u32 %s5906_s25, 4  ;;  %s118_s26 = sshll.u32 %s5907_s24, 4  ;;  %s107_s7 = int_to_ptr.vmem [resolvable:$true] %s106_s7  ;;  %s6096_s26 = int_to_ptr.vmem [resolvable:$true] %s118_s26 }
  0x68   :  { %s5816_s5 = scalar_lea.hbm %s8012_s10, 1024 }
  0x69   :  { %p5817_p6 = scmp.ne.s32.totalorder %s8012_s10, %s5816_s5  ;;  %p5820_p7 = scmp.lt.u32.totalorder %s5816_s5, %s8012_s10 }
  0x6b   :  { %p5822_p8 = pnand %p5820_p7, %p5817_p6 }
  0x6d   :  { %5825 = shalt.err (!%p5822_p8)
}
  0x6e   :  { %s5826_s8 = scalar_lea.vmem %s107_s7, 1024  ;;  %p5831_p10 = scmp.lt.s32.totalorder %s107_s7, %s107_s7 }
  0x6f   :  { %p5827_p9 = scmp.ne.s32.totalorder %s107_s7, %s5826_s8  ;;  %p5832_p11 = scmp.lt.s32.totalorder %s5826_s8, %s5826_s8 }
  0x71   :  { %p5833_p12 = por %p5832_p11, %p5831_p10 }
  0x73   :  { %p5834_p13 = pnand %p5833_p12, %p5827_p9 }
  0x75   :  { %5837 = shalt.err (!%p5834_p13)
}
  0x76   :  { %112 = dma.hbm_to_vmem [thread:$0]  %s8012_s10, 1024, %s107_s7, [#allocation15], %s5900_s15, %s5900_s15, %s5901_s16  }
  0x77   :  { %s5838_s9 = scalar_lea.hbm %s8013_s11, 1024 }
  0x78   :  { %p5839_p0 = scmp.ne.s32.totalorder %s8013_s11, %s5838_s9  ;;  %p5842_p1 = scmp.lt.u32.totalorder %s5838_s9, %s8013_s11 }
  0x7a   :  { %p5844_p2 = pnand %p5842_p1, %p5839_p0 }
  0x7c   :  { %5847 = shalt.err (!%p5844_p2)
}
  0x7d   :  { %s5848_s20 = scalar_lea.vmem %s6096_s26, 1024  ;;  %p5853_p4 = scmp.lt.s32.totalorder %s6096_s26, %s6096_s26 }
  0x7e   :  { %p5849_p3 = scmp.ne.s32.totalorder %s6096_s26, %s5848_s20  ;;  %p5854_p5 = scmp.lt.s32.totalorder %s5848_s20, %s5848_s20 }
  0x80   :  { %p5855_p6 = por %p5854_p5, %p5853_p4 }
  0x82   :  { %p5856_p7 = pnand %p5855_p6, %p5849_p3 }
  0x84   :  { %5859 = shalt.err (!%p5856_p7)
}
  0x85   :  { %124 = dma.hbm_to_vmem [thread:$0]  %s8013_s11, 1024, %s6096_s26, [#allocation18], %s5900_s15, %s5900_s15, %s5901_s16  }
  0x86   :  { %5882 = dma.done.wait [#allocation6], 2048  }
  0x87   :  { %5883 = vsyncadd [#allocation6], 4294965248 }
  0x88   :  { %5884 = dma.done.wait [#allocation9], 2048  }
  0x89   :  { %5885 = vsyncadd [#allocation9], 4294965248 }
  0x8a   :  { %5886 = dma.done.wait [#allocation12], 2048  }
  0x8b   :  { %5887 = vsyncadd [#allocation12], 4294965248 }
  0x8c   :  { %5888 = dma.done.wait [#allocation15], 2048  }
  0x8d   :  { %5889 = vsyncadd [#allocation15], 4294965248 }
  0x8e   :  { %5890 = dma.done.wait [#allocation18], 1024  }
  0x8f   :  { %5891 = vsyncadd [#allocation18], 4294966272  ;;  %v150_v0 = vlaneseq  ;;  %s352_s7 = sld [smem:[#allocation0]]   ;;  %s5908_s24 = smov 256   ;;  %v8015_v3 = vmov 0.0   ;;  %v6151_v5 = vld [vmem:[%s8006_s4] sm:$0xff] }
  0x90   :  { %364 = sst [smem:[#allocation21]] %s5908_s24  ;;  %s5909_s11 = smov 2   ;;  %v6156_v6 = vld [vmem:[%s8006_s4 + $0x8] sm:$0xff]  ;;  %v6161_v7 = vld [vmem:[#allocation5] sm:$0xf] }
  0x91   :  { %366 = sst [smem:[#allocation21 + $0x1]] %s5908_s24  ;;  %v6135_v1 = vshrl.u32 %v150_v0, 7  ;;  %s5910_s26 = smov 128   ;;  %8103 = vst [vmem:[#allocation34_spill] sm:$0xff] %v6156_v6  ;;  %v6163_v8 = vld [vmem:[#allocation5 + $0x4] sm:$0xf] }
  0x92   :  { %368 = sst [smem:[#allocation21 + $0x2]] %s5909_s11  ;;  %s5911_s27 = smov [#allocation3]   ;;  %v6166_v9 = vld [vmem:[#allocation5 + $0x8] sm:$0xf]  ;;  %v6168_v10 = vld [vmem:[#allocation5 + $0xc] sm:$0xf] }
  0x93   :  { %8101 = vst [vmem:[#allocation32_spill] sm:$0xff] %v6135_v1  ;;  %370 = sst [smem:[#allocation21 + $0x3]] %s5900_s15  ;;  %v152_v2 = vadd.s32 8, %v6135_v1  ;;  %s6141_s28 = sshll.u32 %s5911_s27, 4  ;;  %v6170_v11 = vld [vmem:[#allocation5 + $0x10] sm:$0xf]  ;;  %s361_s28 = int_to_ptr.vmem [resolvable:$true] %s6141_s28 }
  0x94   :  { %372 = sst [smem:[#allocation21 + $0x4]] %s5910_s26  ;;  %v6172_v12 = vld [vmem:[#allocation5 + $0x14] sm:$0xf]  ;;  %v6174_v13 = vld [vmem:[#allocation5 + $0x18] sm:$0xf]  ;;  %s5913_s4 = smov [#allocation4]  }
  0x95   :  { %374 = sst [smem:[#allocation21 + $0x5]] %s5909_s11  ;;  %vm184_vm0 = vcmp.lt.s32.totalorder %v152_v2, 12  ;;  %s4378_s5 = sshll.u32 %s352_s7, 26  ;;  %v6176_v14 = vld [vmem:[#allocation5 + $0x1c] sm:$0xf] }
  0x96   :  { %376 = sst [smem:[#allocation21 + $0x6]] %s5910_s26  ;;  %v6146_v4 = vsel %vm184_vm0, 1.0, %v8015_v3  ;;  %s6158_s8 = sadd.s32 134217728, %s4378_s5  ;;  %v6178_v15 = vld [vmem:[#allocation5 + $0x20] sm:$0xf] }
  0x97   :  { %8102 = vst [vmem:[#allocation33_spill] sm:$0xff] %v6146_v4  ;;  %378 = sst [smem:[#allocation21 + $0x7]] %s5900_s15  ;;  %v6180_v16 = vld [vmem:[#allocation5 + $0x24] sm:$0xf]  ;;  %v6182_v17 = vld [vmem:[#allocation5 + $0x28] sm:$0xf] }
  0x98   :  { %380 = sst [smem:[#allocation21 + $0x8]] %s5901_s16  ;;  %v6184_v18 = vld [vmem:[#allocation5 + $0x2c] sm:$0xf]  ;;  %v6186_v19 = vld [vmem:[#allocation5 + $0x30] sm:$0xf]  ;;  %s5914_s23 = smov [#allocation20]  }
  0x99   :  { %v6188_v20 = vld [vmem:[#allocation5 + $0x34] sm:$0xf]  ;;  %v6190_v21 = vld [vmem:[#allocation5 + $0x38] sm:$0xf]  ;;  %v6192_v22 = vld [vmem:[#allocation5 + $0x3c] sm:$0xf] }
  0x9a   :  { %v297_v23 = vld [vmem:[#allocation5 + $0x40] sm:$0xf]  ;;  %v298_v24 = vld [vmem:[#allocation5 + $0x44] sm:$0xf]  ;;  %v299_v25 = vld [vmem:[#allocation5 + $0x48] sm:$0xf] }
  0x9b   :  { %v300_v26 = vld [vmem:[#allocation5 + $0x4c] sm:$0xf]  ;;  %v6194_v27 = vld [vmem:[#allocation5 + $0x50] sm:$0xf]  ;;  %v6196_v28 = vld [vmem:[#allocation5 + $0x54] sm:$0xf] }
  0x9c   :  { %v6198_v29 = vld [vmem:[#allocation5 + $0x58] sm:$0xf]  ;;  %v6200_v30 = vld [vmem:[#allocation5 + $0x5c] sm:$0xf]  ;;  %v6202_v31 = vld [vmem:[#allocation5 + $0x60] sm:$0xf] }
  0x9d   :  { %v6204_v32 = vld [vmem:[#allocation5 + $0x64] sm:$0xf]  ;;  %v6206_v33 = vld [vmem:[#allocation5 + $0x68] sm:$0xf]  ;;  %v6208_v34 = vld [vmem:[#allocation5 + $0x6c] sm:$0xf] }
  0x9e   :  { %v6210_v35 = vld [vmem:[#allocation5 + $0x70] sm:$0xf]  ;;  %v6212_v36 = vld [vmem:[#allocation5 + $0x74] sm:$0xf]  ;;  %v6214_v37 = vld [vmem:[#allocation5 + $0x78] sm:$0xf] }
  0x9f   :  { %v6216_v38 = vld [vmem:[#allocation5 + $0x7c] sm:$0xf]  ;;  %v6218_v39 = vld [vmem:[#allocation8] sm:$0xf]  ;;  %v6220_v40 = vld [vmem:[#allocation8 + $0x4] sm:$0xf] }
  0xa0   :  { %v6222_v41 = vld [vmem:[#allocation8 + $0x8] sm:$0xf]  ;;  %v6224_v42 = vld [vmem:[#allocation8 + $0xc] sm:$0xf]  ;;  %v6226_v43 = vld [vmem:[#allocation8 + $0x10] sm:$0xf] }
  0xa1   :  { %v6228_v44 = vld [vmem:[#allocation8 + $0x14] sm:$0xf]  ;;  %v6230_v45 = vld [vmem:[#allocation8 + $0x18] sm:$0xf]  ;;  %v6232_v46 = vld [vmem:[#allocation8 + $0x1c] sm:$0xf] }
  0xa2   :  { %v6234_v47 = vld [vmem:[#allocation8 + $0x20] sm:$0xf]  ;;  %v6236_v48 = vld [vmem:[#allocation8 + $0x24] sm:$0xf]  ;;  %v6238_v49 = vld [vmem:[#allocation8 + $0x28] sm:$0xf] }
  0xa3   :  { %v6240_v50 = vld [vmem:[#allocation8 + $0x2c] sm:$0xf]  ;;  %v6242_v51 = vld [vmem:[#allocation8 + $0x30] sm:$0xf]  ;;  %v6244_v52 = vld [vmem:[#allocation8 + $0x34] sm:$0xf] }
  0xa4   :  { %v6246_v53 = vld [vmem:[#allocation8 + $0x38] sm:$0xf]  ;;  %v6248_v54 = vld [vmem:[#allocation8 + $0x3c] sm:$0xf]  ;;  %v6250_v55 = vld [vmem:[#allocation10] sm:$0xf] }
  0xa5   :  { %v6252_v56 = vld [vmem:[#allocation10 + $0x4] sm:$0xf]  ;;  %v6254_v57 = vld [vmem:[#allocation10 + $0x8] sm:$0xf]  ;;  %v6256_v58 = vld [vmem:[#allocation10 + $0xc] sm:$0xf] }
  0xa6   :  { %v6258_v59 = vld [vmem:[#allocation10 + $0x10] sm:$0xf]  ;;  %v6260_v60 = vld [vmem:[#allocation10 + $0x14] sm:$0xf]  ;;  %v6262_v61 = vld [vmem:[#allocation10 + $0x18] sm:$0xf] }
  0xa7   :  { %8104 = vst [vmem:[#allocation35_spill] sm:$0xff] %v6258_v59  ;;  %8105 = vst [vmem:[#allocation36_spill] sm:$0xff] %v6260_v60  ;;  %v6264_v62 = vld [vmem:[#allocation10 + $0x1c] sm:$0xf]  ;;  %v6266_v63 = vld [vmem:[#allocation10 + $0x20] sm:$0xf] }
  0xa8   :  { %8106 = vst [vmem:[#allocation37_spill] sm:$0xff] %v6266_v63  ;;  %v6268_v0 = vld [vmem:[#allocation10 + $0x24] sm:$0xf]  ;;  %v6271_v2 = vld [vmem:[#allocation10 + $0x28] sm:$0xf]  ;;  %v4388_v63 = vcombine.low %v297_v23, %v298_v24 }
  0xa9   :  { %8107 = vst [vmem:[#allocation38_spill] sm:$0xff] %v6271_v2  ;;  %v6273_v3 = vld [vmem:[#allocation10 + $0x2c] sm:$0xf]  ;;  %v6275_v6 = vld [vmem:[#allocation10 + $0x30] sm:$0xf]  ;;  %v4380_v2 = vcombine.low %v6161_v7, %v6163_v8 }
  0xaa   :  { %8108 = vst [vmem:[#allocation39_spill] sm:$0xff] %v6273_v3  ;;  %v6277_v4 = vld [vmem:[#allocation10 + $0x34] sm:$0xf]  ;;  %v6279_v59 = vld [vmem:[#allocation10 + $0x38] sm:$0xf]  ;;  %v4389_v3 = vcombine.low %v299_v25, %v300_v26 }
  0xab   :  { %8109 = vst [vmem:[#allocation40_spill] sm:$0xff] %v6279_v59  ;;  %v6281_v60 = vld [vmem:[#allocation10 + $0x3c] sm:$0xf] }
  0xac   :  { %382 = dma.general %s8002_s0, 4096, %s361_s28, %s5913_s4, %s5914_s23, [#allocation21], %s6158_s8, 0  }
  0xad   :  { %5892 = dma.done.wait [#allocation4], 4096 }
  0xae   :  { %5893 = vsyncadd [#allocation4], 4294963200  ;;  %1606 = sst [smem:[#allocation23]] %s5908_s24  ;;  %4553 = vmatprep.subr.bf16.mxu0 %v4388_v63  ;;  %v4381_v59 = vcombine.low %v6166_v9, %v6168_v10  ;;  %v4390_v23 = vcombine.low %v6194_v27, %v6196_v28  ;;  %v4382_v7 = vcombine.low %v6170_v11, %v6172_v12  ;;  %v388_v8 = vld [vmem:[#allocation3 + $0x8] sm:$0xff]  ;;  %v4383_v9 = vcombine.low %v6174_v13, %v6176_v14  ;;  %v391_v27 = vld [vmem:[#allocation3 + $0x20] sm:$0xff] }
  0xaf   :  { %1608 = sst [smem:[#allocation23 + $0x1]] %s5908_s24  ;;  %4554 = vmatpush3.bf16.msra.mxu0 %v4380_v2  ;;  %547 = vmatprep.mubr.bf16.mxu0 %v388_v8  ;;  %v4392_v10 = vcombine.low %v6202_v31, %v6204_v32  ;;  %v4384_v11 = vcombine.low %v6178_v15, %v6180_v16  ;;  %v4393_v12 = vcombine.low %v6206_v33, %v6208_v34  ;;  %v394_v28 = vld [vmem:[#allocation3 + $0x38] sm:$0xff]  ;;  %v395_v31 = vld [vmem:[#allocation3 + $0x40] sm:$0xff]  ;;  %v397_v33 = vld [vmem:[#allocation3 + $0x50] sm:$0xff] }
  0xb0   :  { %1610 = sst [smem:[#allocation23 + $0x2]] %s5909_s11  ;;  %4555 = vmatprep.subr.bf16.mxu0 %v4389_v3  ;;  %v4391_v3 = vcombine.low %v6198_v29, %v6200_v30  ;;  %v4385_v24 = vcombine.low %v6182_v17, %v6184_v18  ;;  %v4394_v13 = vcombine.low %v6210_v35, %v6212_v36  ;;  %v4386_v14 = vcombine.low %v6186_v19, %v6188_v20  ;;  %v387_v19 = vld [vmem:[#allocation3] sm:$0xff]  ;;  %v390_v20 = vld [vmem:[#allocation3 + $0x18] sm:$0xff]  ;;  %v393_v29 = vld [vmem:[#allocation3 + $0x30] sm:$0xff] }
  0xb1   :  { %1612 = sst [smem:[#allocation23 + $0x3]] %s5900_s15  ;;  %v4395_v15 = vcombine.low %v6214_v37, %v6216_v38  ;;  %v4396_v16 = vcombine.low %v6218_v39, %v6220_v40  ;;  %v4397_v25 = vcombine.low %v6222_v41, %v6224_v42  ;;  %v4387_v17 = vcombine.low %v6190_v21, %v6192_v22  ;;  %v389_v21 = vld [vmem:[#allocation3 + $0x10] sm:$0xff]  ;;  %v392_v22 = vld [vmem:[#allocation3 + $0x28] sm:$0xff]  ;;  %v398_v32 = vld [vmem:[#allocation3 + $0x58] sm:$0xff] }
  0xb2   :  { %1614 = sst [smem:[#allocation23 + $0x4]] %s5910_s26  ;;  %v4398_v18 = vcombine.low %v6226_v43, %v6228_v44  ;;  %v4399_v26 = vcombine.low %v6230_v45, %v6232_v46  ;;  %v396_v30 = vld [vmem:[#allocation3 + $0x48] sm:$0xff]  ;;  %v399_v35 = vld [vmem:[#allocation3 + $0x60] sm:$0xff]  ;;  %v402_v36 = vld [vmem:[#allocation3 + $0x78] sm:$0xff]  ;;  %v4400_v45 = vcombine.low %v6234_v47, %v6236_v48  ;;  %v4402_v2 = vcombine.low %v6242_v51, %v6244_v52 }
  0xb3   :  { %1616 = sst [smem:[#allocation23 + $0x5]] %s5909_s11  ;;  %4556 = vmatpush3.bf16.msra.mxu0 %v4381_v59  ;;  %5031 = vmatprep.subr.bf16.mxu1 %v4396_v16  ;;  %v400_v34 = vld [vmem:[#allocation3 + $0x68] sm:$0xff]  ;;  %v401_v37 = vld [vmem:[#allocation3 + $0x70] sm:$0xff]  ;;  %v403_v39 = vld [vmem:[#allocation3 + $0x80] sm:$0xff]  ;;  %v4401_v59 = vcombine.low %v6238_v49, %v6240_v50  ;;  %v4403_v47 = vcombine.low %v6246_v53, %v6248_v54 }
  0xb4   :  { %1618 = sst [smem:[#allocation23 + $0x6]] %s5910_s26  ;;  %4557 = vmatprep.subr.bf16.mxu0 %v4390_v23  ;;  %5032 = vmatpush3.bf16.msra.mxu1 %v4396_v16  ;;  %v404_v38 = vld [vmem:[#allocation3 + $0x88] sm:$0xff]  ;;  %v406_v40 = vld [vmem:[#allocation3 + $0x98] sm:$0xff]  ;;  %v405_v41 = vld [vmem:[#allocation3 + $0x90] sm:$0xff] }
  0xb5   :  { %1620 = sst [smem:[#allocation23 + $0x7]] %s5900_s15  ;;  %5033 = vmatprep.subr.bf16.mxu1 %v4397_v25  ;;  %v408_v42 = vld [vmem:[#allocation3 + $0xa8] sm:$0xff]  ;;  %v407_v43 = vld [vmem:[#allocation3 + $0xa0] sm:$0xff]  ;;  %v410_v44 = vld [vmem:[#allocation3 + $0xb8] sm:$0xff]  ;;  %s5915_s15 = smov [#allocation22]  }
  0xb6   :  { %1622 = sst [smem:[#allocation23 + $0x8]] %s5901_s16  ;;  %v409_v46 = vld [vmem:[#allocation3 + $0xb0] sm:$0xff]  ;;  %v412_v63 = vld [vmem:[#allocation3 + $0xc8] sm:$0xff]  ;;  %v411_v23 = vld [vmem:[#allocation3 + $0xc0] sm:$0xff] }
  0xb7   :  { %4558 = vmatpush3.bf16.msra.mxu0 %v4382_v7  ;;  %v414_v48 = vld [vmem:[#allocation3 + $0xd8] sm:$0xff]  ;;  %v413_v49 = vld [vmem:[#allocation3 + $0xd0] sm:$0xff]  ;;  %v416_v50 = vld [vmem:[#allocation3 + $0xe8] sm:$0xff] }
  0xb8   :  { %4559 = vmatprep.subr.bf16.mxu0 %v4391_v3  ;;  %5034 = vmatpush3.bf16.msra.mxu1 %v4397_v25  ;;  %v415_v7 = vld [vmem:[#allocation3 + $0xe0] sm:$0xff]  ;;  %v418_v8 = vld [vmem:[#allocation3 + $0xf8] sm:$0xff]  ;;  %v417_v51 = vld [vmem:[#allocation3 + $0xf0] sm:$0xff] }
  0xb9   :  { %5035 = vmatprep.subr.bf16.mxu1 %v4398_v18 }
  0xbb   :  { %4560 = vmatpush3.bf16.msra.mxu0 %v4383_v9 }
  0xbc   :  { %4561 = vmatprep.subr.bf16.mxu0 %v4392_v10  ;;  %5036 = vmatpush3.bf16.msra.mxu1 %v4398_v18 }
  0xbd   :  { %5037 = vmatprep.subr.bf16.mxu1 %v4399_v26 }
  0xbf   :  { %4562 = vmatpush3.bf16.msra.mxu0 %v4384_v11 }
  0xc0   :  { %4563 = vmatprep.subr.bf16.mxu0 %v4393_v12  ;;  %5038 = vmatpush3.bf16.msra.mxu1 %v4399_v26 }
  0xc1   :  { %5039 = vmatprep.subr.bf16.mxu1 %v4400_v45 }
  0xc3   :  { %4564 = vmatpush3.bf16.msra.mxu0 %v4385_v24 }
  0xc4   :  { %4565 = vmatprep.subr.bf16.mxu0 %v4394_v13  ;;  %5040 = vmatpush3.bf16.msra.mxu1 %v4400_v45 }
  0xc5   :  { %5041 = vmatprep.subr.bf16.mxu1 %v4401_v59 }
  0xc7   :  { %4566 = vmatpush3.bf16.msra.mxu0 %v4386_v14 }
  0xc8   :  { %4567 = vmatprep.subr.bf16.mxu0 %v4395_v15  ;;  %5042 = vmatpush3.bf16.msra.mxu1 %v4401_v59 }
  0xc9   :  { %5043 = vmatprep.subr.bf16.mxu1 %v4402_v2 }
  0xcb   :  { %4568 = vmatpush3.bf16.msra.mxu0 %v4387_v17 }
  0xcc   :  { %5044 = vmatpush3.bf16.msra.mxu1 %v4402_v2 }
  0xcd   :  { %5045 = vmatprep.subr.bf16.mxu1 %v4403_v47 }
  0xce   :  { %548 = vmatmul.mubr.bf16.vlgmr.msra.gmra.mrb[0].mxu0 %v387_v19 }
  0xcf   :  { %555 = vmatprep.mubr.bf16.mxu0 %v390_v20 }
  0xd0   :  { %5046 = vmatpush3.bf16.msra.mxu1 %v4403_v47 }
  0xd6   :  { %556 = vmatmul.mubr.bf16.gmra.mrb[4].mxu0 %v389_v21 }
  0xd7   :  { %563 = vmatprep.mubr.bf16.mxu0 %v392_v22 }
  0xde   :  { %564 = vmatmul.mubr.bf16.gmra.mrb[8].mxu0 %v391_v27 }
  0xdf   :  { %571 = vmatprep.mubr.bf16.mxu0 %v394_v28 }
  0xe6   :  { %572 = vmatmul.mubr.bf16.gmra.mrb[12].mxu0 %v393_v29 }
  0xe7   :  { %579 = vmatprep.mubr.bf16.mxu0 %v396_v30 }
  0xee   :  { %580 = vmatmul.mubr.bf16.gmra.mrb[16].mxu0 %v395_v31 }
  0xef   :  { %587 = vmatprep.mubr.bf16.mxu0 %v398_v32 }
  0xf6   :  { %588 = vmatmul.mubr.bf16.gmra.mrb[20].mxu0 %v397_v33 }
  0xf7   :  { %595 = vmatprep.mubr.bf16.mxu0 %v400_v34 }
  0xfe   :  { %596 = vmatmul.mubr.bf16.gmra.mrb[24].mxu0 %v399_v35 }
  0xff   :  { %603 = vmatprep.mubr.bf16.mxu0 %v402_v36 }
 0x106   :  { %604 = vmatmul.mubr.bf16.gmra.mrb[28].mxu0 %v401_v37 }
 0x107   :  { %611 = vmatprep.mubr.bf16.mxu0 %v404_v38 }
 0x10e   :  { %612 = vmatmul.mubr.bf16.gmra.mrb[32].mxu0 %v403_v39 }
 0x10f   :  { %619 = vmatprep.mubr.bf16.mxu0 %v406_v40 }
 0x116   :  { %620 = vmatmul.mubr.bf16.gmra.mrb[36].mxu0 %v405_v41 }
 0x117   :  { %627 = vmatprep.mubr.bf16.mxu0 %v408_v42 }
 0x11e   :  { %628 = vmatmul.mubr.bf16.gmra.mrb[40].mxu0 %v407_v43 }
 0x11f   :  { %635 = vmatprep.mubr.bf16.mxu0 %v410_v44 }
 0x126   :  { %636 = vmatmul.mubr.bf16.gmra.mrb[44].mxu0 %v409_v46 }
 0x127   :  { %643 = vmatprep.mubr.bf16.mxu0 %v412_v63 }
 0x12e   :  { %644 = vmatmul.mubr.bf16.gmra.mrb[48].mxu0 %v411_v23 }
 0x12f   :  { %651 = vmatprep.mubr.bf16.mxu0 %v414_v48 }
 0x136   :  { %652 = vmatmul.mubr.bf16.gmra.mrb[52].mxu0 %v413_v49 }
 0x137   :  { %659 = vmatprep.mubr.bf16.mxu0 %v416_v50 }
 0x13e   :  { %660 = vmatmul.mubr.bf16.gmra.mrb[56].mxu0 %v415_v7 }
 0x13f   :  { %667 = vmatprep.mubr.bf16.mxu0 %v418_v8 }
 0x146   :  { %668 = vmatmul.mubr.bf16.gmra.mrb[60].mxu0 %v417_v51 }
 0x1a1   :  { %v4569_v52 = vpop.f32.mrb[0].mxu0 }
 0x1a2   :  { %v4570_v3 = vpop.f32.mrb[1].mxu0 }
 0x1a3   :  { %v4571_v9 = vadd.f32 %v4570_v3, %v4569_v52  ;;  %v4572_v10 = vpop.f32.mrb[2].mxu0 }
 0x1a4   :  { %v4573_v53 = vpop.f32.mrb[3].mxu0 }
 0x1a5   :  { %v4574_v54 = vadd.f32 %v4573_v53, %v4572_v10 }
 0x1a7   :  { %v740_v11 = vpack.c.bf16 %v4574_v54, %v4571_v9 }
 0x1a9   :  { %v4575_v12 = vpop.f32.mrb[4].mxu0  ;;  %5047 = vmatprep.mubr.bf16.mxu1 %v740_v11 }
 0x1aa   :  { %v4576_v24 = vpop.f32.mrb[5].mxu0 }
 0x1ab   :  { %v4577_v13 = vadd.f32 %v4576_v24, %v4575_v12  ;;  %v4578_v14 = vpop.f32.mrb[6].mxu0 }
 0x1ac   :  { %v4579_v15 = vpop.f32.mrb[7].mxu0 }
 0x1ad   :  { %v4580_v16 = vadd.f32 %v4579_v15, %v4578_v14 }
 0x1af   :  { %v741_v25 = vpack.c.bf16 %v4580_v16, %v4577_v13 }
 0x1b1   :  { %v4581_v17 = vpop.f32.mrb[8].mxu0  ;;  %5048 = vmatmul.mubr.bf16.vlgmr.msra.gmra.mrb[0].mxu1 %v741_v25 }
 0x1b2   :  { %v4582_v18 = vpop.f32.mrb[9].mxu0 }
 0x1b3   :  { %v4583_v19 = vadd.f32 %v4582_v18, %v4581_v17  ;;  %v4584_v20 = vpop.f32.mrb[10].mxu0 }
 0x1b4   :  { %v4585_v26 = vpop.f32.mrb[11].mxu0 }
 0x1b5   :  { %v4586_v21 = vadd.f32 %v4585_v26, %v4584_v20 }
 0x1b7   :  { %v742_v22 = vpack.c.bf16 %v4586_v21, %v4583_v19 }
 0x1b9   :  { %v4587_v27 = vpop.f32.mrb[12].mxu0  ;;  %5051 = vmatprep.mubr.bf16.mxu1 %v742_v22 }
 0x1ba   :  { %v4588_v28 = vpop.f32.mrb[13].mxu0 }
 0x1bb   :  { %v4589_v29 = vadd.f32 %v4588_v28, %v4587_v27  ;;  %v4590_v30 = vpop.f32.mrb[14].mxu0 }
 0x1bc   :  { %v4591_v31 = vpop.f32.mrb[15].mxu0 }
 0x1bd   :  { %v4592_v32 = vadd.f32 %v4591_v31, %v4590_v30 }
 0x1bf   :  { %v743_v33 = vpack.c.bf16 %v4592_v32, %v4589_v29 }
 0x1c1   :  { %v4593_v34 = vpop.f32.mrb[16].mxu0  ;;  %5052 = vmatmul.mubr.bf16.gmra.mrb[4].mxu1 %v743_v33 }
 0x1c2   :  { %v4594_v35 = vpop.f32.mrb[17].mxu0 }
 0x1c3   :  { %v4595_v36 = vadd.f32 %v4594_v35, %v4593_v34  ;;  %v4596_v37 = vpop.f32.mrb[18].mxu0 }
 0x1c4   :  { %v4597_v38 = vpop.f32.mrb[19].mxu0 }
 0x1c5   :  { %v4598_v39 = vadd.f32 %v4597_v38, %v4596_v37 }
 0x1c7   :  { %v744_v40 = vpack.c.bf16 %v4598_v39, %v4595_v36 }
 0x1c9   :  { %v4599_v41 = vpop.f32.mrb[20].mxu0  ;;  %5055 = vmatprep.mubr.bf16.mxu1 %v744_v40 }
 0x1ca   :  { %v4600_v42 = vpop.f32.mrb[21].mxu0 }
 0x1cb   :  { %v4601_v43 = vadd.f32 %v4600_v42, %v4599_v41  ;;  %v4602_v44 = vpop.f32.mrb[22].mxu0 }
 0x1cc   :  { %v4603_v45 = vpop.f32.mrb[23].mxu0 }
 0x1cd   :  { %v4604_v46 = vadd.f32 %v4603_v45, %v4602_v44 }
 0x1cf   :  { %v745_v59 = vpack.c.bf16 %v4604_v46, %v4601_v43 }
 0x1d1   :  { %v4605_v63 = vpop.f32.mrb[24].mxu0  ;;  %5056 = vmatmul.mubr.bf16.gmra.mrb[8].mxu1 %v745_v59 }
 0x1d2   :  { %v4606_v2 = vpop.f32.mrb[25].mxu0 }
 0x1d3   :  { %v4607_v23 = vadd.f32 %v4606_v2, %v4605_v63  ;;  %v4608_v47 = vpop.f32.mrb[26].mxu0 }
 0x1d4   :  { %v4609_v48 = vpop.f32.mrb[27].mxu0 }
 0x1d5   :  { %v4610_v49 = vadd.f32 %v4609_v48, %v4608_v47 }
 0x1d7   :  { %v746_v50 = vpack.c.bf16 %v4610_v49, %v4607_v23 }
 0x1d9   :  { %v4611_v7 = vpop.f32.mrb[28].mxu0  ;;  %5059 = vmatprep.mubr.bf16.mxu1 %v746_v50 }
 0x1da   :  { %v4612_v8 = vpop.f32.mrb[29].mxu0 }
 0x1db   :  { %v4613_v51 = vadd.f32 %v4612_v8, %v4611_v7  ;;  %v4614_v52 = vpop.f32.mrb[30].mxu0 }
 0x1dc   :  { %v4615_v3 = vpop.f32.mrb[31].mxu0 }
 0x1dd   :  { %v4616_v9 = vadd.f32 %v4615_v3, %v4614_v52 }
 0x1df   :  { %v747_v10 = vpack.c.bf16 %v4616_v9, %v4613_v51 }
 0x1e1   :  { %v4617_v53 = vpop.f32.mrb[32].mxu0  ;;  %5060 = vmatmul.mubr.bf16.gmra.mrb[12].mxu1 %v747_v10 }
 0x1e2   :  { %v4618_v54 = vpop.f32.mrb[33].mxu0 }
 0x1e3   :  { %v4619_v11 = vadd.f32 %v4618_v54, %v4617_v53  ;;  %v4620_v12 = vpop.f32.mrb[34].mxu0 }
 0x1e4   :  { %v4621_v24 = vpop.f32.mrb[35].mxu0 }
 0x1e5   :  { %v4622_v13 = vadd.f32 %v4621_v24, %v4620_v12  ;;  %v4404_v24 = vcombine.low %v6250_v55, %v6252_v56  ;;  %v8110_v56 = vld [vmem:[#allocation33_spill] sm:$0xff] }
 0x1e7   :  { %v748_v14 = vpack.c.bf16 %v4622_v13, %v4619_v11  ;;  %5079 = vmatprep.subr.bf16.mxu1 %v4404_v24  ;;  %v4405_v13 = vcombine.low %v6254_v57, %v6256_v58 }
 0x1e8   :  { %5080 = vmatpush3.bf16.msra.mxu1 %v4404_v24  ;;  %v8114_v24 = vld [vmem:[#allocation39_spill] sm:$0xff] }
 0x1e9   :  { %v4623_v15 = vpop.f32.mrb[36].mxu0  ;;  %5063 = vmatprep.mubr.bf16.mxu1 %v748_v14  ;;  %5081 = vmatprep.subr.bf16.mxu1 %v4405_v13 }
 0x1ea   :  { %v4624_v16 = vpop.f32.mrb[37].mxu0 }
 0x1eb   :  { %v4625_v25 = vadd.f32 %v4624_v16, %v4623_v15  ;;  %v4626_v17 = vpop.f32.mrb[38].mxu0 }
 0x1ec   :  { %v4627_v18 = vpop.f32.mrb[39].mxu0  ;;  %5082 = vmatpush3.bf16.msra.mxu1 %v4405_v13 }
 0x1ed   :  { %v4628_v19 = vadd.f32 %v4627_v18, %v4626_v17 }
 0x1ef   :  { %v749_v20 = vpack.c.bf16 %v4628_v19, %v4625_v25  ;;  %v8018_v25 = vsub.s32 0, %v6135_v1 }
 0x1f1   :  { %v4629_v26 = vpop.f32.mrb[40].mxu0  ;;  %5064 = vmatmul.mubr.bf16.gmra.mrb[16].mxu1 %v749_v20  ;;  %v6351_v18 = vrot.slane %v6151_v5, %v8018_v25 }
 0x1f2   :  { %v4630_v21 = vpop.f32.mrb[41].mxu0 }
 0x1f3   :  { %v4631_v22 = vadd.f32 %v4630_v21, %v4629_v26  ;;  %v4632_v27 = vpop.f32.mrb[42].mxu0 }
 0x1f4   :  { %v4633_v28 = vpop.f32.mrb[43].mxu0 }
 0x1f5   :  { %v4634_v29 = vadd.f32 %v4633_v28, %v4632_v27 }
 0x1f7   :  { %v750_v30 = vpack.c.bf16 %v4634_v29, %v4631_v22 }
 0x1f9   :  { %v4635_v31 = vpop.f32.mrb[44].mxu0  ;;  %5067 = vmatprep.mubr.bf16.mxu1 %v750_v30 }
 0x1fa   :  { %v4636_v32 = vpop.f32.mrb[45].mxu0 }
 0x1fb   :  { %v4637_v33 = vadd.f32 %v4636_v32, %v4635_v31  ;;  %v4638_v34 = vpop.f32.mrb[46].mxu0 }
 0x1fc   :  { %v4639_v35 = vpop.f32.mrb[47].mxu0 }
 0x1fd   :  { %v4640_v36 = vadd.f32 %v4639_v35, %v4638_v34 }
 0x1ff   :  { %v751_v37 = vpack.c.bf16 %v4640_v36, %v4637_v33 }
 0x201   :  { %v4641_v38 = vpop.f32.mrb[48].mxu0  ;;  %5068 = vmatmul.mubr.bf16.gmra.mrb[20].mxu1 %v751_v37 }
 0x202   :  { %v4642_v39 = vpop.f32.mrb[49].mxu0 }
 0x203   :  { %v4643_v40 = vadd.f32 %v4642_v39, %v4641_v38  ;;  %v4644_v41 = vpop.f32.mrb[50].mxu0 }
 0x204   :  { %v4645_v42 = vpop.f32.mrb[51].mxu0 }
 0x205   :  { %v4646_v43 = vadd.f32 %v4645_v42, %v4644_v41  ;;  %v8112_v41 = vld [vmem:[#allocation35_spill] sm:$0xff] }
 0x207   :  { %v752_v44 = vpack.c.bf16 %v4646_v43, %v4643_v40  ;;  %v8111_v40 = vld [vmem:[#allocation36_spill] sm:$0xff] }
 0x208   :  { %v4406_v42 = vcombine.low %v8112_v41, %v8111_v40 }
 0x209   :  { %v4647_v45 = vpop.f32.mrb[52].mxu0  ;;  %5071 = vmatprep.mubr.bf16.mxu1 %v752_v44 }
 0x20a   :  { %v4648_v46 = vpop.f32.mrb[53].mxu0  ;;  %5083 = vmatprep.subr.bf16.mxu1 %v4406_v42 }
 0x20b   :  { %v4649_v59 = vadd.f32 %v4648_v46, %v4647_v45  ;;  %v4650_v63 = vpop.f32.mrb[54].mxu0  ;;  %5084 = vmatpush3.bf16.msra.mxu1 %v4406_v42 }
 0x20c   :  { %v4651_v2 = vpop.f32.mrb[55].mxu0 }
 0x20d   :  { %v4652_v23 = vadd.f32 %v4651_v2, %v4650_v63  ;;  %v4407_v2 = vcombine.low %v6262_v61, %v6264_v62 }
 0x20f   :  { %v753_v47 = vpack.c.bf16 %v4652_v23, %v4649_v59  ;;  %5085 = vmatprep.subr.bf16.mxu1 %v4407_v2 }
 0x210   :  { %5086 = vmatpush3.bf16.msra.mxu1 %v4407_v2 }
 0x211   :  { %v4653_v48 = vpop.f32.mrb[56].mxu0  ;;  %5072 = vmatmul.mubr.bf16.gmra.mrb[24].mxu1 %v753_v47 }
 0x212   :  { %v4654_v49 = vpop.f32.mrb[57].mxu0 }
 0x213   :  { %v4655_v50 = vadd.f32 %v4654_v49, %v4653_v48  ;;  %v4656_v7 = vpop.f32.mrb[58].mxu0 }
 0x214   :  { %v4657_v8 = vpop.f32.mrb[59].mxu0 }
 0x215   :  { %v4658_v51 = vadd.f32 %v4657_v8, %v4656_v7 }
 0x217   :  { %v754_v52 = vpack.c.bf16 %v4658_v51, %v4655_v50  ;;  %v8113_v51 = vld [vmem:[#allocation37_spill] sm:$0xff] }
 0x219   :  { %v4659_v3 = vpop.f32.mrb[60].mxu0  ;;  %5075 = vmatprep.mubr.bf16.mxu1 %v754_v52  ;;  %v4408_v52 = vcombine.low %v8113_v51, %v6268_v0  ;;  %v8115_v0 = vld [vmem:[#allocation38_spill] sm:$0xff] }
 0x21a   :  { %v4660_v9 = vpop.f32.mrb[61].mxu0  ;;  %v4409_v13 = vcombine.low %v8115_v0, %v8114_v24 }
 0x21b   :  { %v4661_v10 = vadd.f32 %v4660_v9, %v4659_v3  ;;  %v4662_v53 = vpop.f32.mrb[62].mxu0  ;;  %5087 = vmatprep.subr.bf16.mxu1 %v4408_v52 }
 0x21c   :  { %v4663_v54 = vpop.f32.mrb[63].mxu0  ;;  %5088 = vmatpush3.bf16.msra.mxu1 %v4408_v52 }
 0x21d   :  { %v4664_v11 = vadd.f32 %v4663_v54, %v4662_v53  ;;  %5089 = vmatprep.subr.bf16.mxu1 %v4409_v13 }
 0x21f   :  { %v755_v12 = vpack.c.bf16 %v4664_v11, %v4661_v10 }
 0x220   :  { %5090 = vmatpush3.bf16.msra.mxu1 %v4409_v13 }
 0x221   :  { %5076 = vmatmul.mubr.bf16.gmra.mrb[28].mxu1 %v755_v12 }
 0x284   :  { %v5049_v14 = vpop.f32.mrb[0].mxu1 }
 0x285   :  { %v842_v15 = vpop.f32.mrb[1].mxu1  ;;  %v6359_v57 = vadd.f32 %v5049_v14, %v6351_v18 }
 0x286   :  { %v5050_v16 = vpop.f32.mrb[2].mxu1  ;;  %v6362_v58 = vadd.f32 %v842_v15, %v6351_v18 }
 0x287   :  { %v845_v17 = vpop.f32.mrb[3].mxu1  ;;  %v971_v27 = vmul.f32 0.0, %v6359_v57  ;;  %v6369_v29 = vadd.f32 %v5050_v16, %v6351_v18 }
 0x288   :  { %v6354_v55 = vadd.f32 %v845_v17, %v6351_v18  ;;  %v1039_v28 = vmul.f32 %v6362_v58, %v6362_v58 }
 0x289   :  { %v1041_v34 = vmul.f32 %v971_v27, %v6359_v57  ;;  %v972_v35 = vmul.f32 0.0, %v6369_v29 }
 0x28a   :  { %v970_v19 = vmul.f32 %v8110_v56, %v6354_v55 }
 0x28b   :  { %v1042_v43 = vmul.f32 %v972_v35, %v6369_v29 }
 0x28c   :  { %v1040_v26 = vmul.f32 %v970_v19, %v6354_v55  ;;  %v1001_v32 = vadd.f32 %v970_v19, %v6362_v58 }
 0x28e   :  { %v1071_v33 = vadd.f32 %v1040_v26, %v1039_v28  ;;  %v1002_v38 = vadd.f32 %v1001_v32, %v971_v27  ;;  %v8116_v27 = vld [vmem:[#allocation40_spill] sm:$0xff] }
 0x28f   :  { %v4411_v28 = vcombine.low %v8116_v27, %v6281_v60 }
 0x290   :  { %v1072_v39 = vadd.f32 %v1071_v33, %v1041_v34  ;;  %v1003_v59 = vadd.f32 %v1002_v38, %v972_v35 }
 0x292   :  { %v1073_v63 = vadd.f32 %v1072_v39, %v1042_v43 }
 0x294   :  { %v5053_v20 = vpop.f32.mrb[4].mxu1 }
 0x295   :  { %v858_v21 = vpop.f32.mrb[5].mxu1  ;;  %v6387_v46 = vadd.f32 %v5053_v20, %v6351_v18  ;;  %v4410_v20 = vcombine.low %v6275_v6, %v6277_v4 }
 0x296   :  { %v5054_v22 = vpop.f32.mrb[6].mxu1  ;;  %v6372_v30 = vadd.f32 %v858_v21, %v6351_v18 }
 0x297   :  { %v861_v31 = vpop.f32.mrb[7].mxu1  ;;  %v975_v49 = vmul.f32 0.0, %v6387_v46  ;;  %v6394_v7 = vadd.f32 %v5054_v22, %v6351_v18  ;;  %5091 = vmatprep.subr.bf16.mxu1 %v4410_v20 }
 0x298   :  { %v973_v36 = vmul.f32 0.0, %v6372_v30  ;;  %v6379_v37 = vadd.f32 %v861_v31, %v6351_v18  ;;  %5092 = vmatpush3.bf16.msra.mxu1 %v4410_v20 }
 0x299   :  { %v1045_v53 = vmul.f32 %v975_v49, %v6387_v46  ;;  %v976_v54 = vmul.f32 0.0, %v6394_v7  ;;  %5093 = vmatprep.subr.bf16.mxu1 %v4411_v28 }
 0x29a   :  { %v1043_v44 = vmul.f32 %v973_v36, %v6372_v30  ;;  %v974_v45 = vmul.f32 0.0, %v6379_v37  ;;  %v1004_v23 = vadd.f32 %v1003_v59, %v973_v36 }
 0x29b   :  { %v1046_v16 = vmul.f32 %v976_v54, %v6394_v7 }
 0x29c   :  { %v1074_v47 = vadd.f32 %v1073_v63, %v1043_v44  ;;  %v1044_v48 = vmul.f32 %v974_v45, %v6379_v37  ;;  %v1005_v3 = vadd.f32 %v1004_v23, %v974_v45  ;;  %5094 = vmatpush3.bf16.msra.mxu1 %v4411_v28 }
 0x29e   :  { %v1075_v62 = vadd.f32 %v1074_v47, %v1044_v48  ;;  %v1006_v14 = vadd.f32 %v1005_v3, %v975_v49 }
 0x2a0   :  { %v1076_v15 = vadd.f32 %v1075_v62, %v1045_v53  ;;  %v1007_v26 = vadd.f32 %v1006_v14, %v976_v54 }
 0x2a2   :  { %v1077_v22 = vadd.f32 %v1076_v15, %v1046_v16 }
 0x2a4   :  { %v5057_v50 = vpop.f32.mrb[8].mxu1 }
 0x2a5   :  { %v874_v8 = vpop.f32.mrb[9].mxu1  ;;  %v6415_v21 = vadd.f32 %v5057_v50, %v6351_v18 }
 0x2a6   :  { %v6399_v9 = vadd.f32 %v874_v8, %v6351_v18  ;;  %v5058_v61 = vpop.f32.mrb[10].mxu1 }
 0x2a7   :  { %v877_v10 = vpop.f32.mrb[11].mxu1  ;;  %v979_v34 = vmul.f32 0.0, %v6415_v21  ;;  %v6422_v35 = vadd.f32 %v5058_v61, %v6351_v18 }
 0x2a8   :  { %v977_v11 = vmul.f32 0.0, %v6399_v9  ;;  %v6405_v12 = vadd.f32 %v877_v10, %v6351_v18 }
 0x2a9   :  { %v1049_v40 = vmul.f32 %v979_v34, %v6415_v21  ;;  %v980_v41 = vmul.f32 0.0, %v6422_v35 }
 0x2aa   :  { %v1047_v17 = vmul.f32 %v977_v11, %v6399_v9  ;;  %v978_v19 = vmul.f32 0.0, %v6405_v12  ;;  %v1008_v31 = vadd.f32 %v1007_v26, %v977_v11 }
 0x2ab   :  { %v1050_v63 = vmul.f32 %v980_v41, %v6422_v35 }
 0x2ac   :  { %v1078_v32 = vadd.f32 %v1077_v22, %v1047_v17  ;;  %v1048_v33 = vmul.f32 %v978_v19, %v6405_v12  ;;  %v1009_v4 = vadd.f32 %v1008_v31, %v978_v19 }
 0x2ae   :  { %v1079_v36 = vadd.f32 %v1078_v32, %v1048_v33  ;;  %v1010_v43 = vadd.f32 %v1009_v4, %v979_v34 }
 0x2b0   :  { %v1080_v59 = vadd.f32 %v1079_v36, %v1049_v40  ;;  %v1011_v47 = vadd.f32 %v1010_v43, %v980_v41 }
 0x2b2   :  { %v1081_v49 = vadd.f32 %v1080_v59, %v1050_v63 }
 0x2b4   :  { %v5061_v6 = vpop.f32.mrb[12].mxu1 }
 0x2b5   :  { %v890_v38 = vpop.f32.mrb[13].mxu1  ;;  %v6437_v48 = vadd.f32 %v5061_v6, %v6351_v18 }
 0x2b6   :  { %v6425_v39 = vadd.f32 %v890_v38, %v6351_v18  ;;  %v5062_v60 = vpop.f32.mrb[14].mxu1 }
 0x2b7   :  { %v893_v42 = vpop.f32.mrb[15].mxu1  ;;  %v983_v52 = vmul.f32 0.0, %v6437_v48  ;;  %v6442_v3 = vadd.f32 %v5062_v60, %v6351_v18 }
 0x2b8   :  { %v981_v44 = vmul.f32 0.0, %v6425_v39  ;;  %v6431_v45 = vadd.f32 %v893_v42, %v6351_v18 }
 0x2b9   :  { %v1053_v53 = vmul.f32 %v983_v52, %v6437_v48  ;;  %v984_v54 = vmul.f32 0.0, %v6442_v3 }
 0x2ba   :  { %v1051_v2 = vmul.f32 %v981_v44, %v6425_v39  ;;  %v982_v23 = vmul.f32 0.0, %v6431_v45  ;;  %v1012_v50 = vadd.f32 %v1011_v47, %v981_v44 }
 0x2bb   :  { %v1054_v19 = vmul.f32 %v984_v54, %v6442_v3 }
 0x2bc   :  { %v1082_v8 = vadd.f32 %v1081_v49, %v1051_v2  ;;  %v1052_v51 = vmul.f32 %v982_v23, %v6431_v45  ;;  %v1013_v61 = vadd.f32 %v1012_v50, %v982_v23 }
 0x2be   :  { %v1083_v62 = vadd.f32 %v1082_v8, %v1052_v51  ;;  %v1014_v24 = vadd.f32 %v1013_v61, %v983_v52 }
 0x2c0   :  { %v1084_v14 = vadd.f32 %v1083_v62, %v1053_v53  ;;  %v1015_v20 = vadd.f32 %v1014_v24, %v984_v54 }
 0x2c2   :  { %v1085_v28 = vadd.f32 %v1084_v14, %v1054_v19 }
 0x2c4   :  { %v5065_v10 = vpop.f32.mrb[16].mxu1 }
 0x2c5   :  { %v906_v11 = vpop.f32.mrb[17].mxu1  ;;  %v6457_v27 = vadd.f32 %v5065_v10, %v6351_v18 }
 0x2c6   :  { %v6447_v0 = vadd.f32 %v906_v11, %v6351_v18  ;;  %v5066_v13 = vpop.f32.mrb[18].mxu1 }
 0x2c7   :  { %v909_v15 = vpop.f32.mrb[19].mxu1  ;;  %v987_v34 = vmul.f32 0.0, %v6457_v27  ;;  %v6462_v4 = vadd.f32 %v5066_v13, %v6351_v18 }
 0x2c8   :  { %v985_v16 = vmul.f32 0.0, %v6447_v0  ;;  %v6451_v17 = vadd.f32 %v909_v15, %v6351_v18 }
 0x2c9   :  { %v1057_v38 = vmul.f32 %v987_v34, %v6457_v27  ;;  %v988_v60 = vmul.f32 0.0, %v6462_v4 }
 0x2ca   :  { %v1055_v26 = vmul.f32 %v985_v16, %v6447_v0  ;;  %v986_v22 = vmul.f32 0.0, %v6451_v17  ;;  %v1016_v31 = vadd.f32 %v1015_v20, %v985_v16 }
 0x2cb   :  { %v1058_v2 = vmul.f32 %v988_v60, %v6462_v4 }
 0x2cc   :  { %v1086_v32 = vadd.f32 %v1085_v28, %v1055_v26  ;;  %v1056_v33 = vmul.f32 %v986_v22, %v6451_v17  ;;  %v1017_v6 = vadd.f32 %v1016_v31, %v986_v22 }
 0x2ce   :  { %v1087_v36 = vadd.f32 %v1086_v32, %v1056_v33  ;;  %v1018_v40 = vadd.f32 %v1017_v6, %v987_v34 }
 0x2d0   :  { %v1088_v42 = vadd.f32 %v1087_v36, %v1057_v38  ;;  %v1019_v49 = vadd.f32 %v1018_v40, %v988_v60 }
 0x2d2   :  { %v1089_v51 = vadd.f32 %v1088_v42, %v1058_v2 }
 0x2d4   :  { %v5069_v41 = vpop.f32.mrb[20].mxu1 }
 0x2d5   :  { %v922_v43 = vpop.f32.mrb[21].mxu1  ;;  %v6467_v44 = vadd.f32 %v5069_v41, %v6351_v18 }
 0x2d6   :  { %v6470_v59 = vadd.f32 %v922_v43, %v6351_v18  ;;  %v5070_v63 = vpop.f32.mrb[22].mxu1 }
 0x2d7   :  { %v925_v23 = vpop.f32.mrb[23].mxu1  ;;  %v6475_v50 = vadd.f32 %v5070_v63, %v6351_v18  ;;  %v991_v52 = vmul.f32 0.0, %v6467_v44 }
 0x2d8   :  { %v989_v47 = vmul.f32 0.0, %v6470_v59  ;;  %v6478_v8 = vadd.f32 %v925_v23, %v6351_v18 }
 0x2d9   :  { %v992_v54 = vmul.f32 0.0, %v6475_v50  ;;  %v1061_v13 = vmul.f32 %v991_v52, %v6467_v44 }
 0x2da   :  { %v1020_v61 = vadd.f32 %v1019_v49, %v989_v47  ;;  %v1059_v62 = vmul.f32 %v989_v47, %v6470_v59  ;;  %v990_v10 = vmul.f32 0.0, %v6478_v8 }
 0x2db   :  { %v1062_v16 = vmul.f32 %v992_v54, %v6475_v50 }
 0x2dc   :  { %v1090_v53 = vadd.f32 %v1089_v51, %v1059_v62  ;;  %v1021_v11 = vadd.f32 %v1020_v61, %v990_v10  ;;  %v1060_v24 = vmul.f32 %v990_v10, %v6478_v8 }
 0x2de   :  { %v1022_v14 = vadd.f32 %v1021_v11, %v991_v52  ;;  %v1091_v15 = vadd.f32 %v1090_v53, %v1060_v24 }
 0x2e0   :  { %v1092_v19 = vadd.f32 %v1091_v15, %v1061_v13  ;;  %v1023_v20 = vadd.f32 %v1022_v14, %v992_v54 }
 0x2e2   :  { %v1093_v26 = vadd.f32 %v1092_v19, %v1062_v16 }
 0x2e4   :  { %v5073_v22 = vpop.f32.mrb[24].mxu1 }
 0x2e5   :  { %v938_v28 = vpop.f32.mrb[25].mxu1  ;;  %v6488_v31 = vadd.f32 %v5073_v22, %v6351_v18 }
 0x2e6   :  { %v6491_v32 = vadd.f32 %v938_v28, %v6351_v18  ;;  %v5074_v33 = vpop.f32.mrb[26].mxu1 }
 0x2e7   :  { %v941_v34 = vpop.f32.mrb[27].mxu1  ;;  %v6495_v36 = vadd.f32 %v5074_v33, %v6351_v18  ;;  %v995_v60 = vmul.f32 0.0, %v6488_v31 }
 0x2e8   :  { %v993_v6 = vmul.f32 0.0, %v6491_v32  ;;  %v6498_v38 = vadd.f32 %v941_v34, %v6351_v18 }
 0x2e9   :  { %v996_v63 = vmul.f32 0.0, %v6495_v36  ;;  %v1065_v47 = vmul.f32 %v995_v60, %v6488_v31 }
 0x2ea   :  { %v1024_v40 = vadd.f32 %v1023_v20, %v993_v6  ;;  %v1063_v41 = vmul.f32 %v993_v6, %v6491_v32  ;;  %v994_v42 = vmul.f32 0.0, %v6498_v38 }
 0x2eb   :  { %v1066_v52 = vmul.f32 %v996_v63, %v6495_v36 }
 0x2ec   :  { %v1094_v43 = vadd.f32 %v1093_v26, %v1063_v41  ;;  %v1025_v2 = vadd.f32 %v1024_v40, %v994_v42  ;;  %v1064_v23 = vmul.f32 %v994_v42, %v6498_v38 }
 0x2ee   :  { %v1026_v49 = vadd.f32 %v1025_v2, %v995_v60  ;;  %v1095_v51 = vadd.f32 %v1094_v43, %v1064_v23 }
 0x2f0   :  { %v1096_v61 = vadd.f32 %v1095_v51, %v1065_v47  ;;  %v1027_v62 = vadd.f32 %v1026_v49, %v996_v63 }
 0x2f2   :  { %v1097_v10 = vadd.f32 %v1096_v61, %v1066_v52 }
 0x2f4   :  { %v5077_v53 = vpop.f32.mrb[28].mxu1 }
 0x2f5   :  { %v954_v54 = vpop.f32.mrb[29].mxu1  ;;  %v6508_v11 = vadd.f32 %v5077_v53, %v6351_v18 }
 0x2f6   :  { %v6511_v24 = vadd.f32 %v954_v54, %v6351_v18  ;;  %v5078_v13 = vpop.f32.mrb[30].mxu1 }
 0x2f7   :  { %v957_v14 = vpop.f32.mrb[31].mxu1  ;;  %v6515_v16 = vadd.f32 %v5078_v13, %v6351_v18  ;;  %v999_v20 = vmul.f32 0.0, %v6508_v11 }
 0x2f8   :  { %v997_v15 = vmul.f32 0.0, %v6511_v24  ;;  %v6518_v19 = vadd.f32 %v957_v14, %v6351_v18 }
 0x2f9   :  { %v1000_v34 = vmul.f32 0.0, %v6515_v16  ;;  %v1069_v40 = vmul.f32 %v999_v20, %v6508_v11 }
 0x2fa   :  { %v1028_v26 = vadd.f32 %v1027_v62, %v997_v15  ;;  %v1067_v22 = vmul.f32 %v997_v15, %v6511_v24  ;;  %v998_v28 = vmul.f32 0.0, %v6518_v19 }
 0x2fb   :  { %v1070_v18 = vmul.f32 %v1000_v34, %v6515_v16 }
 0x2fc   :  { %v1098_v33 = vadd.f32 %v1097_v10, %v1067_v22  ;;  %v1029_v6 = vadd.f32 %v1028_v26, %v998_v28  ;;  %v1068_v60 = vmul.f32 %v998_v28, %v6518_v19 }
 0x2fe   :  { %v1030_v41 = vadd.f32 %v1029_v6, %v999_v20  ;;  %v1099_v42 = vadd.f32 %v1098_v33, %v1068_v60 }
 0x300   :  { %v1031_v43 = vadd.f32 %v1030_v41, %v1000_v34  ;;  %v1100_v63 = vadd.f32 %v1099_v42, %v1069_v40 }
 0x302   :  { %v1032_v2 = vrot.slane %v1031_v43, 4  ;;  %v1101_v23 = vadd.f32 %v1100_v63, %v1070_v18 }
 0x304   :  { %v1033_v47 = vadd.f32 %v1032_v2, %v1031_v43  ;;  %v1102_v49 = vrot.slane %v1101_v23, 4 }
 0x306   :  { %v1034_v51 = vrot.slane %v1033_v47, 2  ;;  %v1103_v52 = vadd.f32 %v1102_v49, %v1101_v23 }
 0x308   :  { %v1035_v61 = vadd.f32 %v1034_v51, %v1033_v47  ;;  %v1104_v62 = vrot.slane %v1103_v52, 2 }
 0x30a   :  { %v1036_v10 = vrot.slane %v1035_v61, 1  ;;  %v1105_v53 = vadd.f32 %v1104_v62, %v1103_v52 }
 0x30c   :  { %v1037_v54 = vadd.f32 %v1036_v10, %v1035_v61  ;;  %v1106_v13 = vrot.slane %v1105_v53, 1 }
 0x30e   :  { %v6527_v14 = vmul.f32 0.083333336, %v1037_v54  ;;  %v1107_v15 = vadd.f32 %v1106_v13, %v1105_v53 }
 0x310   :  { %v1108_v20 = vmul.f32 0.083333336, %v1107_v15  ;;  %v1109_v26 = vmul.f32 %v6527_v14, %v6527_v14  ;;  %v1141_v22 = vsub.f32 %v6518_v19, %v6527_v14  ;;  %v1132_v6 = vsub.f32 %v6470_v59, %v6527_v14 }
 0x311   :  { %v1133_v60 = vsub.f32 %v6478_v8, %v6527_v14  ;;  %v1134_v40 = vsub.f32 %v6467_v44, %v6527_v14  ;;  %v1135_v41 = vsub.f32 %v6475_v50, %v6527_v14  ;;  %v1136_v42 = vsub.f32 %v6491_v32, %v6527_v14 }
 0x312   :  { %v1110_v28 = vsub.f32 %v1108_v20, %v1109_v26  ;;  %v1137_v19 = vsub.f32 %v6498_v38, %v6527_v14  ;;  %v1138_v18 = vsub.f32 %v6488_v31, %v6527_v14  ;;  %v1139_v59 = vsub.f32 %v6495_v36, %v6527_v14 }
 0x313   :  { %v1140_v8 = vsub.f32 %v6511_v24, %v6527_v14  ;;  %v1180_v44 = vsub.s32 1, %v6135_v1  ;;  %v1216_v50 = vsub.s32 2, %v6135_v1  ;;  %v1142_v32 = vsub.f32 %v6508_v11, %v6527_v14 }
 0x314   :  { %v1111_v33 = vmax.f32 %v1110_v28, 0.0  ;;  %v1143_v38 = vsub.f32 %v6515_v16, %v6527_v14  ;;  %v1112_v36 = vsub.f32 %v6362_v58, %v6527_v14  ;;  %v1113_v24 = vsub.f32 %v6354_v55, %v6527_v14 }
 0x315   :  { %v6558_v43 = vrot.slane %v6151_v5, %v1180_v44  ;;  %v6561_v31 = vrot.slane %v6151_v5, %v1216_v50  ;;  %v1114_v63 = vsub.f32 %v6359_v57, %v6527_v14  ;;  %v1115_v11 = vsub.f32 %v6369_v29, %v6527_v14 }
 0x316   :  { %v1144_v34 = vadd.f32 1e-05, %v1111_v33  ;;  %v1116_v16 = vsub.f32 %v6372_v30, %v6527_v14  ;;  %v1117_v2 = vsub.f32 %v6379_v37, %v6527_v14  ;;  %v1118_v23 = vsub.f32 %v6387_v46, %v6527_v14 }
 0x317   :  { %v1119_v58 = vsub.f32 %v6394_v7, %v6527_v14  ;;  %v1120_v55 = vsub.f32 %v6399_v9, %v6527_v14  ;;  %v1121_v57 = vsub.f32 %v6405_v12, %v6527_v14  ;;  %v1122_v29 = vsub.f32 %v6415_v21, %v6527_v14 }
 0x318   :  { %5395 = vrsqrt.f32 %v1144_v34  ;;  %v1123_v30 = vsub.f32 %v6422_v35, %v6527_v14  ;;  %v1124_v37 = vsub.f32 %v6425_v39, %v6527_v14  ;;  %v1125_v46 = vsub.f32 %v6431_v45, %v6527_v14 }
 0x319   :  { %v1126_v7 = vsub.f32 %v6437_v48, %v6527_v14  ;;  %v1127_v9 = vsub.f32 %v6442_v3, %v6527_v14  ;;  %v1128_v12 = vsub.f32 %v6447_v0, %v6527_v14  ;;  %v1129_v21 = vsub.f32 %v6451_v17, %v6527_v14 }
 0x31a   :  { %v1130_v35 = vsub.f32 %v6457_v27, %v6527_v14  ;;  %v1131_v39 = vsub.f32 %v6462_v4, %v6527_v14 }
 0x322   :  { %v5396_v47 = vpop.eup %5395 }
 0x323   :  { %v6603_v45 = vmul.f32 %v5396_v47, %v1141_v22  ;;  %v1146_v49 = vmul.f32 %v5396_v47, %v1112_v36  ;;  %v1147_v48 = vmul.f32 %v5396_v47, %v1113_v24  ;;  %v1148_v51 = vmul.f32 %v5396_v47, %v1114_v63 }
 0x324   :  { %v1149_v52 = vmul.f32 %v5396_v47, %v1115_v11  ;;  %v1150_v3 = vmul.f32 %v5396_v47, %v1116_v16  ;;  %v1151_v61 = vmul.f32 %v5396_v47, %v1117_v2  ;;  %v1152_v62 = vmul.f32 %v5396_v47, %v1118_v23 }
 0x325   :  { %v1153_v10 = vmul.f32 %v5396_v47, %v1119_v58  ;;  %v1154_v0 = vmul.f32 %v5396_v47, %v1120_v55  ;;  %v1155_v53 = vmul.f32 %v5396_v47, %v1121_v57  ;;  %v1156_v54 = vmul.f32 %v5396_v47, %v1122_v29 }
 0x326   :  { %v1157_v17 = vmul.f32 %v5396_v47, %v1123_v30  ;;  %v1158_v13 = vmul.f32 %v5396_v47, %v1124_v37  ;;  %v1159_v15 = vmul.f32 %v5396_v47, %v1125_v46  ;;  %v1160_v27 = vmul.f32 %v5396_v47, %v1126_v7 }
 0x327   :  { %v1161_v20 = vmul.f32 %v5396_v47, %v1127_v9  ;;  %v6605_v26 = vmul.f32 %v5396_v47, %v1128_v12  ;;  %v6607_v4 = vmul.f32 %v5396_v47, %v1129_v21  ;;  %v6609_v14 = vmul.f32 %v5396_v47, %v1130_v35 }
 0x328   :  { %v6611_v22 = vmul.f32 %v5396_v47, %v1131_v39  ;;  %v6613_v28 = vmul.f32 %v5396_v47, %v1132_v6  ;;  %v6615_v33 = vmul.f32 %v5396_v47, %v1133_v60  ;;  %v6617_v34 = vmul.f32 %v5396_v47, %v1134_v40 }
 0x329   :  { %v6619_v44 = vmul.f32 %v5396_v47, %v1135_v41  ;;  %v6621_v50 = vmul.f32 %v5396_v47, %v1136_v42  ;;  %v6623_v36 = vmul.f32 %v5396_v47, %v1137_v19  ;;  %v6625_v24 = vmul.f32 %v5396_v47, %v1138_v18 }
 0x32a   :  { %v6627_v63 = vmul.f32 %v5396_v47, %v1139_v59  ;;  %v6629_v11 = vmul.f32 %v5396_v47, %v1140_v8  ;;  %v6631_v16 = vmul.f32 %v5396_v47, %v1142_v32  ;;  %v6633_v6 = vmul.f32 %v5396_v47, %v1143_v38 }
 0x32b   :  { %v1184_v60 = vmul.f32 %v6558_v43, %v1148_v51  ;;  %v1185_v40 = vmul.f32 %v6558_v43, %v1149_v52  ;;  %v1182_v41 = vmul.f32 %v6558_v43, %v1146_v49  ;;  %v1183_v42 = vmul.f32 %v6558_v43, %v1147_v48 }
 0x32c   :  { %v1186_v19 = vmul.f32 %v6558_v43, %v1150_v3  ;;  %v1187_v18 = vmul.f32 %v6558_v43, %v1151_v61  ;;  %v1188_v59 = vmul.f32 %v6558_v43, %v1152_v62  ;;  %v1189_v8 = vmul.f32 %v6558_v43, %v1153_v10 }
 0x32d   :  { %v1220_v32 = vadd.f32 %v6561_v31, %v1184_v60  ;;  %v1221_v38 = vadd.f32 %v6561_v31, %v1185_v40  ;;  %v1218_v2 = vadd.f32 %v6561_v31, %v1182_v41  ;;  %v1219_v23 = vadd.f32 %v6561_v31, %v1183_v42 }
 0x32e   :  { %v1222_v58 = vadd.f32 %v6561_v31, %v1186_v19  ;;  %v1223_v55 = vadd.f32 %v6561_v31, %v1187_v18  ;;  %v1224_v57 = vadd.f32 %v6561_v31, %v1188_v59  ;;  %v1225_v29 = vadd.f32 %v6561_v31, %v1189_v8 }
 0x32f   :  { %v1252_v30 = vmax.f32 %v1220_v32, 0.0  ;;  %v1253_v37 = vmax.f32 %v1221_v38, 0.0  ;;  %v1250_v46 = vmax.f32 %v1218_v2, 0.0  ;;  %v1251_v7 = vmax.f32 %v1219_v23, 0.0 }
 0x330   :  { %v1254_v9 = vmax.f32 %v1222_v58, 0.0  ;;  %v1255_v47 = vmax.f32 %v1223_v55, 0.0  ;;  %v1256_v12 = vmax.f32 %v1224_v57, 0.0  ;;  %v1257_v21 = vmax.f32 %v1225_v29, 0.0 }
 0x331   :  { %v1282_v35 = vpack.c.bf16 %v1251_v7, %v1250_v46  ;;  %v1283_v39 = vpack.c.bf16 %v1253_v37, %v1252_v30  ;;  %v1190_v49 = vmul.f32 %v6558_v43, %v1154_v0  ;;  %v1191_v48 = vmul.f32 %v6558_v43, %v1155_v53 }
 0x332   :  { %v1284_v51 = vpack.c.bf16 %v1255_v47, %v1254_v9  ;;  %v1285_v52 = vpack.c.bf16 %v1257_v21, %v1256_v12  ;;  %v1192_v3 = vmul.f32 %v6558_v43, %v1156_v54  ;;  %v1193_v61 = vmul.f32 %v6558_v43, %v1157_v17 }
 0x333   :  { %5095 = vmatprep.mubr.bf16.mxu1 %v1282_v35  ;;  %v1226_v62 = vadd.f32 %v6561_v31, %v1190_v49  ;;  %v1227_v10 = vadd.f32 %v6561_v31, %v1191_v48  ;;  %v1194_v60 = vmul.f32 %v6558_v43, %v1158_v13  ;;  %v1195_v40 = vmul.f32 %v6558_v43, %v1159_v15 }
 0x334   :  { %5096 = vmatmul.mubr.bf16.vlgmr.msra.gmra.mrb[32].mxu1 %v1283_v39  ;;  %v1228_v0 = vadd.f32 %v6561_v31, %v1192_v3  ;;  %v1229_v53 = vadd.f32 %v6561_v31, %v1193_v61  ;;  %v1196_v41 = vmul.f32 %v6558_v43, %v1160_v27  ;;  %v1197_v54 = vmul.f32 %v6558_v43, %v1161_v20 }
 0x335   :  { %5099 = vmatprep.mubr.bf16.mxu1 %v1284_v51  ;;  %v1258_v17 = vmax.f32 %v1226_v62, 0.0  ;;  %v1259_v42 = vmax.f32 %v1227_v10, 0.0  ;;  %v1230_v19 = vadd.f32 %v6561_v31, %v1194_v60  ;;  %v1231_v18 = vadd.f32 %v6561_v31, %v1195_v40 }
 0x336   :  { %v1260_v59 = vmax.f32 %v1228_v0, 0.0  ;;  %v1261_v13 = vmax.f32 %v1229_v53, 0.0  ;;  %v1232_v15 = vadd.f32 %v6561_v31, %v1196_v41  ;;  %v1233_v8 = vadd.f32 %v6561_v31, %v1197_v54 }
 0x337   :  { %v1286_v32 = vpack.c.bf16 %v1259_v42, %v1258_v17  ;;  %v1262_v38 = vmax.f32 %v1230_v19, 0.0  ;;  %v1263_v2 = vmax.f32 %v1231_v18, 0.0  ;;  %v1198_v27 = vmul.f32 %v6558_v43, %v6605_v26 }
 0x338   :  { %v1287_v20 = vpack.c.bf16 %v1261_v13, %v1260_v59  ;;  %v1264_v23 = vmax.f32 %v1232_v15, 0.0  ;;  %v1265_v58 = vmax.f32 %v1233_v8, 0.0  ;;  %v1199_v55 = vmul.f32 %v6558_v43, %v6607_v4 }
 0x339   :  { %v1288_v57 = vpack.c.bf16 %v1263_v2, %v1262_v38  ;;  %v1234_v29 = vadd.f32 %v6561_v31, %v1198_v27  ;;  %v1200_v30 = vmul.f32 %v6558_v43, %v6609_v14  ;;  %v1201_v37 = vmul.f32 %v6558_v43, %v6611_v22 }
 0x33a   :  { %v1289_v46 = vpack.c.bf16 %v1265_v58, %v1264_v23  ;;  %v1235_v7 = vadd.f32 %v6561_v31, %v1199_v55  ;;  %v1202_v26 = vmul.f32 %v6558_v43, %v6613_v28  ;;  %v1203_v9 = vmul.f32 %v6558_v43, %v6615_v33 }
 0x33b   :  { %v1266_v47 = vmax.f32 %v1234_v29, 0.0  ;;  %v1236_v4 = vadd.f32 %v6561_v31, %v1200_v30  ;;  %v1237_v12 = vadd.f32 %v6561_v31, %v1201_v37  ;;  %v1204_v14 = vmul.f32 %v6558_v43, %v6617_v34  ;;  %v6725_v29 = vld [vmem:[#allocation11 + $0x14] sm:$0xf]  ;;  %v6727_v30 = vld [vmem:[#allocation11 + $0x18] sm:$0xf] }
 0x33c   :  { %5100 = vmatmul.mubr.bf16.gmra.mrb[36].mxu1 %v1285_v52  ;;  %v1267_v21 = vmax.f32 %v1235_v7, 0.0  ;;  %v1238_v22 = vadd.f32 %v6561_v31, %v1202_v26  ;;  %v1239_v35 = vadd.f32 %v6561_v31, %v1203_v9  ;;  %v1205_v28 = vmul.f32 %v6558_v43, %v6619_v44  ;;  %v6729_v37 = vld [vmem:[#allocation11 + $0x1c] sm:$0xf]  ;;  %v6733_v7 = vld [vmem:[#allocation11 + $0x24] sm:$0xf] }
 0x33d   :  { %5103 = vmatprep.mubr.bf16.mxu1 %v1286_v32  ;;  %v1268_v39 = vmax.f32 %v1236_v4, 0.0  ;;  %v1269_v33 = vmax.f32 %v1237_v12, 0.0  ;;  %v1240_v49 = vadd.f32 %v6561_v31, %v1204_v14  ;;  %v1206_v48 = vmul.f32 %v6558_v43, %v6621_v50  ;;  %v6735_v26 = vld [vmem:[#allocation11 + $0x28] sm:$0xf]  ;;  %v6737_v9 = vld [vmem:[#allocation11 + $0x2c] sm:$0xf] }
 0x33e   :  { %v1290_v51 = vpack.c.bf16 %v1267_v21, %v1266_v47  ;;  %v1270_v3 = vmax.f32 %v1238_v22, 0.0  ;;  %v1271_v34 = vmax.f32 %v1239_v35, 0.0  ;;  %v1241_v52 = vadd.f32 %v6561_v31, %v1205_v28  ;;  %v6739_v47 = vld [vmem:[#allocation11 + $0x30] sm:$0xf]  ;;  %v6741_v4 = vld [vmem:[#allocation11 + $0x34] sm:$0xf] }
 0x33f   :  { %v1291_v61 = vpack.c.bf16 %v1269_v33, %v1268_v39  ;;  %v1272_v62 = vmax.f32 %v1240_v49, 0.0  ;;  %v1207_v10 = vmul.f32 %v6558_v43, %v6623_v36  ;;  %v1242_v44 = vadd.f32 %v6561_v31, %v1206_v48  ;;  %v6743_v12 = vld [vmem:[#allocation11 + $0x38] sm:$0xf]  ;;  %v6745_v14 = vld [vmem:[#allocation11 + $0x3c] sm:$0xf] }
 0x340   :  { %v1292_v60 = vpack.c.bf16 %v1271_v34, %v1270_v3  ;;  %v1273_v40 = vmax.f32 %v1241_v52, 0.0  ;;  %v1208_v0 = vmul.f32 %v6558_v43, %v6625_v24  ;;  %v1209_v50 = vmul.f32 %v6558_v43, %v6627_v63  ;;  %v6747_v21 = vld [vmem:[#allocation13] sm:$0xf]  ;;  %v6749_v22 = vld [vmem:[#allocation13 + $0x4] sm:$0xf] }
 0x341   :  { %v1243_v53 = vadd.f32 %v6561_v31, %v1207_v10  ;;  %v1274_v41 = vmax.f32 %v1242_v44, 0.0  ;;  %v1210_v54 = vmul.f32 %v6558_v43, %v6629_v11  ;;  %v1211_v17 = vmul.f32 %v6558_v43, %v6603_v45  ;;  %v6751_v35 = vld [vmem:[#allocation13 + $0x8] sm:$0xf]  ;;  %v6753_v28 = vld [vmem:[#allocation13 + $0xc] sm:$0xf] }
 0x342   :  { %v1293_v36 = vpack.c.bf16 %v1273_v40, %v1272_v62  ;;  %v1244_v42 = vadd.f32 %v6561_v31, %v1208_v0  ;;  %v1245_v19 = vadd.f32 %v6561_v31, %v1209_v50  ;;  %v1212_v24 = vmul.f32 %v6558_v43, %v6631_v16  ;;  %v6755_v39 = vld [vmem:[#allocation13 + $0x10] sm:$0xf]  ;;  %v6757_v33 = vld [vmem:[#allocation13 + $0x14] sm:$0xf]  ;;  %v6759_v49 = vld [vmem:[#allocation13 + $0x18] sm:$0xf] }
 0x343   :  { %v1275_v18 = vmax.f32 %v1243_v53, 0.0  ;;  %v1246_v63 = vadd.f32 %v6561_v31, %v1210_v54  ;;  %v1247_v59 = vadd.f32 %v6561_v31, %v1211_v17  ;;  %v1213_v13 = vmul.f32 %v6558_v43, %v6633_v6  ;;  %v6715_v43 = vld [vmem:[#allocation11] sm:$0xf]  ;;  %v6717_v6 = vld [vmem:[#allocation11 + $0x4] sm:$0xf] }
 0x344   :  { %5104 = vmatmul.mubr.bf16.gmra.mrb[40].mxu1 %v1287_v20  ;;  %v1276_v11 = vmax.f32 %v1244_v42, 0.0  ;;  %v1277_v15 = vmax.f32 %v1245_v19, 0.0  ;;  %v1248_v45 = vadd.f32 %v6561_v31, %v1212_v24  ;;  %v6719_v20 = vld [vmem:[#allocation11 + $0x8] sm:$0xf]  ;;  %v6761_v48 = vld [vmem:[#allocation13 + $0x1c] sm:$0xf] }
 0x345   :  { %5107 = vmatprep.mubr.bf16.mxu1 %v1288_v57  ;;  %v1294_v8 = vpack.c.bf16 %v1275_v18, %v1274_v41  ;;  %v1278_v32 = vmax.f32 %v1246_v63, 0.0  ;;  %v1279_v38 = vmax.f32 %v1247_v59, 0.0  ;;  %v1249_v2 = vadd.f32 %v6561_v31, %v1213_v13  ;;  %v6721_v31 = vld [vmem:[#allocation11 + $0xc] sm:$0xf]  ;;  %v6723_v57 = vld [vmem:[#allocation11 + $0x10] sm:$0xf] }
 0x346   :  { %v1295_v16 = vpack.c.bf16 %v1277_v15, %v1276_v11  ;;  %v1280_v27 = vmax.f32 %v1248_v45, 0.0  ;;  %v6765_v3 = vld [vmem:[#allocation13 + $0x24] sm:$0xf]  ;;  %v6767_v34 = vld [vmem:[#allocation13 + $0x28] sm:$0xf] }
 0x347   :  { %v1296_v23 = vpack.c.bf16 %v1279_v38, %v1278_v32  ;;  %v1281_v58 = vmax.f32 %v1249_v2, 0.0  ;;  %v6769_v52 = vld [vmem:[#allocation13 + $0x2c] sm:$0xf]  ;;  %v6773_v62 = vld [vmem:[#allocation13 + $0x34] sm:$0xf] }
 0x348   :  { %v6775_v10 = vld [vmem:[#allocation13 + $0x38] sm:$0xf]  ;;  %v6777_v44 = vld [vmem:[#allocation13 + $0x3c] sm:$0xf] }
 0x349   :  { %v1297_v55 = vpack.c.bf16 %v1281_v58, %v1280_v27 }
 0x34c   :  { %5108 = vmatmul.mubr.bf16.gmra.mrb[44].mxu1 %v1289_v46  ;;  %v6731_v46 = vld [vmem:[#allocation11 + $0x20] sm:$0xf] }
 0x34d   :  { %5111 = vmatprep.mubr.bf16.mxu1 %v1290_v51  ;;  %v6763_v51 = vld [vmem:[#allocation13 + $0x20] sm:$0xf] }
 0x354   :  { %5112 = vmatmul.mubr.bf16.gmra.mrb[48].mxu1 %v1291_v61  ;;  %v6771_v61 = vld [vmem:[#allocation13 + $0x30] sm:$0xf] }
 0x355   :  { %5115 = vmatprep.mubr.bf16.mxu1 %v1292_v60  ;;  %1624 = dma.general %s8002_s0, 4096, %s361_s28, %s5913_s4, %s5915_s15, [#allocation23], %s6158_s8, 0   ;;  %v1300_v60 = vsub.s32 3, %v6135_v1 }
 0x357   :  { %v6788_v40 = vrot.slane %v6151_v5, %v1300_v60 }
 0x35c   :  { %5116 = vmatmul.mubr.bf16.gmra.mrb[52].mxu1 %v1293_v36 }
 0x35d   :  { %5119 = vmatprep.mubr.bf16.mxu1 %v1294_v8 }
 0x364   :  { %5120 = vmatmul.mubr.bf16.gmra.mrb[56].mxu1 %v1295_v16 }
 0x365   :  { %5123 = vmatprep.mubr.bf16.mxu1 %v1296_v23 }
 0x36c   :  { %5124 = vmatmul.mubr.bf16.gmra.mrb[60].mxu1 %v1297_v55 }
 0x407   :  { %v5097_v0 = vpop.f32.mrb[32].mxu1 }
 0x408   :  { %v1393_v50 = vadd.f32 %v5097_v0, %v6788_v40  ;;  %v1384_v53 = vpop.f32.mrb[33].mxu1 }
 0x409   :  { %v1385_v41 = vadd.f32 %v1384_v53, %v6788_v40  ;;  %v5098_v54 = vpop.f32.mrb[34].mxu1 }
 0x40a   :  { %v1396_v17 = vadd.f32 %v5098_v54, %v6788_v40  ;;  %v1387_v36 = vpop.f32.mrb[35].mxu1  ;;  %v6794_v19 = vmax.f32 %v1393_v50, 0.0 }
 0x40b   :  { %v1388_v42 = vadd.f32 %v1387_v36, %v6788_v40  ;;  %v6798_v18 = vmax.f32 %v1385_v41, 0.0 }
 0x40c   :  { %v6796_v24 = vmax.f32 %v1396_v17, 0.0 }
 0x40d   :  { %8118 = vst [vmem:[#allocation36_spill] sm:$0xff] %v6798_v18  ;;  %v6800_v63 = vmax.f32 %v1388_v42, 0.0 }
 0x40e   :  { %8117 = vst [vmem:[#allocation33_spill] sm:$0xff] %v6796_v24  ;;  %v6804_v59 = vpack.c.bf16 %v6796_v24, %v6794_v19 }
 0x40f   :  { %8119 = vst [vmem:[#allocation35_spill] sm:$0xff] %v6800_v63  ;;  %v6808_v13 = vpack.c.bf16 %v6800_v63, %v6798_v18  ;;  %v5101_v11 = vpop.f32.mrb[36].mxu1 }
 0x410   :  { %v1409_v15 = vadd.f32 %v5101_v11, %v6788_v40  ;;  %v1400_v45 = vpop.f32.mrb[37].mxu1 }
 0x411   :  { %v1401_v8 = vadd.f32 %v1400_v45, %v6788_v40  ;;  %v5102_v32 = vpop.f32.mrb[38].mxu1 }
 0x412   :  { %v1412_v38 = vadd.f32 %v5102_v32, %v6788_v40  ;;  %v1403_v2 = vpop.f32.mrb[39].mxu1  ;;  %v6814_v27 = vmax.f32 %v1409_v15, 0.0 }
 0x413   :  { %v1404_v16 = vadd.f32 %v1403_v2, %v6788_v40  ;;  %v6818_v58 = vmax.f32 %v1401_v8, 0.0 }
 0x414   :  { %8120 = vst [vmem:[#allocation37_spill] sm:$0xff] %v6814_v27  ;;  %v6816_v23 = vmax.f32 %v1412_v38, 0.0 }
 0x415   :  { %8122 = vst [vmem:[#allocation38_spill] sm:$0xff] %v6818_v58  ;;  %v6820_v55 = vmax.f32 %v1404_v16, 0.0 }
 0x416   :  { %8121 = vst [vmem:[#allocation39_spill] sm:$0xff] %v6816_v23  ;;  %v6824_v60 = vpack.c.bf16 %v6816_v23, %v6814_v27 }
 0x417   :  { %8123 = vst [vmem:[#allocation40_spill] sm:$0xff] %v6820_v55  ;;  %v6828_v0 = vpack.c.bf16 %v6820_v55, %v6818_v58  ;;  %v5105_v50 = vpop.f32.mrb[40].mxu1 }
 0x418   :  { %v1425_v53 = vadd.f32 %v5105_v50, %v6788_v40  ;;  %v1416_v41 = vpop.f32.mrb[41].mxu1 }
 0x419   :  { %v1417_v54 = vadd.f32 %v1416_v41, %v6788_v40  ;;  %v5106_v17 = vpop.f32.mrb[42].mxu1 }
 0x41a   :  { %v1428_v36 = vadd.f32 %v5106_v17, %v6788_v40  ;;  %v1419_v42 = vpop.f32.mrb[43].mxu1  ;;  %v6834_v15 = vmax.f32 %v1425_v53, 0.0 }
 0x41b   :  { %v1420_v11 = vadd.f32 %v1419_v42, %v6788_v40  ;;  %v6838_v8 = vmax.f32 %v1417_v54, 0.0 }
 0x41c   :  { %8124 = vst [vmem:[#allocation41_spill] sm:$0xff] %v6834_v15  ;;  %v6836_v45 = vmax.f32 %v1428_v36, 0.0 }
 0x41d   :  { %8126 = vst [vmem:[#allocation43_spill] sm:$0xff] %v6838_v8  ;;  %v6840_v32 = vmax.f32 %v1420_v11, 0.0 }
 0x41e   :  { %8125 = vst [vmem:[#allocation42_spill] sm:$0xff] %v6836_v45  ;;  %v6844_v38 = vpack.c.bf16 %v6836_v45, %v6834_v15 }
 0x41f   :  { %8127 = vst [vmem:[#allocation44_spill] sm:$0xff] %v6840_v32  ;;  %v6848_v2 = vpack.c.bf16 %v6840_v32, %v6838_v8  ;;  %v5109_v16 = vpop.f32.mrb[44].mxu1 }
 0x420   :  { %v1441_v50 = vadd.f32 %v5109_v16, %v6788_v40  ;;  %v1432_v41 = vpop.f32.mrb[45].mxu1 }
 0x421   :  { %v1433_v53 = vadd.f32 %v1432_v41, %v6788_v40  ;;  %v5110_v17 = vpop.f32.mrb[46].mxu1 }
 0x422   :  { %v1444_v54 = vadd.f32 %v5110_v17, %v6788_v40  ;;  %v1435_v36 = vpop.f32.mrb[47].mxu1  ;;  %v6854_v11 = vmax.f32 %v1441_v50, 0.0 }
 0x423   :  { %v1436_v42 = vadd.f32 %v1435_v36, %v6788_v40  ;;  %v6858_v45 = vmax.f32 %v1433_v53, 0.0 }
 0x424   :  { %8128 = vst [vmem:[#allocation45_spill] sm:$0xff] %v6854_v11  ;;  %v6856_v25 = vmax.f32 %v1444_v54, 0.0 }
 0x425   :  { %8130 = vst [vmem:[#allocation47_spill] sm:$0xff] %v6858_v45  ;;  %v6860_v15 = vmax.f32 %v1436_v42, 0.0 }
 0x426   :  { %8129 = vst [vmem:[#allocation46_spill] sm:$0xff] %v6856_v25  ;;  %v6864_v16 = vpack.c.bf16 %v6856_v25, %v6854_v11 }
 0x427   :  { %8131 = vst [vmem:[#allocation48_spill] sm:$0xff] %v6860_v15  ;;  %v6868_v41 = vpack.c.bf16 %v6860_v15, %v6858_v45  ;;  %v5113_v17 = vpop.f32.mrb[48].mxu1 }
 0x428   :  { %v1457_v32 = vadd.f32 %v5113_v17, %v6788_v40  ;;  %v1448_v36 = vpop.f32.mrb[49].mxu1 }
 0x429   :  { %v1449_v50 = vadd.f32 %v1448_v36, %v6788_v40  ;;  %v5114_v54 = vpop.f32.mrb[50].mxu1 }
 0x42a   :  { %v1460_v53 = vadd.f32 %v5114_v54, %v6788_v40  ;;  %v1451_v55 = vpop.f32.mrb[51].mxu1  ;;  %v6874_v8 = vmax.f32 %v1457_v32, 0.0 }
 0x42b   :  { %v1452_v42 = vadd.f32 %v1451_v55, %v6788_v40  ;;  %v6878_v11 = vmax.f32 %v1449_v50, 0.0 }
 0x42c   :  { %8132 = vst [vmem:[#allocation49_spill] sm:$0xff] %v6874_v8  ;;  %v6876_v25 = vmax.f32 %v1460_v53, 0.0 }
 0x42d   :  { %8134 = vst [vmem:[#allocation51_spill] sm:$0xff] %v6878_v11  ;;  %v6880_v15 = vmax.f32 %v1452_v42, 0.0 }
 0x42e   :  { %8133 = vst [vmem:[#allocation50_spill] sm:$0xff] %v6876_v25  ;;  %v6884_v17 = vpack.c.bf16 %v6876_v25, %v6874_v8 }
 0x42f   :  { %8135 = vst [vmem:[#allocation52_spill] sm:$0xff] %v6880_v15  ;;  %v6888_v36 = vpack.c.bf16 %v6880_v15, %v6878_v11  ;;  %v5117_v54 = vpop.f32.mrb[52].mxu1 }
 0x430   :  { %v1473_v45 = vadd.f32 %v5117_v54, %v6788_v40  ;;  %v1464_v55 = vpop.f32.mrb[53].mxu1 }
 0x431   :  { %v1465_v32 = vadd.f32 %v1464_v55, %v6788_v40  ;;  %v5118_v53 = vpop.f32.mrb[54].mxu1  ;;  %4713 = vmatprep.subr.bf16.mxu0 %v6888_v36 }
 0x432   :  { %v1476_v50 = vadd.f32 %v5118_v53, %v6788_v40  ;;  %v1467_v23 = vpop.f32.mrb[55].mxu1  ;;  %v6894_v58 = vmax.f32 %v1473_v45, 0.0 }
 0x433   :  { %v1468_v42 = vadd.f32 %v1467_v23, %v6788_v40  ;;  %v6898_v8 = vmax.f32 %v1465_v32, 0.0 }
 0x434   :  { %8136 = vst [vmem:[#allocation53_spill] sm:$0xff] %v6894_v58  ;;  %v6896_v25 = vmax.f32 %v1476_v50, 0.0 }
 0x435   :  { %8138 = vst [vmem:[#allocation55_spill] sm:$0xff] %v6898_v8  ;;  %v6900_v11 = vmax.f32 %v1468_v42, 0.0 }
 0x436   :  { %8137 = vst [vmem:[#allocation54_spill] sm:$0xff] %v6896_v25  ;;  %v6904_v54 = vpack.c.bf16 %v6896_v25, %v6894_v58 }
 0x437   :  { %8139 = vst [vmem:[#allocation56_spill] sm:$0xff] %v6900_v11  ;;  %v6908_v55 = vpack.c.bf16 %v6900_v11, %v6898_v8  ;;  %v5121_v53 = vpop.f32.mrb[56].mxu1 }
 0x438   :  { %v1489_v15 = vadd.f32 %v5121_v53, %v6788_v40  ;;  %v1480_v23 = vpop.f32.mrb[57].mxu1 }
 0x439   :  { %v1481_v45 = vadd.f32 %v1480_v23, %v6788_v40  ;;  %v5122_v50 = vpop.f32.mrb[58].mxu1 }
 0x43a   :  { %v1492_v32 = vadd.f32 %v5122_v50, %v6788_v40  ;;  %v1483_v63 = vpop.f32.mrb[59].mxu1  ;;  %v6914_v27 = vmax.f32 %v1489_v15, 0.0 }
 0x43b   :  { %v1484_v42 = vadd.f32 %v1483_v63, %v6788_v40  ;;  %v6918_v58 = vmax.f32 %v1481_v45, 0.0 }
 0x43c   :  { %8140 = vst [vmem:[#allocation57_spill] sm:$0xff] %v6914_v27  ;;  %v6916_v25 = vmax.f32 %v1492_v32, 0.0 }
 0x43d   :  { %v6920_v11 = vmax.f32 %v1484_v42, 0.0 }
 0x43e   :  { %8141 = vst [vmem:[#allocation58_spill] sm:$0xff] %v6916_v25  ;;  %v6924_v53 = vpack.c.bf16 %v6916_v25, %v6914_v27 }
 0x43f   :  { %8142 = vst [vmem:[#allocation59_spill] sm:$0xff] %v6920_v11  ;;  %v6928_v23 = vpack.c.bf16 %v6920_v11, %v6918_v58  ;;  %v5125_v50 = vpop.f32.mrb[60].mxu1 }
 0x440   :  { %v1505_v8 = vadd.f32 %v5125_v50, %v6788_v40  ;;  %v1496_v63 = vpop.f32.mrb[61].mxu1 }
 0x441   :  { %v1497_v15 = vadd.f32 %v1496_v63, %v6788_v40  ;;  %v5126_v32 = vpop.f32.mrb[62].mxu1 }
 0x442   :  { %v1508_v45 = vadd.f32 %v5126_v32, %v6788_v40  ;;  %v1499_v24 = vpop.f32.mrb[63].mxu1  ;;  %v6934_v18 = vmax.f32 %v1505_v8, 0.0 }
 0x443   :  { %v1500_v42 = vadd.f32 %v1499_v24, %v6788_v40  ;;  %v6938_v27 = vmax.f32 %v1497_v15, 0.0 }
 0x444   :  { %8143 = vst [vmem:[#allocation60_spill] sm:$0xff] %v6934_v18  ;;  %v6936_v25 = vmax.f32 %v1508_v45, 0.0 }
 0x445   :  { %v6940_v11 = vmax.f32 %v1500_v42, 0.0 }
 0x446   :  { %8144 = vst [vmem:[#allocation61_spill] sm:$0xff] %v6936_v25  ;;  %v6944_v50 = vpack.c.bf16 %v6936_v25, %v6934_v18 }
 0x447   :  { %8145 = vst [vmem:[#allocation62_spill] sm:$0xff] %v6940_v11  ;;  %v1557_v63 = vpack.c.bf16 %v6940_v11, %v6938_v27 }
 0x448   :  { %5894 = dma.done.wait [#allocation4], 4096 }
 0x449   :  { %5895 = vsyncadd [#allocation4], 4294963200  ;;  %4714 = vmatpush3.bf16.msra.mxu0 %v6808_v13  ;;  %v1628_v40 = vld [vmem:[#allocation3 + $0x8] sm:$0xff]  ;;  %v4414_v24 = vcombine.low %v6715_v43, %v6717_v6  ;;  %v4415_v8 = vcombine.low %v6719_v20, %v6721_v31  ;;  %v1627_v15 = vld [vmem:[#allocation3] sm:$0xff]  ;;  %v4416_v45 = vcombine.low %v6723_v57, %v6725_v29  ;;  %v4417_v43 = vcombine.low %v6727_v30, %v6729_v37 }
 0x44a   :  { %4715 = vmatprep.subr.bf16.mxu0 %v6884_v17  ;;  %1691 = vmatprep.mubr.bf16.mxu0 %v1628_v40  ;;  %v1630_v32 = vld [vmem:[#allocation3 + $0x18] sm:$0xff]  ;;  %v1629_v6 = vld [vmem:[#allocation3 + $0x10] sm:$0xff]  ;;  %v1632_v20 = vld [vmem:[#allocation3 + $0x28] sm:$0xff]  ;;  %v4420_v40 = vcombine.low %v6739_v47, %v6741_v4  ;;  %vm5918_vm1 = vmmov 0   ;;  %vm2915_vm2 = vcmask 15360   ;;  %vm2964_vm3 = vcmask 1040384  }
 0x44b   :  { %5127 = vmatprep.subr.bf16.mxu1 %v4414_v24  ;;  %v1631_v31 = vld [vmem:[#allocation3 + $0x20] sm:$0xff]  ;;  %v1634_v57 = vld [vmem:[#allocation3 + $0x38] sm:$0xff]  ;;  %v1633_v29 = vld [vmem:[#allocation3 + $0x30] sm:$0xff] }
 0x44c   :  { %5128 = vmatpush3.bf16.msra.mxu1 %v4414_v24  ;;  %v1636_v30 = vld [vmem:[#allocation3 + $0x48] sm:$0xff]  ;;  %v1635_v37 = vld [vmem:[#allocation3 + $0x40] sm:$0xff]  ;;  %v1649_v42 = vld [vmem:[#allocation3 + $0xb0] sm:$0xff] }
 0x44d   :  { %4716 = vmatpush3.bf16.msra.mxu0 %v6804_v59  ;;  %5129 = vmatprep.subr.bf16.mxu1 %v4415_v8  ;;  %v1651_v24 = vld [vmem:[#allocation3 + $0xc0] sm:$0xff]  ;;  %v1657_v47 = vld [vmem:[#allocation3 + $0xf0] sm:$0xff] }
 0x44e   :  { %4717 = vmatprep.subr.bf16.mxu0 %v6908_v55 }
 0x450   :  { %5130 = vmatpush3.bf16.msra.mxu1 %v4415_v8  ;;  %v1655_v8 = vld [vmem:[#allocation3 + $0xe0] sm:$0xff] }
 0x451   :  { %4718 = vmatpush3.bf16.msra.mxu0 %v6828_v0  ;;  %5131 = vmatprep.subr.bf16.mxu1 %v4416_v45 }
 0x452   :  { %4719 = vmatprep.subr.bf16.mxu0 %v6904_v54 }
 0x454   :  { %5132 = vmatpush3.bf16.msra.mxu1 %v4416_v45 }
 0x455   :  { %4720 = vmatpush3.bf16.msra.mxu0 %v6824_v60  ;;  %5133 = vmatprep.subr.bf16.mxu1 %v4417_v43 }
 0x456   :  { %4721 = vmatprep.subr.bf16.mxu0 %v6928_v23 }
 0x458   :  { %5134 = vmatpush3.bf16.msra.mxu1 %v4417_v43 }
 0x459   :  { %4722 = vmatpush3.bf16.msra.mxu0 %v6848_v2 }
 0x45a   :  { %4723 = vmatprep.subr.bf16.mxu0 %v6924_v53 }
 0x45d   :  { %4724 = vmatpush3.bf16.msra.mxu0 %v6844_v38 }
 0x45e   :  { %4725 = vmatprep.subr.bf16.mxu0 %v1557_v63 }
 0x461   :  { %4726 = vmatpush3.bf16.msra.mxu0 %v6868_v41 }
 0x462   :  { %4727 = vmatprep.subr.bf16.mxu0 %v6944_v50 }
 0x465   :  { %4728 = vmatpush3.bf16.msra.mxu0 %v6864_v16 }
 0x466   :  { %4873 = vmatprep.subr.bf16.mxu0 %v6888_v36  ;;  %v1646_v36 = vld [vmem:[#allocation3 + $0x98] sm:$0xff] }
 0x468   :  { %1692 = vmatmul.mubr.bf16.vlgmr.msra.gmra.mrb[64].mxu0 %v1627_v15  ;;  %v1658_v15 = vld [vmem:[#allocation3 + $0xf8] sm:$0xff] }
 0x469   :  { %1699 = vmatprep.mubr.bf16.mxu0 %v1630_v32  ;;  %4874 = vmatpush3.bf16.msra.mxu0 %v6808_v13  ;;  %v1637_v13 = vld [vmem:[#allocation3 + $0x50] sm:$0xff] }
 0x46a   :  { %4875 = vmatprep.subr.bf16.mxu0 %v6884_v17  ;;  %v1644_v17 = vld [vmem:[#allocation3 + $0x88] sm:$0xff] }
 0x46d   :  { %4876 = vmatpush3.bf16.msra.mxu0 %v6804_v59  ;;  %v1638_v59 = vld [vmem:[#allocation3 + $0x58] sm:$0xff] }
 0x46e   :  { %4877 = vmatprep.subr.bf16.mxu0 %v6908_v55  ;;  %v1647_v55 = vld [vmem:[#allocation3 + $0xa0] sm:$0xff] }
 0x470   :  { %1700 = vmatmul.mubr.bf16.gmra.mrb[68].mxu0 %v1629_v6 }
 0x471   :  { %1707 = vmatprep.mubr.bf16.mxu0 %v1632_v20  ;;  %4878 = vmatpush3.bf16.msra.mxu0 %v6828_v0  ;;  %v1639_v0 = vld [vmem:[#allocation3 + $0x60] sm:$0xff] }
 0x472   :  { %4879 = vmatprep.subr.bf16.mxu0 %v6904_v54  ;;  %v1648_v54 = vld [vmem:[#allocation3 + $0xa8] sm:$0xff] }
 0x475   :  { %4880 = vmatpush3.bf16.msra.mxu0 %v6824_v60  ;;  %v1640_v60 = vld [vmem:[#allocation3 + $0x68] sm:$0xff] }
 0x476   :  { %4881 = vmatprep.subr.bf16.mxu0 %v6928_v23  ;;  %v4418_v23 = vcombine.low %v6731_v46, %v6733_v7  ;;  %v4421_v46 = vcombine.low %v6743_v12, %v6745_v14  ;;  %v1654_v7 = vld [vmem:[#allocation3 + $0xd8] sm:$0xff] }
 0x478   :  { %1708 = vmatmul.mubr.bf16.gmra.mrb[72].mxu0 %v1631_v31  ;;  %5135 = vmatprep.subr.bf16.mxu1 %v4418_v23 }
 0x479   :  { %1715 = vmatprep.mubr.bf16.mxu0 %v1634_v57  ;;  %4882 = vmatpush3.bf16.msra.mxu0 %v6848_v2  ;;  %v1641_v2 = vld [vmem:[#allocation3 + $0x70] sm:$0xff] }
 0x47a   :  { %4883 = vmatprep.subr.bf16.mxu0 %v6924_v53  ;;  %v1650_v53 = vld [vmem:[#allocation3 + $0xb8] sm:$0xff]  ;;  %5136 = vmatpush3.bf16.msra.mxu1 %v4418_v23 }
 0x47d   :  { %4884 = vmatpush3.bf16.msra.mxu0 %v6844_v38  ;;  %v1642_v38 = vld [vmem:[#allocation3 + $0x78] sm:$0xff] }
 0x47e   :  { %4885 = vmatprep.subr.bf16.mxu0 %v1557_v63  ;;  %v1652_v63 = vld [vmem:[#allocation3 + $0xc8] sm:$0xff] }
 0x480   :  { %1716 = vmatmul.mubr.bf16.gmra.mrb[76].mxu0 %v1633_v29 }
 0x481   :  { %1723 = vmatprep.mubr.bf16.mxu0 %v1636_v30  ;;  %4886 = vmatpush3.bf16.msra.mxu0 %v6868_v41  ;;  %v1643_v41 = vld [vmem:[#allocation3 + $0x80] sm:$0xff] }
 0x482   :  { %4887 = vmatprep.subr.bf16.mxu0 %v6944_v50  ;;  %v4419_v50 = vcombine.low %v6735_v26, %v6737_v9  ;;  %v1653_v26 = vld [vmem:[#allocation3 + $0xd0] sm:$0xff]  ;;  %v1656_v9 = vld [vmem:[#allocation3 + $0xe8] sm:$0xff] }
 0x484   :  { %5137 = vmatprep.subr.bf16.mxu1 %v4419_v50 }
 0x485   :  { %4888 = vmatpush3.bf16.msra.mxu0 %v6864_v16  ;;  %v1645_v16 = vld [vmem:[#allocation3 + $0x90] sm:$0xff]  ;;  %5138 = vmatpush3.bf16.msra.mxu1 %v4419_v50 }
 0x486   :  { %5139 = vmatprep.subr.bf16.mxu1 %v4420_v40 }
 0x488   :  { %1724 = vmatmul.mubr.bf16.gmra.mrb[80].mxu0 %v1635_v37 }
 0x489   :  { %1731 = vmatprep.mubr.bf16.mxu0 %v1638_v59  ;;  %5140 = vmatpush3.bf16.msra.mxu1 %v4420_v40 }
 0x48a   :  { %5141 = vmatprep.subr.bf16.mxu1 %v4421_v46 }
 0x48d   :  { %5142 = vmatpush3.bf16.msra.mxu1 %v4421_v46 }
 0x490   :  { %1732 = vmatmul.mubr.bf16.gmra.mrb[84].mxu0 %v1637_v13 }
 0x491   :  { %1739 = vmatprep.mubr.bf16.mxu0 %v1640_v60 }
 0x498   :  { %1740 = vmatmul.mubr.bf16.gmra.mrb[88].mxu0 %v1639_v0 }
 0x499   :  { %1747 = vmatprep.mubr.bf16.mxu0 %v1642_v38 }
 0x4a0   :  { %1748 = vmatmul.mubr.bf16.gmra.mrb[92].mxu0 %v1641_v2 }
 0x4a1   :  { %1755 = vmatprep.mubr.bf16.mxu0 %v1644_v17 }
 0x4a8   :  { %1756 = vmatmul.mubr.bf16.gmra.mrb[96].mxu0 %v1643_v41 }
 0x4a9   :  { %1763 = vmatprep.mubr.bf16.mxu0 %v1646_v36 }
 0x4b0   :  { %1764 = vmatmul.mubr.bf16.gmra.mrb[100].mxu0 %v1645_v16 }
 0x4b1   :  { %1771 = vmatprep.mubr.bf16.mxu0 %v1648_v54 }
 0x4b8   :  { %1772 = vmatmul.mubr.bf16.gmra.mrb[104].mxu0 %v1647_v55 }
 0x4b9   :  { %1779 = vmatprep.mubr.bf16.mxu0 %v1650_v53 }
 0x4c0   :  { %1780 = vmatmul.mubr.bf16.gmra.mrb[108].mxu0 %v1649_v42 }
 0x4c1   :  { %1787 = vmatprep.mubr.bf16.mxu0 %v1652_v63 }
 0x4c8   :  { %1788 = vmatmul.mubr.bf16.gmra.mrb[112].mxu0 %v1651_v24 }
 0x4c9   :  { %1795 = vmatprep.mubr.bf16.mxu0 %v1654_v7 }
 0x4d0   :  { %1796 = vmatmul.mubr.bf16.gmra.mrb[116].mxu0 %v1653_v26 }
 0x4d1   :  { %1803 = vmatprep.mubr.bf16.mxu0 %v1656_v9 }
 0x4d8   :  { %1804 = vmatmul.mubr.bf16.gmra.mrb[120].mxu0 %v1655_v8 }
 0x4d9   :  { %1811 = vmatprep.mubr.bf16.mxu0 %v1658_v15 }
 0x4e0   :  { %1812 = vmatmul.mubr.bf16.gmra.mrb[124].mxu0 %v1657_v47 }
 0x53b   :  { %v4729_v4 = vpop.f32.mrb[64].mxu0 }
 0x53c   :  { %v4730_v32 = vpop.f32.mrb[65].mxu0 }
 0x53d   :  { %v4731_v45 = vadd.f32 %v4730_v32, %v4729_v4  ;;  %v4732_v43 = vpop.f32.mrb[66].mxu0 }
 0x53e   :  { %v4733_v12 = vpop.f32.mrb[67].mxu0 }
 0x53f   :  { %v4734_v14 = vadd.f32 %v4733_v12, %v4732_v43 }
 0x541   :  { %v1884_v6 = vpack.c.bf16 %v4734_v14, %v4731_v45 }
 0x543   :  { %v4735_v20 = vpop.f32.mrb[68].mxu0  ;;  %5143 = vmatprep.mubr.bf16.mxu1 %v1884_v6 }
 0x544   :  { %v4736_v31 = vpop.f32.mrb[69].mxu0 }
 0x545   :  { %v4737_v57 = vadd.f32 %v4736_v31, %v4735_v20  ;;  %v4738_v29 = vpop.f32.mrb[70].mxu0 }
 0x546   :  { %v4739_v30 = vpop.f32.mrb[71].mxu0 }
 0x547   :  { %v4740_v37 = vadd.f32 %v4739_v30, %v4738_v29 }
 0x549   :  { %v1885_v59 = vpack.c.bf16 %v4740_v37, %v4737_v57 }
 0x54b   :  { %v4741_v13 = vpop.f32.mrb[72].mxu0  ;;  %5144 = vmatmul.mubr.bf16.vlgmr.msra.gmra.mrb[64].mxu1 %v1885_v59 }
 0x54c   :  { %v4742_v60 = vpop.f32.mrb[73].mxu0 }
 0x54d   :  { %v4743_v0 = vadd.f32 %v4742_v60, %v4741_v13  ;;  %v4744_v38 = vpop.f32.mrb[74].mxu0 }
 0x54e   :  { %v4745_v2 = vpop.f32.mrb[75].mxu0 }
 0x54f   :  { %v4746_v17 = vadd.f32 %v4745_v2, %v4744_v38 }
 0x551   :  { %v1886_v41 = vpack.c.bf16 %v4746_v17, %v4743_v0 }
 0x553   :  { %v4747_v36 = vpop.f32.mrb[76].mxu0  ;;  %5147 = vmatprep.mubr.bf16.mxu1 %v1886_v41 }
 0x554   :  { %v4748_v16 = vpop.f32.mrb[77].mxu0 }
 0x555   :  { %v4749_v54 = vadd.f32 %v4748_v16, %v4747_v36  ;;  %v4750_v55 = vpop.f32.mrb[78].mxu0 }
 0x556   :  { %v4751_v53 = vpop.f32.mrb[79].mxu0 }
 0x557   :  { %v4752_v23 = vadd.f32 %v4751_v53, %v4750_v55 }
 0x559   :  { %v1887_v42 = vpack.c.bf16 %v4752_v23, %v4749_v54 }
 0x55b   :  { %v4753_v50 = vpop.f32.mrb[80].mxu0  ;;  %5148 = vmatmul.mubr.bf16.gmra.mrb[68].mxu1 %v1887_v42 }
 0x55c   :  { %v4754_v63 = vpop.f32.mrb[81].mxu0 }
 0x55d   :  { %v4755_v40 = vadd.f32 %v4754_v63, %v4753_v50  ;;  %v4756_v24 = vpop.f32.mrb[82].mxu0 }
 0x55e   :  { %v4757_v46 = vpop.f32.mrb[83].mxu0 }
 0x55f   :  { %v4758_v7 = vadd.f32 %v4757_v46, %v4756_v24 }
 0x561   :  { %v1888_v26 = vpack.c.bf16 %v4758_v7, %v4755_v40 }
 0x563   :  { %v4759_v9 = vpop.f32.mrb[84].mxu0  ;;  %5151 = vmatprep.mubr.bf16.mxu1 %v1888_v26 }
 0x564   :  { %v4760_v8 = vpop.f32.mrb[85].mxu0 }
 0x565   :  { %v4761_v15 = vadd.f32 %v4760_v8, %v4759_v9  ;;  %v4762_v47 = vpop.f32.mrb[86].mxu0 }
 0x566   :  { %v4763_v4 = vpop.f32.mrb[87].mxu0 }
 0x567   :  { %v4764_v32 = vadd.f32 %v4763_v4, %v4762_v47 }
 0x569   :  { %v1889_v45 = vpack.c.bf16 %v4764_v32, %v4761_v15 }
 0x56b   :  { %v4765_v43 = vpop.f32.mrb[88].mxu0  ;;  %5152 = vmatmul.mubr.bf16.gmra.mrb[72].mxu1 %v1889_v45 }
 0x56c   :  { %v4766_v12 = vpop.f32.mrb[89].mxu0 }
 0x56d   :  { %v4767_v14 = vadd.f32 %v4766_v12, %v4765_v43  ;;  %v4768_v6 = vpop.f32.mrb[90].mxu0 }
 0x56e   :  { %v4769_v20 = vpop.f32.mrb[91].mxu0 }
 0x56f   :  { %v4770_v31 = vadd.f32 %v4769_v20, %v4768_v6 }
 0x571   :  { %v1890_v57 = vpack.c.bf16 %v4770_v31, %v4767_v14 }
 0x573   :  { %v4771_v29 = vpop.f32.mrb[92].mxu0  ;;  %5155 = vmatprep.mubr.bf16.mxu1 %v1890_v57 }
 0x574   :  { %v4772_v30 = vpop.f32.mrb[93].mxu0 }
 0x575   :  { %v4773_v37 = vadd.f32 %v4772_v30, %v4771_v29  ;;  %v4774_v59 = vpop.f32.mrb[94].mxu0 }
 0x576   :  { %v4775_v13 = vpop.f32.mrb[95].mxu0 }
 0x577   :  { %v4776_v60 = vadd.f32 %v4775_v13, %v4774_v59  ;;  %v5916_v59 = vmov 1966171168  }
 0x578   :  { %v2731_v13 = vunpack.c.l.s4 %v5916_v59 }
 0x579   :  { %v1891_v0 = vpack.c.bf16 %v4776_v60, %v4773_v37 }
 0x57b   :  { %v4777_v38 = vpop.f32.mrb[96].mxu0  ;;  %5156 = vmatmul.mubr.bf16.gmra.mrb[76].mxu1 %v1891_v0  ;;  %v2732_v0 = vunpack.c.0.s8 %v2731_v13 }
 0x57c   :  { %v4778_v2 = vpop.f32.mrb[97].mxu0 }
 0x57d   :  { %v4779_v17 = vadd.f32 %v4778_v2, %v4777_v38  ;;  %v4780_v41 = vpop.f32.mrb[98].mxu0  ;;  %v4430_v2 = vld.sshfl [vmem:[%s8004_s2] sm:$0x11 pattern:$0x75316420] }
 0x57e   :  { %v4781_v36 = vpop.f32.mrb[99].mxu0 }
 0x57f   :  { %v4782_v16 = vadd.f32 %v4781_v36, %v4780_v41  ;;  %v2729_v36 = vcombine.high %v4430_v2, %v4430_v2 }
 0x581   :  { %v1892_v54 = vpack.c.bf16 %v4782_v16, %v4779_v17 }
 0x583   :  { %v4783_v55 = vpop.f32.mrb[100].mxu0  ;;  %5159 = vmatprep.mubr.bf16.mxu1 %v1892_v54  ;;  %v2735_v54 = vsub.s32 %v2732_v0, %v6135_v1 }
 0x584   :  { %v4784_v53 = vpop.f32.mrb[101].mxu0 }
 0x585   :  { %v4785_v23 = vadd.f32 %v4784_v53, %v4783_v55  ;;  %v4786_v42 = vpop.f32.mrb[102].mxu0  ;;  %v6998_v53 = vrot.slane %v2729_v36, %v2735_v54 }
 0x586   :  { %v4787_v50 = vpop.f32.mrb[103].mxu0 }
 0x587   :  { %v4788_v63 = vadd.f32 %v4787_v50, %v4786_v42  ;;  %8146 = vst [vmem:[#allocation63_spill] sm:$0xff] %v6998_v53  ;;  %2778 = vmatprep.mubr.bf16.mxu0 %v6998_v53  ;;  %2899 = vxpose.xlu1.c.b16.start.end [1/1] (short) %v6998_v53, 128 }
 0x589   :  { %v1893_v40 = vpack.c.bf16 %v4788_v63, %v4785_v23  ;;  %v7000_v23 = vrot.slane %v4430_v2, %v2735_v54 }
 0x58b   :  { %v4789_v24 = vpop.f32.mrb[104].mxu0  ;;  %5160 = vmatmul.mubr.bf16.gmra.mrb[80].mxu1 %v1893_v40  ;;  %8147 = vst [vmem:[#allocation64_spill] sm:$0xff] %v7000_v23  ;;  %2779 = vmatmul.mubr.bf16.vlgmr.msra.gmra.mrb[128].mxu0 %v7000_v23 }
 0x58c   :  { %v4790_v46 = vpop.f32.mrb[105].mxu0 }
 0x58d   :  { %v4791_v7 = vadd.f32 %v4790_v46, %v4789_v24  ;;  %v4792_v26 = vpop.f32.mrb[106].mxu0 }
 0x58e   :  { %v4793_v9 = vpop.f32.mrb[107].mxu0 }
 0x58f   :  { %v4794_v8 = vadd.f32 %v4793_v9, %v4792_v26 }
 0x591   :  { %v1894_v15 = vpack.c.bf16 %v4794_v8, %v4791_v7 }
 0x593   :  { %v4795_v47 = vpop.f32.mrb[108].mxu0  ;;  %5163 = vmatprep.mubr.bf16.mxu1 %v1894_v15 }
 0x594   :  { %v4796_v4 = vpop.f32.mrb[109].mxu0 }
 0x595   :  { %v4797_v32 = vadd.f32 %v4796_v4, %v4795_v47  ;;  %v4798_v45 = vpop.f32.mrb[110].mxu0 }
 0x596   :  { %v4799_v43 = vpop.f32.mrb[111].mxu0 }
 0x597   :  { %v4800_v12 = vadd.f32 %v4799_v43, %v4798_v45  ;;  %v5917_v43 = vmov 0  }
 0x598   :  { %5397 = vset.pattern.permute.xlu0 %v5917_v43 }
 0x599   :  { %v1895_v14 = vpack.c.bf16 %v4800_v12, %v4797_v32  ;;  %v2704_v12 = vld [vmem:[%s8005_s3] sm:$0x3]  ;;  %s5919_s3 = smov [#allocation19]  }
 0x59a   :  { %2788 = vperm.xlu0 %5397, %v2704_v12   ;;  %s4351_s19 = sshll.u32 %s5919_s3, 4  ;;  %s4352_s19 = int_to_ptr.vmem [resolvable:$true] %s4351_s19 }
 0x59b   :  { %v4801_v6 = vpop.f32.mrb[112].mxu0  ;;  %5164 = vmatmul.mubr.bf16.gmra.mrb[84].mxu1 %v1895_v14  ;;  %v4422_v14 = vcombine.low %v6747_v21, %v6749_v22  ;;  %s5860_s21 = scalar_lea.vmem %s4352_s19, 32  ;;  %p5865_p9 = scmp.lt.s32.totalorder %s4352_s19, %s4352_s19 }
 0x59c   :  { %v4802_v20 = vpop.f32.mrb[113].mxu0  ;;  %p5861_p8 = scmp.ne.s32.totalorder %s4352_s19, %s5860_s21  ;;  %p5866_p10 = scmp.lt.s32.totalorder %s5860_s21, %s5860_s21 }
 0x59d   :  { %v4803_v31 = vadd.f32 %v4802_v20, %v4801_v6  ;;  %v4804_v57 = vpop.f32.mrb[114].mxu0  ;;  %5175 = vmatprep.subr.bf16.mxu1 %v4422_v14 }
 0x59e   :  { %v4805_v29 = vpop.f32.mrb[115].mxu0  ;;  %5176 = vmatpush3.bf16.msra.mxu1 %v4422_v14  ;;  %v4426_v14 = vcombine.low %v6763_v51, %v6765_v3  ;;  %v4427_v51 = vcombine.low %v6767_v34, %v6769_v52  ;;  %v4429_v34 = vcombine.low %v6775_v10, %v6777_v44  ;;  %p5867_p11 = por %p5866_p10, %p5865_p9 }
 0x59f   :  { %v4806_v30 = vadd.f32 %v4805_v29, %v4804_v57  ;;  %v1902_v57 = vsub.s32 4, %v6135_v1 }
 0x5a0   :  { %p5868_p12 = pnand %p5867_p11, %p5861_p8 }
 0x5a1   :  { %v1896_v37 = vpack.c.bf16 %v4806_v30, %v4803_v31  ;;  %v7013_v30 = vrot.slane %v6151_v5, %v1902_v57 }
 0x5a3   :  { %v4807_v60 = vpop.f32.mrb[116].mxu0  ;;  %5167 = vmatprep.mubr.bf16.mxu1 %v1896_v37 }
 0x5a4   :  { %v4808_v38 = vpop.f32.mrb[117].mxu0 }
 0x5a5   :  { %v4809_v17 = vadd.f32 %v4808_v38, %v4807_v60  ;;  %v4810_v41 = vpop.f32.mrb[118].mxu0 }
 0x5a6   :  { %v4811_v16 = vpop.f32.mrb[119].mxu0 }
 0x5a7   :  { %v4812_v55 = vadd.f32 %v4811_v16, %v4810_v41 }
 0x5a9   :  { %v1897_v42 = vpack.c.bf16 %v4812_v55, %v4809_v17  ;;  %v4423_v55 = vcombine.low %v6751_v35, %v6753_v28 }
 0x5ab   :  { %v4813_v50 = vpop.f32.mrb[120].mxu0  ;;  %5168 = vmatmul.mubr.bf16.gmra.mrb[88].mxu1 %v1897_v42  ;;  %5177 = vmatprep.subr.bf16.mxu1 %v4423_v55 }
 0x5ac   :  { %v4814_v63 = vpop.f32.mrb[121].mxu0  ;;  %5178 = vmatpush3.bf16.msra.mxu1 %v4423_v55 }
 0x5ad   :  { %v4815_v40 = vadd.f32 %v4814_v63, %v4813_v50  ;;  %v4816_v24 = vpop.f32.mrb[122].mxu0 }
 0x5ae   :  { %v4817_v46 = vpop.f32.mrb[123].mxu0 }
 0x5af   :  { %v4818_v7 = vadd.f32 %v4817_v46, %v4816_v24 }
 0x5b1   :  { %v1898_v26 = vpack.c.bf16 %v4818_v7, %v4815_v40  ;;  %v4424_v7 = vcombine.low %v6755_v39, %v6757_v33 }
 0x5b3   :  { %v4819_v9 = vpop.f32.mrb[124].mxu0  ;;  %5171 = vmatprep.mubr.bf16.mxu1 %v1898_v26  ;;  %5179 = vmatprep.subr.bf16.mxu1 %v4424_v7 }
 0x5b4   :  { %v4820_v8 = vpop.f32.mrb[125].mxu0  ;;  %5180 = vmatpush3.bf16.msra.mxu1 %v4424_v7  ;;  %v8148_v7 = vmov 0.0  }
 0x5b5   :  { %v4821_v15 = vadd.f32 %v4820_v8, %v4819_v9  ;;  %v4822_v47 = vpop.f32.mrb[126].mxu0 }
 0x5b6   :  { %v4823_v4 = vpop.f32.mrb[127].mxu0 }
 0x5b7   :  { %v4824_v32 = vadd.f32 %v4823_v4, %v4822_v47  ;;  %v4425_v47 = vcombine.low %v6759_v49, %v6761_v48 }
 0x5b8   :  { %2883 = vxpose.xlu0.c.b16.start.end [1/1] (short) %v7000_v23, 128 }
 0x5b9   :  { %v1899_v45 = vpack.c.bf16 %v4824_v32, %v4821_v15  ;;  %5181 = vmatprep.subr.bf16.mxu1 %v4425_v47 }
 0x5ba   :  { %5182 = vmatpush3.bf16.msra.mxu1 %v4425_v47 }
 0x5bb   :  { %5172 = vmatmul.mubr.bf16.gmra.mrb[92].mxu1 %v1899_v45  ;;  %5183 = vmatprep.subr.bf16.mxu1 %v4426_v14 }
 0x5be   :  { %5184 = vmatpush3.bf16.msra.mxu1 %v4426_v14 }
 0x5bf   :  { %5185 = vmatprep.subr.bf16.mxu1 %v4427_v51 }
 0x5c2   :  { %5186 = vmatpush3.bf16.msra.mxu1 %v4427_v51 }
 0x61e   :  { %v5145_v6 = vpop.f32.mrb[64].mxu1 }
 0x61f   :  { %v1986_v20 = vpop.f32.mrb[65].mxu1  ;;  %v7021_v21 = vadd.f32 %v5145_v6, %v7013_v30 }
 0x620   :  { %v5146_v31 = vpop.f32.mrb[66].mxu1  ;;  %v7024_v22 = vadd.f32 %v1986_v20, %v7013_v30 }
 0x621   :  { %v1989_v29 = vpop.f32.mrb[67].mxu1  ;;  %v2115_v2 = vmul.f32 0.0, %v7021_v21  ;;  %v7031_v41 = vadd.f32 %v5146_v31, %v7013_v30 }
 0x622   :  { %v7016_v37 = vadd.f32 %v1989_v29, %v7013_v30  ;;  %v2183_v17 = vmul.f32 %v7024_v22, %v7024_v22 }
 0x623   :  { %v2185_v42 = vmul.f32 %v2115_v2, %v7021_v21  ;;  %v2116_v50 = vmul.f32 0.0, %v7031_v41 }
 0x624   :  { %v2114_v59 = vmul.f32 %v8110_v56, %v7016_v37 }
 0x625   :  { %v2186_v26 = vmul.f32 %v2116_v50, %v7031_v41 }
 0x626   :  { %v2184_v60 = vmul.f32 %v2114_v59, %v7016_v37  ;;  %v2145_v16 = vadd.f32 %v2114_v59, %v7024_v22 }
 0x628   :  { %v2215_v54 = vadd.f32 %v2184_v60, %v2183_v17  ;;  %v2146_v24 = vadd.f32 %v2145_v16, %v2115_v2  ;;  %v4428_v17 = vcombine.low %v6771_v61, %v6773_v62 }
 0x62a   :  { %v2216_v46 = vadd.f32 %v2215_v54, %v2185_v42  ;;  %v2147_v8 = vadd.f32 %v2146_v24, %v2116_v50  ;;  %5187 = vmatprep.subr.bf16.mxu1 %v4428_v17 }
 0x62b   :  { %5188 = vmatpush3.bf16.msra.mxu1 %v4428_v17 }
 0x62c   :  { %v2217_v15 = vadd.f32 %v2216_v46, %v2186_v26  ;;  %5189 = vmatprep.subr.bf16.mxu1 %v4429_v34 }
 0x62e   :  { %v5149_v13 = vpop.f32.mrb[68].mxu1 }
 0x62f   :  { %v2002_v0 = vpop.f32.mrb[69].mxu1  ;;  %v7051_v9 = vadd.f32 %v5149_v13, %v7013_v30  ;;  %5190 = vmatpush3.bf16.msra.mxu1 %v4429_v34 }
 0x630   :  { %v5150_v38 = vpop.f32.mrb[70].mxu1  ;;  %v7034_v56 = vadd.f32 %v2002_v0, %v7013_v30  ;;  %5223 = vmatprep.subr.bf16.mxu1 %v8148_v7 }
 0x631   :  { %v2005_v36 = vpop.f32.mrb[71].mxu1  ;;  %v2119_v33 = vmul.f32 0.0, %v7051_v9  ;;  %v7058_v43 = vadd.f32 %v5150_v38, %v7013_v30 }
 0x632   :  { %v2117_v63 = vmul.f32 0.0, %v7034_v56  ;;  %v7043_v40 = vadd.f32 %v2005_v36, %v7013_v30 }
 0x633   :  { %v2189_v57 = vmul.f32 %v2119_v33, %v7051_v9  ;;  %v2120_v29 = vmul.f32 0.0, %v7058_v43 }
 0x634   :  { %v2187_v35 = vmul.f32 %v2117_v63, %v7034_v56  ;;  %v2118_v28 = vmul.f32 0.0, %v7043_v40  ;;  %v2148_v4 = vadd.f32 %v2147_v8, %v2117_v63 }
 0x635   :  { %v2190_v0 = vmul.f32 %v2120_v29, %v7058_v43 }
 0x636   :  { %v2218_v32 = vadd.f32 %v2217_v15, %v2187_v35  ;;  %v2188_v39 = vmul.f32 %v2118_v28, %v7043_v40  ;;  %v2149_v6 = vadd.f32 %v2148_v4, %v2118_v28 }
 0x638   :  { %v2219_v48 = vadd.f32 %v2218_v32, %v2188_v39  ;;  %v2150_v3 = vadd.f32 %v2149_v6, %v2119_v33 }
 0x63a   :  { %v2220_v60 = vadd.f32 %v2219_v48, %v2189_v57  ;;  %v2151_v36 = vadd.f32 %v2150_v3, %v2120_v29 }
 0x63c   :  { %v2221_v54 = vadd.f32 %v2220_v60, %v2190_v0 }
 0x63e   :  { %v5153_v45 = vpop.f32.mrb[72].mxu1 }
 0x63f   :  { %v2018_v12 = vpop.f32.mrb[73].mxu1  ;;  %v7079_v16 = vadd.f32 %v5153_v45, %v7013_v30 }
 0x640   :  { %v7063_v20 = vadd.f32 %v2018_v12, %v7013_v30  ;;  %v5154_v49 = vpop.f32.mrb[74].mxu1 }
 0x641   :  { %v2021_v31 = vpop.f32.mrb[75].mxu1  ;;  %v2123_v50 = vmul.f32 0.0, %v7079_v16  ;;  %v7086_v63 = vadd.f32 %v5154_v49, %v7013_v30 }
 0x642   :  { %v2121_v59 = vmul.f32 0.0, %v7063_v20  ;;  %v7069_v13 = vadd.f32 %v2021_v31, %v7013_v30 }
 0x643   :  { %v2193_v26 = vmul.f32 %v2123_v50, %v7079_v16  ;;  %v2124_v35 = vmul.f32 0.0, %v7086_v63 }
 0x644   :  { %v2191_v38 = vmul.f32 %v2121_v59, %v7063_v20  ;;  %v2122_v2 = vmul.f32 0.0, %v7069_v13  ;;  %v2152_v52 = vadd.f32 %v2151_v36, %v2121_v59 }
 0x645   :  { %v2194_v32 = vmul.f32 %v2124_v35, %v7086_v63 }
 0x646   :  { %v2222_v55 = vadd.f32 %v2221_v54, %v2191_v38  ;;  %v2192_v42 = vmul.f32 %v2122_v2, %v7069_v13  ;;  %v2153_v61 = vadd.f32 %v2152_v52, %v2122_v2 }
 0x648   :  { %v2223_v24 = vadd.f32 %v2222_v55, %v2192_v42  ;;  %v2154_v8 = vadd.f32 %v2153_v61, %v2123_v50 }
 0x64a   :  { %v2224_v4 = vadd.f32 %v2223_v24, %v2193_v26  ;;  %v2155_v45 = vadd.f32 %v2154_v8, %v2124_v35 }
 0x64c   :  { %v2225_v14 = vadd.f32 %v2224_v4, %v2194_v32 }
 0x64e   :  { %v5157_v62 = vpop.f32.mrb[76].mxu1 }
 0x64f   :  { %v2034_v46 = vpop.f32.mrb[77].mxu1  ;;  %v7102_v12 = vadd.f32 %v5157_v62, %v7013_v30 }
 0x650   :  { %v7090_v10 = vadd.f32 %v2034_v46, %v7013_v30  ;;  %v5158_v44 = vpop.f32.mrb[78].mxu1 }
 0x651   :  { %v2037_v28 = vpop.f32.mrb[79].mxu1  ;;  %v2127_v31 = vmul.f32 0.0, %v7102_v12  ;;  %v7107_v57 = vadd.f32 %v5158_v44, %v7013_v30 }
 0x652   :  { %v2125_v15 = vmul.f32 0.0, %v7090_v10  ;;  %v7096_v47 = vadd.f32 %v2037_v28, %v7013_v30 }
 0x653   :  { %v2197_v3 = vmul.f32 %v2127_v31, %v7102_v12  ;;  %v2128_v60 = vmul.f32 0.0, %v7107_v57 }
 0x654   :  { %v2195_v39 = vmul.f32 %v2125_v15, %v7090_v10  ;;  %v2126_v33 = vmul.f32 0.0, %v7096_v47  ;;  %v2156_v6 = vadd.f32 %v2155_v45, %v2125_v15 }
 0x655   :  { %v2198_v55 = vmul.f32 %v2128_v60, %v7107_v57 }
 0x656   :  { %v2226_v49 = vadd.f32 %v2225_v14, %v2195_v39  ;;  %v2196_v48 = vmul.f32 %v2126_v33, %v7096_v47  ;;  %v2157_v29 = vadd.f32 %v2156_v6, %v2126_v33 }
 0x658   :  { %v2227_v59 = vadd.f32 %v2226_v49, %v2196_v48  ;;  %v2158_v38 = vadd.f32 %v2157_v29, %v2127_v31 }
 0x65a   :  { %v2228_v36 = vadd.f32 %v2227_v59, %v2197_v3  ;;  %v2159_v42 = vadd.f32 %v2158_v38, %v2128_v60 }
 0x65c   :  { %v2229_v24 = vadd.f32 %v2228_v36, %v2198_v55 }
 0x65e   :  { %v5161_v51 = vpop.f32.mrb[80].mxu1 }
 0x65f   :  { %v2050_v0 = vpop.f32.mrb[81].mxu1  ;;  %v7122_v62 = vadd.f32 %v5161_v51, %v7013_v30 }
 0x660   :  { %v7112_v2 = vadd.f32 %v2050_v0, %v7013_v30  ;;  %v5162_v17 = vpop.f32.mrb[82].mxu1 }
 0x661   :  { %v2053_v54 = vpop.f32.mrb[83].mxu1  ;;  %v2131_v35 = vmul.f32 0.0, %v7122_v62  ;;  %v7127_v28 = vadd.f32 %v5162_v17, %v7013_v30 }
 0x662   :  { %v2129_v34 = vmul.f32 0.0, %v7112_v2  ;;  %v7116_v52 = vadd.f32 %v2053_v54, %v7013_v30 }
 0x663   :  { %v2201_v4 = vmul.f32 %v2131_v35, %v7122_v62  ;;  %v2132_v32 = vmul.f32 0.0, %v7127_v28 }
 0x664   :  { %v2199_v50 = vmul.f32 %v2129_v34, %v7112_v2  ;;  %v2130_v61 = vmul.f32 0.0, %v7116_v52  ;;  %v2160_v46 = vadd.f32 %v2159_v42, %v2129_v34 }
 0x665   :  { %v2202_v31 = vmul.f32 %v2132_v32, %v7127_v28 }
 0x666   :  { %v2230_v44 = vadd.f32 %v2229_v24, %v2199_v50  ;;  %v2200_v26 = vmul.f32 %v2130_v61, %v7116_v52  ;;  %v2161_v8 = vadd.f32 %v2160_v46, %v2130_v61 }
 0x668   :  { %v2231_v15 = vadd.f32 %v2230_v44, %v2200_v26  ;;  %v2162_v39 = vadd.f32 %v2161_v8, %v2131_v35 }
 0x66a   :  { %v2232_v45 = vadd.f32 %v2231_v15, %v2201_v4  ;;  %v2163_v51 = vadd.f32 %v2162_v39, %v2132_v32  ;;  %v4889_v32 = vpop.f32.mrb[128].mxu0 }
 0x66c   :  { %v2233_v0 = vadd.f32 %v2232_v45, %v2202_v31 }
 0x66e   :  { %v5165_v33 = vpop.f32.mrb[84].mxu1 }
 0x66f   :  { %v2066_v14 = vpop.f32.mrb[85].mxu1  ;;  %v7132_v6 = vadd.f32 %v5165_v33, %v7013_v30 }
 0x670   :  { %v7135_v49 = vadd.f32 %v2066_v14, %v7013_v30  ;;  %v5166_v48 = vpop.f32.mrb[86].mxu1  ;;  %v4890_v14 = vpop.f32.mrb[129].mxu0 }
 0x671   :  { %v2069_v29 = vpop.f32.mrb[87].mxu1  ;;  %v7140_v3 = vadd.f32 %v5166_v48, %v7013_v30  ;;  %v2135_v38 = vmul.f32 0.0, %v7132_v6  ;;  %v7158_v31 = vadd.f32 %v4890_v14, %v4889_v32 }
 0x672   :  { %v2133_v59 = vmul.f32 0.0, %v7135_v49  ;;  %v7143_v60 = vadd.f32 %v2069_v29, %v7013_v30  ;;  %v4892_v29 = vpop.f32.mrb[130].mxu0 }
 0x673   :  { %v2136_v55 = vmul.f32 0.0, %v7140_v3  ;;  %v2205_v61 = vmul.f32 %v2135_v38, %v7132_v6 }
 0x674   :  { %v2164_v17 = vadd.f32 %v2163_v51, %v2133_v59  ;;  %v2203_v36 = vmul.f32 %v2133_v59, %v7135_v49  ;;  %v2134_v54 = vmul.f32 0.0, %v7143_v60 }
 0x675   :  { %v2206_v44 = vmul.f32 %v2136_v55, %v7140_v3 }
 0x676   :  { %v2234_v34 = vadd.f32 %v2233_v0, %v2203_v36  ;;  %v2165_v42 = vadd.f32 %v2164_v17, %v2134_v54  ;;  %v2204_v50 = vmul.f32 %v2134_v54, %v7143_v60 }
 0x678   :  { %v2166_v24 = vadd.f32 %v2165_v42, %v2135_v38  ;;  %v2235_v46 = vadd.f32 %v2234_v34, %v2204_v50  ;;  %v4893_v38 = vpop.f32.mrb[131].mxu0 }
 0x67a   :  { %v2236_v26 = vadd.f32 %v2235_v46, %v2205_v61  ;;  %v2167_v35 = vadd.f32 %v2166_v24, %v2136_v55 }
 0x67c   :  { %v2237_v8 = vadd.f32 %v2236_v26, %v2206_v44 }
 0x67e   :  { %v5169_v15 = vpop.f32.mrb[88].mxu1 }
 0x67f   :  { %v2082_v4 = vpop.f32.mrb[89].mxu1  ;;  %v7153_v39 = vadd.f32 %v5169_v15, %v7013_v30 }
 0x680   :  { %v7156_v33 = vadd.f32 %v2082_v4, %v7013_v30  ;;  %v5170_v45 = vpop.f32.mrb[90].mxu1 }
 0x681   :  { %v2085_v48 = vpop.f32.mrb[91].mxu1  ;;  %v7162_v51 = vadd.f32 %v5170_v45, %v7013_v30  ;;  %v2139_v17 = vmul.f32 0.0, %v7153_v39 }
 0x682   :  { %v2137_v59 = vmul.f32 0.0, %v7156_v33  ;;  %v7165_v0 = vadd.f32 %v2085_v48, %v7013_v30 }
 0x683   :  { %v2140_v42 = vmul.f32 0.0, %v7162_v51  ;;  %v2209_v24 = vmul.f32 %v2139_v17, %v7153_v39 }
 0x684   :  { %v2168_v36 = vadd.f32 %v2167_v35, %v2137_v59  ;;  %v2207_v54 = vmul.f32 %v2137_v59, %v7156_v33  ;;  %v2138_v34 = vmul.f32 0.0, %v7165_v0 }
 0x685   :  { %v2210_v26 = vmul.f32 %v2140_v42, %v7162_v51 }
 0x686   :  { %v2238_v55 = vadd.f32 %v2237_v8, %v2207_v54  ;;  %v2169_v50 = vadd.f32 %v2168_v36, %v2138_v34  ;;  %v2208_v61 = vmul.f32 %v2138_v34, %v7165_v0 }
 0x688   :  { %v2170_v46 = vadd.f32 %v2169_v50, %v2139_v17  ;;  %v2239_v44 = vadd.f32 %v2238_v55, %v2208_v61 }
 0x68a   :  { %v2240_v15 = vadd.f32 %v2239_v44, %v2209_v24  ;;  %v2171_v4 = vadd.f32 %v2170_v46, %v2140_v42 }
 0x68c   :  { %v2241_v32 = vadd.f32 %v2240_v15, %v2210_v26 }
 0x68e   :  { %v5173_v35 = vpop.f32.mrb[92].mxu1 }
 0x68f   :  { %v2098_v45 = vpop.f32.mrb[93].mxu1  ;;  %v7175_v14 = vadd.f32 %v5173_v35, %v7013_v30 }
 0x690   :  { %v7178_v8 = vadd.f32 %v2098_v45, %v7013_v30  ;;  %v5174_v48 = vpop.f32.mrb[94].mxu1 }
 0x691   :  { %v2101_v29 = vpop.f32.mrb[95].mxu1  ;;  %v7182_v38 = vadd.f32 %v5174_v48, %v7013_v30  ;;  %v2143_v36 = vmul.f32 0.0, %v7175_v14 }
 0x692   :  { %v2141_v59 = vmul.f32 0.0, %v7178_v8  ;;  %v7185_v17 = vadd.f32 %v2101_v29, %v7013_v30 }
 0x693   :  { %v2144_v50 = vmul.f32 0.0, %v7182_v38  ;;  %v2213_v46 = vmul.f32 %v2143_v36, %v7175_v14 }
 0x694   :  { %v2172_v54 = vadd.f32 %v2171_v4, %v2141_v59  ;;  %v2211_v34 = vmul.f32 %v2141_v59, %v7178_v8  ;;  %v2142_v55 = vmul.f32 0.0, %v7185_v17 }
 0x695   :  { %v2214_v30 = vmul.f32 %v2144_v50, %v7182_v38 }
 0x696   :  { %v2242_v42 = vadd.f32 %v2241_v32, %v2211_v34  ;;  %v2173_v61 = vadd.f32 %v2172_v54, %v2142_v55  ;;  %v2212_v24 = vmul.f32 %v2142_v55, %v7185_v17 }
 0x698   :  { %v2174_v44 = vadd.f32 %v2173_v61, %v2143_v36  ;;  %v2243_v26 = vadd.f32 %v2242_v42, %v2212_v24 }
 0x69a   :  { %v2175_v15 = vadd.f32 %v2174_v44, %v2144_v50  ;;  %v2244_v35 = vadd.f32 %v2243_v26, %v2213_v46 }
 0x69c   :  { %v2176_v45 = vrot.slane %v2175_v15, 4  ;;  %v2245_v4 = vadd.f32 %v2244_v35, %v2214_v30 }
 0x69e   :  { %v2177_v48 = vadd.f32 %v2176_v45, %v2175_v15  ;;  %v2246_v29 = vrot.slane %v2245_v4, 4 }
 0x6a0   :  { %v2178_v59 = vrot.slane %v2177_v48, 2  ;;  %v2247_v23 = vadd.f32 %v2246_v29, %v2245_v4 }
 0x6a2   :  { %v2179_v32 = vadd.f32 %v2178_v59, %v2177_v48  ;;  %v2248_v34 = vrot.slane %v2247_v23, 2 }
 0x6a4   :  { %v2180_v25 = vrot.slane %v2179_v32, 1  ;;  %v2249_v54 = vadd.f32 %v2248_v34, %v2247_v23 }
 0x6a6   :  { %v2181_v11 = vadd.f32 %v2180_v25, %v2179_v32  ;;  %v2250_v55 = vrot.slane %v2249_v54, 1 }
 0x6a8   :  { %v7194_v18 = vmul.f32 0.083333336, %v2181_v11  ;;  %v2251_v36 = vadd.f32 %v2250_v55, %v2249_v54 }
 0x6aa   :  { %v2252_v42 = vmul.f32 0.083333336, %v2251_v36  ;;  %v2253_v50 = vmul.f32 %v7194_v18, %v7194_v18  ;;  %v2285_v61 = vsub.f32 %v7185_v17, %v7194_v18  ;;  %v2276_v26 = vsub.f32 %v7135_v49, %v7194_v18 }
 0x6ab   :  { %v2277_v25 = vsub.f32 %v7143_v60, %v7194_v18  ;;  %v2278_v11 = vsub.f32 %v7132_v6, %v7194_v18  ;;  %v2279_v23 = vsub.f32 %v7140_v3, %v7194_v18  ;;  %v2280_v30 = vsub.f32 %v7156_v33, %v7194_v18 }
 0x6ac   :  { %v2254_v24 = vsub.f32 %v2252_v42, %v2253_v50  ;;  %v2281_v17 = vsub.f32 %v7165_v0, %v7194_v18  ;;  %v2282_v15 = vsub.f32 %v7153_v39, %v7194_v18  ;;  %v2283_v49 = vsub.f32 %v7162_v51, %v7194_v18 }
 0x6ad   :  { %v2284_v60 = vsub.f32 %v7178_v8, %v7194_v18  ;;  %v2324_v6 = vsub.s32 5, %v6135_v1  ;;  %v2360_v3 = vsub.s32 6, %v6135_v1  ;;  %v2286_v33 = vsub.f32 %v7175_v14, %v7194_v18 }
 0x6ae   :  { %v2255_v46 = vmax.f32 %v2254_v24, 0.0  ;;  %v2287_v0 = vsub.f32 %v7182_v38, %v7194_v18  ;;  %v2256_v51 = vsub.f32 %v7024_v22, %v7194_v18  ;;  %v2257_v8 = vsub.f32 %v7016_v37, %v7194_v18 }
 0x6af   :  { %v7225_v35 = vrot.slane %v6151_v5, %v2324_v6  ;;  %v7228_v39 = vrot.slane %v6151_v5, %v2360_v3  ;;  %v2258_v45 = vsub.f32 %v7021_v21, %v7194_v18  ;;  %v2259_v14 = vsub.f32 %v7031_v41, %v7194_v18 }
 0x6b0   :  { %v2288_v44 = vadd.f32 1e-05, %v2255_v46  ;;  %v2260_v38 = vsub.f32 %v7034_v56, %v7194_v18  ;;  %v2261_v4 = vsub.f32 %v7043_v40, %v7194_v18  ;;  %v2262_v48 = vsub.f32 %v7051_v9, %v7194_v18 }
 0x6b1   :  { %v2263_v22 = vsub.f32 %v7058_v43, %v7194_v18  ;;  %v2264_v37 = vsub.f32 %v7063_v20, %v7194_v18  ;;  %v2265_v21 = vsub.f32 %v7069_v13, %v7194_v18  ;;  %v2266_v41 = vsub.f32 %v7079_v16, %v7194_v18 }
 0x6b2   :  { %5422 = vrsqrt.f32 %v2288_v44  ;;  %v2267_v56 = vsub.f32 %v7086_v63, %v7194_v18  ;;  %v2268_v40 = vsub.f32 %v7090_v10, %v7194_v18  ;;  %v2269_v9 = vsub.f32 %v7096_v47, %v7194_v18 }
 0x6b3   :  { %v2270_v43 = vsub.f32 %v7102_v12, %v7194_v18  ;;  %v2271_v20 = vsub.f32 %v7107_v57, %v7194_v18  ;;  %v2272_v13 = vsub.f32 %v7112_v2, %v7194_v18  ;;  %v2273_v16 = vsub.f32 %v7116_v52, %v7194_v18 }
 0x6b4   :  { %v2274_v63 = vsub.f32 %v7122_v62, %v7194_v18  ;;  %v2275_v10 = vsub.f32 %v7127_v28, %v7194_v18 }
 0x6bc   :  { %v5423_v29 = vpop.eup %5422 }
 0x6bd   :  { %v7270_v47 = vmul.f32 %v5423_v29, %v2285_v61  ;;  %v2290_v59 = vmul.f32 %v5423_v29, %v2256_v51  ;;  %v2291_v12 = vmul.f32 %v5423_v29, %v2257_v8  ;;  %v2292_v32 = vmul.f32 %v5423_v29, %v2258_v45 }
 0x6be   :  { %v2293_v34 = vmul.f32 %v5423_v29, %v2259_v14  ;;  %v2294_v57 = vmul.f32 %v5423_v29, %v2260_v38  ;;  %v2295_v54 = vmul.f32 %v5423_v29, %v2261_v4  ;;  %v2296_v55 = vmul.f32 %v5423_v29, %v2262_v48 }
 0x6bf   :  { %v2297_v36 = vmul.f32 %v5423_v29, %v2263_v22  ;;  %v2298_v2 = vmul.f32 %v5423_v29, %v2264_v37  ;;  %v2299_v42 = vmul.f32 %v5423_v29, %v2265_v21  ;;  %v2300_v50 = vmul.f32 %v5423_v29, %v2266_v41 }
 0x6c0   :  { %v2301_v52 = vmul.f32 %v5423_v29, %v2267_v56  ;;  %v2302_v24 = vmul.f32 %v5423_v29, %v2268_v40  ;;  %v2303_v46 = vmul.f32 %v5423_v29, %v2269_v9  ;;  %v2304_v62 = vmul.f32 %v5423_v29, %v2270_v43 }
 0x6c1   :  { %v2305_v44 = vmul.f32 %v5423_v29, %v2271_v20  ;;  %v7272_v6 = vmul.f32 %v5423_v29, %v2272_v13  ;;  %v7274_v18 = vmul.f32 %v5423_v29, %v2273_v16  ;;  %v7276_v28 = vmul.f32 %v5423_v29, %v2274_v63 }
 0x6c2   :  { %v7278_v61 = vmul.f32 %v5423_v29, %v2275_v10  ;;  %v7280_v3 = vmul.f32 %v5423_v29, %v2276_v26  ;;  %v7282_v51 = vmul.f32 %v5423_v29, %v2277_v25  ;;  %v7284_v8 = vmul.f32 %v5423_v29, %v2278_v11 }
 0x6c3   :  { %v7286_v45 = vmul.f32 %v5423_v29, %v2279_v23  ;;  %v7288_v14 = vmul.f32 %v5423_v29, %v2280_v30  ;;  %v7290_v38 = vmul.f32 %v5423_v29, %v2281_v17  ;;  %v7292_v4 = vmul.f32 %v5423_v29, %v2282_v15 }
 0x6c4   :  { %v7294_v48 = vmul.f32 %v5423_v29, %v2283_v49  ;;  %v7296_v22 = vmul.f32 %v5423_v29, %v2284_v60  ;;  %v7298_v37 = vmul.f32 %v5423_v29, %v2286_v33  ;;  %v7300_v26 = vmul.f32 %v5423_v29, %v2287_v0 }
 0x6c5   :  { %v2328_v25 = vmul.f32 %v7225_v35, %v2292_v32  ;;  %v2329_v11 = vmul.f32 %v7225_v35, %v2293_v34  ;;  %v2326_v23 = vmul.f32 %v7225_v35, %v2290_v59  ;;  %v2327_v30 = vmul.f32 %v7225_v35, %v2291_v12 }
 0x6c6   :  { %v2330_v17 = vmul.f32 %v7225_v35, %v2294_v57  ;;  %v2331_v15 = vmul.f32 %v7225_v35, %v2295_v54  ;;  %v2332_v49 = vmul.f32 %v7225_v35, %v2296_v55  ;;  %v2333_v60 = vmul.f32 %v7225_v35, %v2297_v36  ;;  %v7318_v57 = vld [vmem:[#allocation14] sm:$0xff]  }
 0x6c7   :  { %v2364_v33 = vadd.f32 %v7228_v39, %v2328_v25  ;;  %v2365_v0 = vadd.f32 %v7228_v39, %v2329_v11  ;;  %v2362_v21 = vadd.f32 %v7228_v39, %v2326_v23  ;;  %v2363_v41 = vadd.f32 %v7228_v39, %v2327_v30 }
 0x6c8   :  { %v2366_v56 = vadd.f32 %v7228_v39, %v2330_v17  ;;  %v2367_v40 = vadd.f32 %v7228_v39, %v2331_v15  ;;  %v2368_v9 = vadd.f32 %v7228_v39, %v2332_v49  ;;  %v2369_v43 = vadd.f32 %v7228_v39, %v2333_v60 }
 0x6c9   :  { %v2396_v20 = vmax.f32 %v2364_v33, 0.0  ;;  %v2397_v29 = vmax.f32 %v2365_v0, 0.0  ;;  %v2394_v13 = vmax.f32 %v2362_v21, 0.0  ;;  %v2395_v16 = vmax.f32 %v2363_v41, 0.0  ;;  %v7333_v0 = vld [vmem:[#allocation14 + $0x8] sm:$0xff]  }
 0x6ca   :  { %v2398_v63 = vmax.f32 %v2366_v56, 0.0  ;;  %v2399_v10 = vmax.f32 %v2367_v40, 0.0  ;;  %v2400_v59 = vmax.f32 %v2368_v9, 0.0  ;;  %v2401_v12 = vmax.f32 %v2369_v43, 0.0 }
 0x6cb   :  { %v2426_v32 = vpack.c.bf16 %v2395_v16, %v2394_v13  ;;  %v2427_v34 = vpack.c.bf16 %v2397_v29, %v2396_v20  ;;  %v2334_v54 = vmul.f32 %v7225_v35, %v2298_v2  ;;  %v2335_v55 = vmul.f32 %v7225_v35, %v2299_v42 }
 0x6cc   :  { %v2428_v36 = vpack.c.bf16 %v2399_v10, %v2398_v63  ;;  %v2429_v25 = vpack.c.bf16 %v2401_v12, %v2400_v59  ;;  %v2336_v11 = vmul.f32 %v7225_v35, %v2300_v50  ;;  %v2337_v23 = vmul.f32 %v7225_v35, %v2301_v52  ;;  %v7345_v10 = vld [vmem:[#allocation14 + $0x10] sm:$0xff]  }
 0x6cd   :  { %5191 = vmatprep.mubr.bf16.mxu1 %v2426_v32  ;;  %v2370_v30 = vadd.f32 %v7228_v39, %v2334_v54  ;;  %v2371_v17 = vadd.f32 %v7228_v39, %v2335_v55  ;;  %v2338_v15 = vmul.f32 %v7225_v35, %v2302_v24  ;;  %v2339_v49 = vmul.f32 %v7225_v35, %v2303_v46 }
 0x6ce   :  { %5192 = vmatmul.mubr.bf16.vlgmr.msra.gmra.mrb[96].mxu1 %v2427_v34  ;;  %v2372_v2 = vadd.f32 %v7228_v39, %v2336_v11  ;;  %v2373_v42 = vadd.f32 %v7228_v39, %v2337_v23  ;;  %v2340_v60 = vmul.f32 %v7225_v35, %v2304_v62  ;;  %v2341_v50 = vmul.f32 %v7225_v35, %v2305_v44 }
 0x6cf   :  { %5195 = vmatprep.mubr.bf16.mxu1 %v2428_v36  ;;  %5224 = vmatpush3.bf16.msra.mxu1 %v7318_v57  ;;  %v2402_v52 = vmax.f32 %v2370_v30, 0.0  ;;  %v2403_v33 = vmax.f32 %v2371_v17, 0.0  ;;  %v2374_v24 = vadd.f32 %v7228_v39, %v2338_v15  ;;  %v2375_v46 = vadd.f32 %v7228_v39, %v2339_v49 }
 0x6d0   :  { %5225 = vmatprep.subr.bf16.mxu1 %v8148_v7  ;;  %v2404_v21 = vmax.f32 %v2372_v2, 0.0  ;;  %v2405_v41 = vmax.f32 %v2373_v42, 0.0  ;;  %v2376_v56 = vadd.f32 %v7228_v39, %v2340_v60  ;;  %v2377_v62 = vadd.f32 %v7228_v39, %v2341_v50 }
 0x6d1   :  { %v2430_v44 = vpack.c.bf16 %v2403_v33, %v2402_v52  ;;  %v2406_v40 = vmax.f32 %v2374_v24, 0.0  ;;  %v2407_v9 = vmax.f32 %v2375_v46, 0.0  ;;  %v2342_v43 = vmul.f32 %v7225_v35, %v7272_v6 }
 0x6d2   :  { %v2431_v20 = vpack.c.bf16 %v2405_v41, %v2404_v21  ;;  %v2408_v29 = vmax.f32 %v2376_v56, 0.0  ;;  %v2409_v13 = vmax.f32 %v2377_v62, 0.0  ;;  %v2343_v16 = vmul.f32 %v7225_v35, %v7274_v18  ;;  %v7384_v41 = vld [vmem:[#allocation14 + $0x20] sm:$0xff]  }
 0x6d3   :  { %5226 = vmatpush3.bf16.msra.mxu1 %v7333_v0  ;;  %v2432_v63 = vpack.c.bf16 %v2407_v9, %v2406_v40  ;;  %v2378_v59 = vadd.f32 %v7228_v39, %v2342_v43  ;;  %v2344_v12 = vmul.f32 %v7225_v35, %v7276_v28  ;;  %v2345_v32 = vmul.f32 %v7225_v35, %v7278_v61 }
 0x6d4   :  { %5227 = vmatprep.subr.bf16.mxu1 %v8148_v7  ;;  %v7353_v6 = vpack.c.bf16 %v2409_v13, %v2408_v29  ;;  %v2379_v34 = vadd.f32 %v7228_v39, %v2343_v16  ;;  %v2346_v18 = vmul.f32 %v7225_v35, %v7280_v3  ;;  %v2347_v54 = vmul.f32 %v7225_v35, %v7282_v51  ;;  %v7369_v51 = vld [vmem:[#allocation14 + $0x18] sm:$0xff]  }
 0x6d5   :  { %v2410_v55 = vmax.f32 %v2378_v59, 0.0  ;;  %v2380_v36 = vadd.f32 %v7228_v39, %v2344_v12  ;;  %v2381_v28 = vadd.f32 %v7228_v39, %v2345_v32  ;;  %v2348_v61 = vmul.f32 %v7225_v35, %v7284_v8  ;;  %v7402_v32 = vld [vmem:[#allocation14 + $0x28] sm:$0xff]  }
 0x6d6   :  { %5196 = vmatmul.mubr.bf16.gmra.mrb[100].mxu1 %v2429_v25  ;;  %v2411_v11 = vmax.f32 %v2379_v34, 0.0  ;;  %v2382_v23 = vadd.f32 %v7228_v39, %v2346_v18  ;;  %v2383_v30 = vadd.f32 %v7228_v39, %v2347_v54  ;;  %v2349_v3 = vmul.f32 %v7225_v35, %v7286_v45 }
 0x6d7   :  { %5199 = vmatprep.mubr.bf16.mxu1 %v2430_v44  ;;  %5228 = vmatpush3.bf16.msra.mxu1 %v7345_v10  ;;  %v2412_v17 = vmax.f32 %v2380_v36, 0.0  ;;  %v2413_v15 = vmax.f32 %v2381_v28, 0.0  ;;  %v2384_v49 = vadd.f32 %v7228_v39, %v2348_v61  ;;  %v2350_v8 = vmul.f32 %v7225_v35, %v7288_v14  ;;  %v7412_v36 = vld [vmem:[#allocation14 + $0x38] sm:$0xff]  }
 0x6d8   :  { %v2434_v25 = vpack.c.bf16 %v2411_v11, %v2410_v55  ;;  %5229 = vmatprep.subr.bf16.mxu1 %v8148_v7  ;;  %v2414_v2 = vmax.f32 %v2382_v23, 0.0  ;;  %v2415_v42 = vmax.f32 %v2383_v30, 0.0  ;;  %v2385_v60 = vadd.f32 %v7228_v39, %v2349_v3 }
 0x6d9   :  { %v2435_v45 = vpack.c.bf16 %v2413_v15, %v2412_v17  ;;  %v2416_v50 = vmax.f32 %v2384_v49, 0.0  ;;  %v2351_v52 = vmul.f32 %v7225_v35, %v7290_v38  ;;  %v2386_v33 = vadd.f32 %v7228_v39, %v2350_v8 }
 0x6da   :  { %v2436_v24 = vpack.c.bf16 %v2415_v42, %v2414_v2  ;;  %v2417_v46 = vmax.f32 %v2385_v60, 0.0  ;;  %v2352_v21 = vmul.f32 %v7225_v35, %v7292_v4  ;;  %v2353_v14 = vmul.f32 %v7225_v35, %v7294_v48 }
 0x6db   :  { %5230 = vmatpush3.bf16.msra.mxu1 %v7369_v51  ;;  %v2387_v56 = vadd.f32 %v7228_v39, %v2351_v52  ;;  %v2418_v62 = vmax.f32 %v2386_v33, 0.0  ;;  %v2354_v38 = vmul.f32 %v7225_v35, %v7296_v22  ;;  %v2355_v44 = vmul.f32 %v7225_v35, %v7270_v47 }
 0x6dc   :  { %5231 = vmatprep.subr.bf16.mxu1 %v8148_v7  ;;  %v2437_v40 = vpack.c.bf16 %v2417_v46, %v2416_v50  ;;  %v2388_v4 = vadd.f32 %v7228_v39, %v2352_v21  ;;  %v2389_v48 = vadd.f32 %v7228_v39, %v2353_v14  ;;  %v2356_v9 = vmul.f32 %v7225_v35, %v7298_v37 }
 0x6dd   :  { %v2419_v43 = vmax.f32 %v2387_v56, 0.0  ;;  %v2390_v29 = vadd.f32 %v7228_v39, %v2354_v38  ;;  %v2391_v13 = vadd.f32 %v7228_v39, %v2355_v44  ;;  %v2357_v22 = vmul.f32 %v7225_v35, %v7300_v26 }
 0x6de   :  { %5200 = vmatmul.mubr.bf16.gmra.mrb[104].mxu1 %v2431_v20  ;;  %v2420_v47 = vmax.f32 %v2388_v4, 0.0  ;;  %v2421_v16 = vmax.f32 %v2389_v48, 0.0  ;;  %v2392_v59 = vadd.f32 %v7228_v39, %v2356_v9  ;;  %v7407_v20 = vld [vmem:[#allocation14 + $0x30] sm:$0xff]  }
 0x6df   :  { %5203 = vmatprep.mubr.bf16.mxu1 %v2432_v63  ;;  %5232 = vmatpush3.bf16.msra.mxu1 %v7384_v41  ;;  %v2438_v12 = vpack.c.bf16 %v2419_v43, %v2418_v62  ;;  %v2422_v37 = vmax.f32 %v2390_v29, 0.0  ;;  %v2423_v34 = vmax.f32 %v2391_v13, 0.0  ;;  %v2393_v18 = vadd.f32 %v7228_v39, %v2357_v22  ;;  %v7416_v39 = vpop.permute.xlu0 %2788 }
 0x6e0   :  { %5233 = vmatprep.subr.bf16.mxu1 %v8148_v7  ;;  %v2439_v54 = vpack.c.bf16 %v2421_v16, %v2420_v47  ;;  %v2424_v55 = vmax.f32 %v2392_v59, 0.0  ;;  %8149 = vst [vmem:[#allocation65_spill] sm:$0xff] %v7416_v39 }
 0x6e1   :  { %v2440_v35 = vpack.c.bf16 %v2423_v34, %v2422_v37  ;;  %v2425_v26 = vmax.f32 %v2393_v18, 0.0 }
 0x6e3   :  { %5234 = vmatpush3.bf16.msra.mxu1 %v7402_v32  ;;  %v2441_v63 = vpack.c.bf16 %v2425_v26, %v2424_v55  ;;  %v7423_v61 = vpop.trf.xlu0 }
 0x6e4   :  { %5235 = vmatprep.subr.bf16.mxu1 %v8148_v7  ;;  %8150 = vst [vmem:[#allocation66_spill] sm:$0xff] %v7423_v61  ;;  %5245 = vmatprep.mubr.msk.bf16.mxu0 %vm2915_vm2, %v7423_v61 }
 0x6e6   :  { %5204 = vmatmul.mubr.bf16.gmra.mrb[108].mxu1 %v7353_v6  ;;  %v2791_v6 = vmul.f32 %v7158_v31, %v7416_v39  ;;  %v8203_v39 = vld [vmem:[#allocation49_spill] sm:$0xff] }
 0x6e7   :  { %5207 = vmatprep.mubr.bf16.mxu1 %v2434_v25  ;;  %5236 = vmatpush3.bf16.msra.mxu1 %v7407_v20  ;;  %v7491_v59 = vpop.trf.xlu0 }
 0x6e8   :  { %5237 = vmatprep.subr.bf16.mxu1 %v8148_v7  ;;  %v2792_v28 = vpack.c.bf16 %v2791_v6, %v2791_v6  ;;  %8179 = vst [vmem:[#allocation95_spill] sm:$0xff] %v7491_v59 }
 0x6eb   :  { %5238 = vmatpush3.bf16.msra.mxu1 %v7412_v36  ;;  %v7493_v37 = vpop.trf.xlu0 }
 0x6ec   :  { %8180 = vst [vmem:[#allocation96_spill] sm:$0xff] %v7493_v37 }
 0x6ee   :  { %5208 = vmatmul.mubr.bf16.gmra.mrb[112].mxu1 %v2435_v45 }
 0x6ef   :  { %5211 = vmatprep.mubr.bf16.mxu1 %v2436_v24  ;;  %v7497_v55 = vpop.trf.xlu0 }
 0x6f0   :  { %8181 = vst [vmem:[#allocation97_spill] sm:$0xff] %v7497_v55 }
 0x6f6   :  { %5212 = vmatmul.mubr.bf16.gmra.mrb[116].mxu1 %v2437_v40 }
 0x6f7   :  { %5215 = vmatprep.mubr.bf16.mxu1 %v2438_v12 }
 0x6fe   :  { %5216 = vmatmul.mubr.bf16.gmra.mrb[120].mxu1 %v2439_v54 }
 0x6ff   :  { %5219 = vmatprep.mubr.bf16.mxu1 %v2440_v35  ;;  %v7505_v35 = vpop.trf.xlu0 }
 0x700   :  { %8182 = vst [vmem:[#allocation98_spill] sm:$0xff] %v7505_v35 }
 0x703   :  { %v7512_v26 = vpop.trf.xlu0 }
 0x704   :  { %8183 = vst [vmem:[#allocation99_spill] sm:$0xff] %v7512_v26 }
 0x706   :  { %5220 = vmatmul.mubr.bf16.gmra.mrb[124].mxu1 %v2441_v63 }
 0x707   :  { %5239 = vmatprep.mubr.msk.bf16.mxu1 %vm5918_vm1, %v8148_v7  ;;  %v7521_v63 = vpop.trf.xlu0 }
 0x708   :  { %8185 = vst [vmem:[#allocation101_spill] sm:$0xff] %v7521_v63 }
 0x70e   :  { %5240 = vmatmul.mubr.bf16.vlgmr.msra.gmra.mrb[128].mxu1 %v2792_v28 }
 0x70f   :  { %3497 = vmatprep.mubr.bf16.mxu1 %v6998_v53 }
 0x7a1   :  { %v7427_v11 = vpop.f32.mrb[96].mxu1 }
 0x7a2   :  { %8151 = vst [vmem:[#allocation67_spill] sm:$0xff] %v7427_v11  ;;  %v7429_v23 = vpop.f32.mrb[97].mxu1 }
 0x7a3   :  { %8152 = vst [vmem:[#allocation68_spill] sm:$0xff] %v7429_v23  ;;  %v7431_v30 = vpop.f32.mrb[98].mxu1 }
 0x7a4   :  { %8153 = vst [vmem:[#allocation69_spill] sm:$0xff] %v7431_v30  ;;  %v7433_v31 = vpop.f32.mrb[99].mxu1 }
 0x7a9   :  { %v7435_v3 = vpop.f32.mrb[100].mxu1 }
 0x7aa   :  { %8154 = vst [vmem:[#allocation70_spill] sm:$0xff] %v7435_v3  ;;  %v7437_v17 = vpop.f32.mrb[101].mxu1 }
 0x7ab   :  { %8155 = vst [vmem:[#allocation71_spill] sm:$0xff] %v7437_v17  ;;  %v7439_v15 = vpop.f32.mrb[102].mxu1 }
 0x7ac   :  { %8156 = vst [vmem:[#allocation72_spill] sm:$0xff] %v7439_v15  ;;  %v7441_v49 = vpop.f32.mrb[103].mxu1 }
 0x7ad   :  { %8157 = vst [vmem:[#allocation73_spill] sm:$0xff] %v7441_v49 }
 0x7b1   :  { %v7443_v8 = vpop.f32.mrb[104].mxu1 }
 0x7b2   :  { %8158 = vst [vmem:[#allocation74_spill] sm:$0xff] %v7443_v8  ;;  %v7445_v25 = vpop.f32.mrb[105].mxu1 }
 0x7b3   :  { %8159 = vst [vmem:[#allocation75_spill] sm:$0xff] %v7445_v25  ;;  %v7447_v2 = vpop.f32.mrb[106].mxu1 }
 0x7b4   :  { %8160 = vst [vmem:[#allocation76_spill] sm:$0xff] %v7447_v2  ;;  %v7449_v42 = vpop.f32.mrb[107].mxu1 }
 0x7b5   :  { %8161 = vst [vmem:[#allocation77_spill] sm:$0xff] %v7449_v42 }
 0x7b9   :  { %v7451_v60 = vpop.f32.mrb[108].mxu1 }
 0x7ba   :  { %8162 = vst [vmem:[#allocation78_spill] sm:$0xff] %v7451_v60  ;;  %v7453_v45 = vpop.f32.mrb[109].mxu1 }
 0x7bb   :  { %8163 = vst [vmem:[#allocation79_spill] sm:$0xff] %v7453_v45  ;;  %v7455_v50 = vpop.f32.mrb[110].mxu1  ;;  %v8207_v45 = vld [vmem:[#allocation50_spill] sm:$0xff] }
 0x7bc   :  { %8164 = vst [vmem:[#allocation80_spill] sm:$0xff] %v7455_v50  ;;  %v7457_v52 = vpop.f32.mrb[111].mxu1 }
 0x7bd   :  { %8165 = vst [vmem:[#allocation81_spill] sm:$0xff] %v7457_v52  ;;  %v8208_v52 = vld [vmem:[#allocation53_spill] sm:$0xff] }
 0x7c1   :  { %v7459_v33 = vpop.f32.mrb[112].mxu1 }
 0x7c2   :  { %8166 = vst [vmem:[#allocation82_spill] sm:$0xff] %v7459_v33  ;;  %v7461_v24 = vpop.f32.mrb[113].mxu1 }
 0x7c3   :  { %v7463_v46 = vpop.f32.mrb[114].mxu1 }
 0x7c4   :  { %v7465_v21 = vpop.f32.mrb[115].mxu1 }
 0x7c9   :  { %v7467_v14 = vpop.f32.mrb[116].mxu1 }
 0x7ca   :  { %8167 = vst [vmem:[#allocation83_spill] sm:$0xff] %v7467_v14  ;;  %v7469_v56 = vpop.f32.mrb[117].mxu1 }
 0x7cb   :  { %8168 = vst [vmem:[#allocation84_spill] sm:$0xff] %v7469_v56  ;;  %v7471_v62 = vpop.f32.mrb[118].mxu1 }
 0x7cc   :  { %8169 = vst [vmem:[#allocation85_spill] sm:$0xff] %v7471_v62  ;;  %v7473_v38 = vpop.f32.mrb[119].mxu1 }
 0x7cd   :  { %8170 = vst [vmem:[#allocation86_spill] sm:$0xff] %v7473_v38 }
 0x7d1   :  { %v7475_v44 = vpop.f32.mrb[120].mxu1 }
 0x7d2   :  { %8171 = vst [vmem:[#allocation87_spill] sm:$0xff] %v7475_v44  ;;  %v7477_v40 = vpop.f32.mrb[121].mxu1 }
 0x7d3   :  { %8172 = vst [vmem:[#allocation88_spill] sm:$0xff] %v7477_v40  ;;  %v7479_v4 = vpop.f32.mrb[122].mxu1 }
 0x7d4   :  { %8173 = vst [vmem:[#allocation89_spill] sm:$0xff] %v7479_v4  ;;  %v7481_v48 = vpop.f32.mrb[123].mxu1  ;;  %v8214_v4 = vld [vmem:[#allocation56_spill] sm:$0xff] }
 0x7d5   :  { %8174 = vst [vmem:[#allocation90_spill] sm:$0xff] %v7481_v48 }
 0x7d9   :  { %v7483_v9 = vpop.f32.mrb[124].mxu1 }
 0x7da   :  { %8175 = vst [vmem:[#allocation91_spill] sm:$0xff] %v7483_v9  ;;  %v7485_v43 = vpop.f32.mrb[125].mxu1 }
 0x7db   :  { %8176 = vst [vmem:[#allocation92_spill] sm:$0xff] %v7485_v43  ;;  %v7487_v29 = vpop.f32.mrb[126].mxu1 }
 0x7dc   :  { %8177 = vst [vmem:[#allocation93_spill] sm:$0xff] %v7487_v29  ;;  %v7489_v13 = vpop.f32.mrb[127].mxu1 }
 0x7dd   :  { %8178 = vst [vmem:[#allocation94_spill] sm:$0xff] %v7489_v13 }
 0x7e1   :  { %v2875_v22 = vpop.f32.mrb[128].mxu1 }
 0x7e2   :  { %5424 = vtanh.f32 %v2875_v22  ;;  %v5241_v47 = vpop.f32.mrb[129].mxu1 }
 0x7e3   :  { %v2878_v16 = vpop.f32.mrb[130].mxu1 }
 0x7e4   :  { %v5242_v12 = vpop.f32.mrb[131].mxu1 }
 0x7ec   :  { %v5425_v34 = vpop.eup %5424 }
 0x7ed   :  { %v2882_v18 = vpack.c.bf16 %v5425_v34, %v5425_v34  ;;  %v8194_v34 = vld [vmem:[#allocation36_spill] sm:$0xff] }
 0x7ef   :  { %5371 = vmatprep.subr.msk.bf16.mxu0 %vm2964_vm3, %v2882_v18  ;;  %v2966_v54 = vsel %vm2964_vm3, %v2882_v18, 0 }
 0x7f0   :  { %5244 = vmatpush3.bf16.msra.mxu0 %v2966_v54 }
 0x7f1   :  { %5277 = vmatprep.subr.bf16.mxu0 %v8148_v7 }
 0x7f3   :  { %5246 = vmatmul.mubr.msk.bf16.vlgmr.msra.gmra.mrb[132].mxu0 %vm2915_vm2, %v7491_v59  ;;  %v8202_v59 = vld [vmem:[#allocation44_spill] sm:$0xff] }
 0x7f4   :  { %5249 = vmatprep.mubr.msk.bf16.mxu0 %vm2915_vm2, %v7493_v37  ;;  %5278 = vmatpush3.bf16.msra.mxu0 %v7318_v57  ;;  %v7518_v57 = vpop.trf.xlu1  ;;  %v8201_v37 = vld [vmem:[#allocation40_spill] sm:$0xff] }
 0x7f5   :  { %5279 = vmatprep.subr.bf16.mxu0 %v8148_v7  ;;  %8184 = vst [vmem:[#allocation100_spill] sm:$0xff] %v7518_v57 }
 0x7f8   :  { %5280 = vmatpush3.bf16.msra.mxu0 %v7333_v0  ;;  %v7530_v0 = vpop.trf.xlu1 }
 0x7f9   :  { %5281 = vmatprep.subr.bf16.mxu0 %v8148_v7  ;;  %8186 = vst [vmem:[#allocation102_spill] sm:$0xff] %v7530_v0 }
 0x7fb   :  { %5250 = vmatmul.mubr.msk.bf16.gmra.mrb[136].mxu0 %vm2915_vm2, %v7497_v55 }
 0x7fc   :  { %5253 = vmatprep.mubr.msk.bf16.mxu0 %vm2915_vm2, %v7505_v35  ;;  %5282 = vmatpush3.bf16.msra.mxu0 %v7345_v10  ;;  %v7532_v10 = vpop.trf.xlu0  ;;  %v8200_v35 = vld [vmem:[#allocation43_spill] sm:$0xff] }
 0x7fd   :  { %5283 = vmatprep.subr.bf16.mxu0 %v8148_v7  ;;  %8187 = vst [vmem:[#allocation103_spill] sm:$0xff] %v7532_v10 }
 0x800   :  { %5284 = vmatpush3.bf16.msra.mxu0 %v7369_v51  ;;  %v7540_v51 = vpop.trf.xlu1 }
 0x801   :  { %5285 = vmatprep.subr.bf16.mxu0 %v8148_v7  ;;  %8188 = vst [vmem:[#allocation104_spill] sm:$0xff] %v7540_v51 }
 0x803   :  { %5254 = vmatmul.mubr.msk.bf16.gmra.mrb[140].mxu0 %vm2915_vm2, %v7512_v26  ;;  %v8199_v26 = vld [vmem:[#allocation39_spill] sm:$0xff] }
 0x804   :  { %5257 = vmatprep.mubr.msk.bf16.mxu0 %vm2915_vm2, %v7521_v63  ;;  %5286 = vmatpush3.bf16.msra.mxu0 %v7384_v41  ;;  %v7545_v41 = vpop.trf.xlu1 }
 0x805   :  { %5287 = vmatprep.subr.bf16.mxu0 %v8148_v7  ;;  %8189 = vst [vmem:[#allocation105_spill] sm:$0xff] %v7545_v41 }
 0x808   :  { %5288 = vmatpush3.bf16.msra.mxu0 %v7402_v32  ;;  %v7551_v32 = vpop.trf.xlu1 }
 0x809   :  { %5289 = vmatprep.subr.bf16.mxu0 %v8148_v7  ;;  %8190 = vst [vmem:[#allocation106_spill] sm:$0xff] %v7551_v32 }
 0x80b   :  { %5258 = vmatmul.mubr.msk.bf16.gmra.mrb[144].mxu0 %vm2915_vm2, %v7532_v10 }
 0x80c   :  { %5261 = vmatprep.mubr.msk.bf16.mxu0 %vm2915_vm2, %v7518_v57  ;;  %5290 = vmatpush3.bf16.msra.mxu0 %v7407_v20  ;;  %v7557_v20 = vpop.trf.xlu1  ;;  %v8197_v57 = vld [vmem:[#allocation35_spill] sm:$0xff] }
 0x80d   :  { %5291 = vmatprep.subr.bf16.mxu0 %v8148_v7  ;;  %8191 = vst [vmem:[#allocation107_spill] sm:$0xff] %v7557_v20 }
 0x810   :  { %5292 = vmatpush3.bf16.msra.mxu0 %v7412_v36  ;;  %v7559_v6 = vpop.trf.xlu1 }
 0x811   :  { %8192 = vst [vmem:[#allocation108_spill] sm:$0xff] %v7559_v6 }
 0x813   :  { %5262 = vmatmul.mubr.msk.bf16.gmra.mrb[148].mxu0 %vm2915_vm2, %v7530_v0 }
 0x814   :  { %5265 = vmatprep.mubr.msk.bf16.mxu0 %vm2915_vm2, %v7540_v51  ;;  %v7565_v36 = vpop.trf.xlu1 }
 0x815   :  { %8193 = vst [vmem:[#allocation109_spill] sm:$0xff] %v7565_v36 }
 0x81b   :  { %5266 = vmatmul.mubr.msk.bf16.gmra.mrb[152].mxu0 %vm2915_vm2, %v7545_v41 }
 0x81c   :  { %5269 = vmatprep.mubr.msk.bf16.mxu0 %vm2915_vm2, %v7551_v32  ;;  %v8196_v32 = vld [vmem:[#allocation37_spill] sm:$0xff] }
 0x823   :  { %5270 = vmatmul.mubr.msk.bf16.gmra.mrb[156].mxu0 %vm2915_vm2, %v7557_v20 }
 0x824   :  { %5273 = vmatprep.mubr.msk.bf16.mxu0 %vm2915_vm2, %v7559_v6  ;;  %v8195_v6 = vld [vmem:[#allocation33_spill] sm:$0xff] }
 0x82b   :  { %5274 = vmatmul.mubr.msk.bf16.gmra.mrb[160].mxu0 %vm2915_vm2, %v7565_v36 }
 0x82c   :  { %5293 = vmatprep.mubr.msk.bf16.mxu0 %vm5918_vm1, %v8148_v7 }
 0x8c6   :  { %v5247_v28 = vpop.f32.mrb[132].mxu0 }
 0x8c7   :  { %v3131_v22 = vmul.f32 %v5247_v28, %v6794_v19  ;;  %v3002_v47 = vpop.f32.mrb[133].mxu0  ;;  %v8198_v28 = vld [vmem:[#allocation38_spill] sm:$0xff] }
 0x8c8   :  { %v5248_v16 = vpop.f32.mrb[134].mxu0  ;;  %v3129_v18 = vmul.f32 %v3002_v47, %v8194_v34 }
 0x8c9   :  { %3165 = vadd.xlane.f32.xlu1 %v3131_v22  ;;  %v3005_v12 = vpop.f32.mrb[135].mxu0  ;;  %v3132_v20 = vmul.f32 %v5248_v16, %v8195_v6 }
 0x8ca   :  { %v3130_v10 = vmul.f32 %v3005_v12, %v8197_v57 }
 0x8cd   :  { %3161 = vadd.xlane.f32.xlu1 %v3129_v18 }
 0x8ce   :  { %v5251_v54 = vpop.f32.mrb[136].mxu0 }
 0x8cf   :  { %v3135_v41 = vmul.f32 %v5251_v54, %v8196_v32  ;;  %v3018_v51 = vpop.f32.mrb[137].mxu0 }
 0x8d0   :  { %v5252_v36 = vpop.f32.mrb[138].mxu0  ;;  %v3133_v63 = vmul.f32 %v3018_v51, %v8198_v28 }
 0x8d1   :  { %3167 = vadd.xlane.f32.xlu1 %v3132_v20  ;;  %3173 = vadd.xlane.f32.xlu0 %v3135_v41  ;;  %v3021_v0 = vpop.f32.mrb[139].mxu0  ;;  %v3136_v47 = vmul.f32 %v5252_v36, %v8199_v26 }
 0x8d2   :  { %v3134_v20 = vmul.f32 %v3021_v0, %v8201_v37  ;;  %v8206_v0 = vld [vmem:[#allocation41_spill] sm:$0xff] }
 0x8d5   :  { %3163 = vadd.xlane.f32.xlu1 %v3130_v10  ;;  %3169 = vadd.xlane.f32.xlu0 %v3133_v63 }
 0x8d6   :  { %v5255_v22 = vpop.f32.mrb[140].mxu0 }
 0x8d7   :  { %v3034_v18 = vpop.f32.mrb[141].mxu0 }
 0x8d8   :  { %v3137_v55 = vmul.f32 %v3034_v18, %v8200_v35  ;;  %v5256_v16 = vpop.f32.mrb[142].mxu0 }
 0x8d9   :  { %3175 = vadd.xlane.f32.xlu1 %v3136_v47  ;;  %v3037_v54 = vpop.f32.mrb[143].mxu0  ;;  %v8204_v47 = vld [vmem:[#allocation52_spill] sm:$0xff] }
 0x8da   :  { %3177 = vadd.xlane.f32.xlu0 %v3137_v55  ;;  %v3138_v12 = vmul.f32 %v3037_v54, %v8202_v59  ;;  %v8205_v55 = vld [vmem:[#allocation51_spill] sm:$0xff] }
 0x8dd   :  { %3171 = vadd.xlane.f32.xlu1 %v3134_v20  ;;  %v3139_v20 = vmul.f32 %v5255_v22, %v8206_v0 }
 0x8de   :  { %v5259_v41 = vpop.f32.mrb[144].mxu0 }
 0x8df   :  { %v3050_v7 = vpop.f32.mrb[145].mxu0 }
 0x8e0   :  { %v5260_v51 = vpop.f32.mrb[146].mxu0 }
 0x8e1   :  { %3179 = vadd.xlane.f32.xlu1 %v3138_v12  ;;  %v3053_v63 = vpop.f32.mrb[147].mxu0 }
 0x8e6   :  { %v5263_v10 = vpop.f32.mrb[148].mxu0 }
 0x8e7   :  { %v3147_v36 = vmul.f32 %v5263_v10, %v8203_v39  ;;  %v3066_v61 = vpop.f32.mrb[149].mxu0 }
 0x8e8   :  { %v5264_v60 = vpop.f32.mrb[150].mxu0  ;;  %v3145_v9 = vmul.f32 %v3066_v61, %v8205_v55 }
 0x8e9   :  { %3197 = vadd.xlane.f32.xlu1 %v3147_v36  ;;  %v3069_v18 = vpop.f32.mrb[151].mxu0  ;;  %v3148_v29 = vmul.f32 %v5264_v60, %v8207_v45  ;;  %v8209_v36 = vld [vmem:[#allocation42_spill] sm:$0xff] }
 0x8ea   :  { %v3146_v50 = vmul.f32 %v3069_v18, %v8204_v47  ;;  %v3140_v13 = vmul.f32 %v5256_v16, %v8209_v36  ;;  %v8210_v18 = vld [vmem:[#allocation55_spill] sm:$0xff] }
 0x8eb   :  { %v8213_v16 = vld [vmem:[#allocation47_spill] sm:$0xff] }
 0x8ec   :  { %3195 = vadd.xlane.f32.xlu0 %v3146_v50  ;;  %v8211_v50 = vld [vmem:[#allocation57_spill] sm:$0xff] }
 0x8ed   :  { %3193 = vadd.xlane.f32.xlu1 %v3145_v9 }
 0x8ee   :  { %v5267_v54 = vpop.f32.mrb[152].mxu0 }
 0x8ef   :  { %v3082_v12 = vpop.f32.mrb[153].mxu0  ;;  %v3151_v43 = vmul.f32 %v5267_v54, %v8208_v52  ;;  %v8212_v54 = vld [vmem:[#allocation54_spill] sm:$0xff] }
 0x8f0   :  { %3181 = vadd.xlane.f32.xlu0 %v3139_v20  ;;  %v5268_v10 = vpop.f32.mrb[154].mxu0  ;;  %v3149_v2 = vmul.f32 %v3082_v12, %v8210_v18 }
 0x8f1   :  { %3199 = vadd.xlane.f32.xlu1 %v3148_v29  ;;  %v3085_v8 = vpop.f32.mrb[155].mxu0  ;;  %v3152_v25 = vmul.f32 %v5268_v10, %v8212_v54 }
 0x8f2   :  { %v3150_v12 = vmul.f32 %v3085_v8, %v8214_v4  ;;  %v8219_v8 = vld [vmem:[#allocation48_spill] sm:$0xff] }
 0x8f3   :  { %v3142_v48 = vmul.f32 %v3053_v63, %v8219_v8 }
 0x8f4   :  { %3205 = vadd.xlane.f32.xlu0 %v3151_v43  ;;  %v3141_v43 = vmul.f32 %v3050_v7, %v8213_v16  ;;  %v8218_v7 = vld [vmem:[#allocation45_spill] sm:$0xff] }
 0x8f5   :  { %3183 = vadd.xlane.f32.xlu1 %v3140_v13 }
 0x8f6   :  { %v5271_v61 = vpop.f32.mrb[156].mxu0 }
 0x8f7   :  { %v3155_v9 = vmul.f32 %v5271_v61, %v8211_v50  ;;  %v3098_v22 = vpop.f32.mrb[157].mxu0 }
 0x8f8   :  { %v5272_v44 = vpop.f32.mrb[158].mxu0  ;;  %v3153_v60 = vmul.f32 %v3098_v22, %v6918_v58  ;;  %v8216_v22 = vld [vmem:[#allocation60_spill] sm:$0xff] }
 0x8f9   :  { %3201 = vadd.xlane.f32.xlu1 %v3149_v2  ;;  %3213 = vadd.xlane.f32.xlu0 %v3155_v9  ;;  %v3101_v20 = vpop.f32.mrb[159].mxu0  ;;  %v8215_v9 = vld [vmem:[#allocation58_spill] sm:$0xff] }
 0x8fa   :  { %v3156_v40 = vmul.f32 %v5272_v44, %v8215_v9  ;;  %v8222_v44 = vld [vmem:[#allocation46_spill] sm:$0xff] }
 0x8fd   :  { %3207 = vadd.xlane.f32.xlu1 %v3152_v25  ;;  %3209 = vadd.xlane.f32.xlu0 %v3153_v60  ;;  %v8217_v25 = vld [vmem:[#allocation59_spill] sm:$0xff]  ;;  %v3143_v60 = vmul.f32 %v5259_v41, %v8218_v7 }
 0x8fe   :  { %v5275_v29 = vpop.f32.mrb[160].mxu0  ;;  %v3154_v10 = vmul.f32 %v3101_v20, %v8217_v25 }
 0x8ff   :  { %v3114_v13 = vpop.f32.mrb[161].mxu0  ;;  %v3159_v3 = vmul.f32 %v5275_v29, %v8216_v22  ;;  %v3144_v29 = vmul.f32 %v5260_v51, %v8222_v44 }
 0x900   :  { %v5276_v42 = vpop.f32.mrb[162].mxu0  ;;  %v3157_v61 = vmul.f32 %v3114_v13, %v6938_v27  ;;  %v8221_v13 = vld [vmem:[#allocation61_spill] sm:$0xff] }
 0x901   :  { %3203 = vadd.xlane.f32.xlu1 %v3150_v12  ;;  %3185 = vadd.xlane.f32.xlu0 %v3141_v43  ;;  %v3117_v2 = vpop.f32.mrb[163].mxu0  ;;  %v8220_v43 = vld [vmem:[#allocation62_spill] sm:$0xff]  ;;  %v3160_v15 = vmul.f32 %v5276_v42, %v8221_v13 }
 0x902   :  { %v3158_v12 = vmul.f32 %v3117_v2, %v8220_v43 }
 0x905   :  { %3215 = vadd.xlane.f32.xlu1 %v3156_v40  ;;  %3217 = vadd.xlane.f32.xlu0 %v3157_v61 }
 0x909   :  { %3211 = vadd.xlane.f32.xlu1 %v3154_v10  ;;  %3221 = vadd.xlane.f32.xlu0 %v3159_v3 }
 0x90d   :  { %3187 = vadd.xlane.f32.xlu1 %v3142_v48  ;;  %3189 = vadd.xlane.f32.xlu0 %v3143_v60 }
 0x911   :  { %3219 = vadd.xlane.f32.xlu1 %v3158_v12 }
 0x915   :  { %3223 = vadd.xlane.f32.xlu1 %v3160_v15 }
 0x919   :  { %3191 = vadd.xlane.f32.xlu1 %v3144_v29 }
 0x956   :  { %v3166_v40 = vpop.xlane.xlu1 %3165 }
 0x957   :  { %v4457_v41 = vmul.f32 -1.442695, %v3166_v40 }
 0x959   :  { %5426 = vpow2.f32 %v4457_v41 }
 0x95a   :  { %v3162_v61 = vpop.xlane.xlu1 %3161 }
 0x95b   :  { %v4455_v53 = vmul.f32 -1.442695, %v3162_v61 }
 0x95d   :  { %5428 = vpow2.f32 %v4455_v53 }
 0x95e   :  { %v3168_v20 = vpop.xlane.xlu1 %3167  ;;  %v3174_v14 = vpop.xlane.xlu0 %3173 }
 0x95f   :  { %v4458_v48 = vmul.f32 -1.442695, %v3168_v20  ;;  %v4461_v2 = vmul.f32 -1.442695, %v3174_v14 }
 0x961   :  { %5430 = vpow2.f32 %v4458_v48 }
 0x962   :  { %v3164_v10 = vpop.xlane.xlu1 %3163  ;;  %v3170_v60 = vpop.xlane.xlu0 %3169  ;;  %5432 = vpow2.f32 %v4461_v2 }
 0x963   :  { %v4456_v12 = vmul.f32 -1.442695, %v3164_v10  ;;  %v4459_v15 = vmul.f32 -1.442695, %v3170_v60  ;;  %v5427_v49 = vpop.eup %5426 }
 0x964   :  { %v3323_v20 = vadd.f32 1.0, %v5427_v49 }
 0x965   :  { %5434 = vpow2.f32 %v4456_v12 }
 0x966   :  { %v3176_v3 = vpop.xlane.xlu1 %3175  ;;  %5436 = vpow2.f32 %v4459_v15 }
 0x967   :  { %v4462_v51 = vmul.f32 -1.442695, %v3176_v3  ;;  %v3178_v29 = vpop.xlane.xlu0 %3177  ;;  %v5429_v61 = vpop.eup %5428 }
 0x968   :  { %v4463_v17 = vmul.f32 -1.442695, %v3178_v29  ;;  %v3321_v48 = vadd.f32 1.0, %v5429_v61 }
 0x969   :  { %5438 = vpow2.f32 %v4462_v51 }
 0x96a   :  { %v3172_v63 = vpop.xlane.xlu1 %3171  ;;  %5440 = vpow2.f32 %v4463_v17 }
 0x96b   :  { %v5431_v10 = vpop.eup %5430  ;;  %v4460_v2 = vmul.f32 -1.442695, %v3172_v63 }
 0x96c   :  { %v5433_v3 = vpop.eup %5432  ;;  %v3324_v51 = vadd.f32 1.0, %v5431_v10 }
 0x96e   :  { %v3180_v42 = vpop.xlane.xlu1 %3179 }
 0x96f   :  { %v5435_v15 = vpop.eup %5434  ;;  %v4464_v49 = vmul.f32 -1.442695, %v3180_v42 }
 0x970   :  { %v5437_v29 = vpop.eup %5436  ;;  %v3322_v61 = vadd.f32 1.0, %v5435_v15 }
 0x971   :  { %v3325_v63 = vadd.f32 1.0, %v5437_v29 }
 0x973   :  { %v5439_v56 = vpop.eup %5438 }
 0x976   :  { %v3198_v62 = vpop.xlane.xlu1 %3197 }
 0x977   :  { %v4473_v40 = vmul.f32 -1.442695, %v3198_v62 }
 0x979   :  { %v3196_v41 = vpop.xlane.xlu0 %3195  ;;  %5442 = vpow2.f32 %v4473_v40 }
 0x97a   :  { %v4472_v53 = vmul.f32 -1.442695, %v3196_v41  ;;  %v3194_v14 = vpop.xlane.xlu1 %3193  ;;  %v3327_v41 = vadd.f32 1.0, %v5433_v3 }
 0x97b   :  { %v4471_v60 = vmul.f32 -1.442695, %v3194_v14 }
 0x97c   :  { %5444 = vpow2.f32 %v4472_v53 }
 0x97d   :  { %5446 = vpow2.f32 %v4471_v60  ;;  %v7603_v12 = vpop.xlane.xlu0 %3181  ;;  %v5441_v60 = vpop.eup %5440 }
 0x97e   :  { %5448 = vrcp.f32 %v3323_v20  ;;  %v3200_v62 = vpop.xlane.xlu1 %3199  ;;  %v3328_v20 = vadd.f32 1.0, %v5439_v56 }
 0x97f   :  { %5450 = vrcp.f32 %v3321_v48  ;;  %v4474_v17 = vmul.f32 -1.442695, %v3200_v62 }
 0x980   :  { %5452 = vpow2.f32 %v4460_v2 }
 0x981   :  { %5454 = vpow2.f32 %v4474_v17  ;;  %v3206_v40 = vpop.xlane.xlu0 %3205 }
 0x982   :  { %5456 = vrcp.f32 %v3324_v51  ;;  %v3184_v53 = vpop.xlane.xlu1 %3183  ;;  %v4477_v14 = vmul.f32 -1.442695, %v3206_v40  ;;  %v3329_v51 = vadd.f32 1.0, %v5441_v60 }
 0x983   :  { %5458 = vpow2.f32 %v4464_v49  ;;  %v5443_v10 = vpop.eup %5442 }
 0x984   :  { %5460 = vrcp.f32 %v3327_v41  ;;  %v3339_v17 = vadd.f32 1.0, %v5443_v10 }
 0x985   :  { %5462 = vrcp.f32 %v3322_v61 }
 0x986   :  { %v5445_v11 = vpop.eup %5444  ;;  %5464 = vrcp.f32 %v3325_v63  ;;  %v3202_v42 = vpop.xlane.xlu1 %3201 }
 0x987   :  { %v3214_v48 = vpop.xlane.xlu0 %3213  ;;  %v5447_v3 = vpop.eup %5446  ;;  %v3338_v2 = vadd.f32 1.0, %v5445_v11  ;;  %5466 = vpow2.f32 %v4477_v14  ;;  %v4475_v15 = vmul.f32 -1.442695, %v3202_v42  ;;  %v4466_v14 = vmul.f32 -1.442695, %v3184_v53 }
 0x988   :  { %v7605_v62 = vpop.eup %5448  ;;  %5468 = vrcp.f32 %v3328_v20  ;;  %v3337_v29 = vadd.f32 1.0, %v5447_v3  ;;  %v4465_v53 = vmul.f32 -1.442695, %v7603_v12 }
 0x989   :  { %v5451_v49 = vpop.eup %5450  ;;  %5470 = vrcp.f32 %v3338_v2 }
 0x98a   :  { %v5453_v41 = vpop.eup %5452  ;;  %5472 = vrcp.f32 %v3337_v29  ;;  %v3208_v56 = vpop.xlane.xlu1 %3207  ;;  %v3417_v12 = vmul.f32 %v5451_v49, %v8194_v34 }
 0x98b   :  { %v3210_v61 = vpop.xlane.xlu0 %3209  ;;  %v5455_v40 = vpop.eup %5454  ;;  %5474 = vpow2.f32 %v4475_v15  ;;  %v4478_v63 = vmul.f32 -1.442695, %v3208_v56  ;;  %v3326_v60 = vadd.f32 1.0, %v5453_v41 }
 0x98c   :  { %v5457_v38 = vpop.eup %5456  ;;  %5476 = vrcp.f32 %v3329_v51  ;;  %v3340_v11 = vadd.f32 1.0, %v5455_v40  ;;  %v4479_v30 = vmul.f32 -1.442695, %v3210_v61  ;;  %v4481_v40 = vmul.f32 -1.442695, %v3214_v48 }
 0x98d   :  { %v5459_v42 = vpop.eup %5458  ;;  %5478 = vrcp.f32 %v3339_v17 }
 0x98e   :  { %v7607_v20 = vpop.eup %5460  ;;  %5480 = vrcp.f32 %v3340_v11  ;;  %v3204_v10 = vpop.xlane.xlu1 %3203  ;;  %v3330_v15 = vadd.f32 1.0, %v5459_v42 }
 0x98f   :  { %v3186_v3 = vpop.xlane.xlu0 %3185  ;;  %v5463_v2 = vpop.eup %5462  ;;  %5482 = vpow2.f32 %v4478_v63  ;;  %v4476_v29 = vmul.f32 -1.442695, %v3204_v10 }
 0x990   :  { %v7609_v33 = vpop.eup %5464  ;;  %5484 = vpow2.f32 %v4466_v14  ;;  %v3418_v63 = vmul.f32 %v5463_v2, %v8197_v57 }
 0x991   :  { %v5467_v56 = vpop.eup %5466  ;;  %5486 = vpow2.f32 %v4479_v30  ;;  %v4467_v30 = vmul.f32 -1.442695, %v3186_v3 }
 0x992   :  { %v7611_v51 = vpop.eup %5468  ;;  %5488 = vrcp.f32 %v3326_v60  ;;  %v3216_v17 = vpop.xlane.xlu1 %3215  ;;  %v3343_v10 = vadd.f32 1.0, %v5467_v56  ;;  %v3449_v56 = vpack.c.bf16 %v3418_v63, %v3417_v12 }
 0x993   :  { %v3218_v61 = vpop.xlane.xlu0 %3217  ;;  %v5471_v41 = vpop.eup %5470  ;;  %5490 = vpow2.f32 %v4476_v29  ;;  %v4482_v11 = vmul.f32 -1.442695, %v3216_v17 }
 0x994   :  { %v5473_v44 = vpop.eup %5472  ;;  %5492 = vrcp.f32 %v3330_v15  ;;  %v3434_v14 = vmul.f32 %v5471_v41, %v8204_v47  ;;  %v4483_v23 = vmul.f32 -1.442695, %v3218_v61  ;;  %v3420_v41 = vmul.f32 %v5457_v38, %v8195_v6 }
 0x995   :  { %v5475_v42 = vpop.eup %5474  ;;  %5494 = vpow2.f32 %v4482_v11  ;;  %v3433_v60 = vmul.f32 %v5473_v44, %v8205_v55 }
 0x996   :  { %v7617_v7 = vpop.eup %5476  ;;  %5496 = vpow2.f32 %v4465_v53  ;;  %v3212_v48 = vpop.xlane.xlu1 %3211  ;;  %v3341_v47 = vadd.f32 1.0, %v5475_v42 }
 0x997   :  { %v3222_v29 = vpop.xlane.xlu0 %3221  ;;  %v5479_v17 = vpop.eup %5478  ;;  %5498 = vpow2.f32 %v4481_v40  ;;  %v4480_v57 = vmul.f32 -1.442695, %v3212_v48  ;;  %v3457_v2 = vpack.c.bf16 %v3434_v14, %v3433_v60  ;;  %v3419_v40 = vmul.f32 %v7605_v62, %v6794_v19 }
 0x998   :  { %v5481_v15 = vpop.eup %5480  ;;  %5500 = vrcp.f32 %v3343_v10  ;;  %v3435_v53 = vmul.f32 %v5479_v17, %v8203_v39  ;;  %v4485_v11 = vmul.f32 -1.442695, %v3222_v29 }
 0x999   :  { %v5483_v3 = vpop.eup %5482  ;;  %5502 = vpow2.f32 %v4467_v30  ;;  %4921 = vmatprep.subr.bf16.mxu1 %v3457_v2  ;;  %v3436_v55 = vmul.f32 %v5481_v15, %v8207_v45  ;;  %v3450_v42 = vpack.c.bf16 %v3420_v41, %v3419_v40 }
 0x99a   :  { %v5485_v34 = vpop.eup %5484  ;;  %v3344_v44 = vadd.f32 1.0, %v5483_v3  ;;  %5504 = vpow2.f32 %v4480_v57  ;;  %4922 = vmatpush3.bf16.msra.mxu1 %v3449_v56  ;;  %v3188_v49 = vpop.xlane.xlu1 %3187 }
 0x99b   :  { %v5487_v61 = vpop.eup %5486  ;;  %5506 = vpow2.f32 %v4483_v23  ;;  %v4468_v63 = vmul.f32 -1.442695, %v3188_v49  ;;  %v3190_v38 = vpop.xlane.xlu0 %3189  ;;  %v3458_v6 = vpack.c.bf16 %v3436_v55, %v3435_v53  ;;  %v3332_v45 = vadd.f32 1.0, %v5485_v34 }
 0x99c   :  { %v5489_v10 = vpop.eup %5488  ;;  %5508 = vrcp.f32 %v3341_v47  ;;  %v3345_v60 = vadd.f32 1.0, %v5487_v61  ;;  %v4469_v19 = vmul.f32 -1.442695, %v3190_v38 }
 0x99d   :  { %v5491_v14 = vpop.eup %5490  ;;  %5510 = vrcp.f32 %v3344_v44  ;;  %4923 = vmatprep.subr.bf16.mxu1 %v3458_v6  ;;  %v3422_v6 = vmul.f32 %v5489_v10, %v8201_v37 }
 0x99e   :  { %v7625_v30 = vpop.eup %5492  ;;  %v3342_v12 = vadd.f32 1.0, %v5491_v14  ;;  %5512 = vpow2.f32 %v4468_v63  ;;  %v3220_v39 = vpop.xlane.xlu1 %3219  ;;  %4924 = vmatpush3.bf16.msra.mxu1 %v3450_v42 }
 0x99f   :  { %v5495_v48 = vpop.eup %5494  ;;  %5514 = vpow2.f32 %v4485_v11  ;;  %v4484_v62 = vmul.f32 -1.442695, %v3220_v39 }
 0x9a0   :  { %v5497_v23 = vpop.eup %5496  ;;  %5516 = vrcp.f32 %v3342_v12  ;;  %v3348_v57 = vadd.f32 1.0, %v5495_v48 }
 0x9a1   :  { %v5499_v29 = vpop.eup %5498  ;;  %5518 = vrcp.f32 %v3332_v45  ;;  %v3331_v44 = vadd.f32 1.0, %v5497_v23 }
 0x9a2   :  { %v5501_v17 = vpop.eup %5500  ;;  %5520 = vrcp.f32 %v3345_v60  ;;  %v3224_v2 = vpop.xlane.xlu1 %3223  ;;  %v3347_v3 = vadd.f32 1.0, %v5499_v29  ;;  %v3424_v29 = vmul.f32 %v7611_v51, %v8199_v26 }
 0x9a3   :  { %v5503_v15 = vpop.eup %5502  ;;  %5522 = vpow2.f32 %v4469_v19  ;;  %v4486_v47 = vmul.f32 -1.442695, %v3224_v2  ;;  %v3421_v19 = vmul.f32 %v7609_v33, %v8198_v28  ;;  %v3439_v10 = vmul.f32 %v5501_v17, %v8208_v52 }
 0x9a4   :  { %v5505_v56 = vpop.eup %5504  ;;  %5524 = vpow2.f32 %v4484_v62  ;;  %v3333_v63 = vadd.f32 1.0, %v5503_v15  ;;  %v3426_v17 = vmul.f32 %v7625_v30, %v8202_v59  ;;  %v2444_v59 = vsub.s32 7, %v6135_v1 }
 0x9a5   :  { %v5507_v41 = vpop.eup %5506  ;;  %v3346_v55 = vadd.f32 1.0, %v5505_v56  ;;  %5526 = vpow2.f32 %v4486_v47 }
 0x9a6   :  { %v5509_v34 = vpop.eup %5508  ;;  %5528 = vrcp.f32 %v3348_v57  ;;  %v3192_v49 = vpop.xlane.xlu1 %3191  ;;  %v3349_v42 = vadd.f32 1.0, %v5507_v41 }
 0x9a7   :  { %v5511_v53 = vpop.eup %5510  ;;  %5530 = vrcp.f32 %v3346_v55  ;;  %v4470_v61 = vmul.f32 -1.442695, %v3192_v49  ;;  %v3437_v60 = vmul.f32 %v5509_v34, %v8210_v18  ;;  %v3451_v18 = vpack.c.bf16 %v3422_v6, %v3421_v19 }
 0x9a8   :  { %v5513_v40 = vpop.eup %5512  ;;  %5532 = vrcp.f32 %v3347_v3  ;;  %v3440_v39 = vmul.f32 %v5511_v53, %v8212_v54  ;;  %v3425_v55 = vmul.f32 %v7617_v7, %v8200_v35 }
 0x9a9   :  { %v5515_v11 = vpop.eup %5514  ;;  %5534 = vpow2.f32 %v4470_v61  ;;  %v3334_v14 = vadd.f32 1.0, %v5513_v40  ;;  %v7650_v40 = vrot.slane %v6151_v5, %v2444_v59 }
 0x9aa   :  { %v5517_v38 = vpop.eup %5516  ;;  %5536 = vrcp.f32 %v3331_v44  ;;  %v3351_v23 = vadd.f32 1.0, %v5515_v11  ;;  %v3460_v33 = vpack.c.bf16 %v3440_v39, %v3439_v10 }
 0x9ab   :  { %v5519_v45 = vpop.eup %5518  ;;  %v3438_v12 = vmul.f32 %v5517_v38, %v8214_v4  ;;  %5538 = vrcp.f32 %v3333_v63  ;;  %v3423_v4 = vmul.f32 %v7607_v20, %v8196_v32  ;;  %v2596_v38 = vadd.f32 %v7465_v21, %v7650_v40 }
 0x9ac   :  { %v5521_v48 = vpop.eup %5520  ;;  %5540 = vrcp.f32 %v3334_v14  ;;  %v3428_v30 = vmul.f32 %v5519_v45, %v8209_v36 }
 0x9ad   :  { %v5523_v62 = vpop.eup %5522  ;;  %v3459_v37 = vpack.c.bf16 %v3438_v12, %v3437_v60  ;;  %5542 = vrcp.f32 %v3349_v42  ;;  %v3452_v52 = vpack.c.bf16 %v3424_v29, %v3423_v4  ;;  %v3441_v32 = vmul.f32 %v5521_v48, %v6918_v58 }
 0x9ae   :  { %v5525_v57 = vpop.eup %5524  ;;  %5544 = vrcp.f32 %v3351_v23  ;;  %v3335_v15 = vadd.f32 1.0, %v5523_v62  ;;  %v3453_v58 = vpack.c.bf16 %v3426_v17, %v3425_v55  ;;  %v2593_v60 = vadd.f32 %v7461_v24, %v7650_v40  ;;  %v8225_v23 = vld [vmem:[#allocation46_spill] sm:$0xff]  ;;  %v8233_v55 = vld [vmem:[#allocation64_spill] sm:$0xff] }
 0x9af   :  { %v5527_v2 = vpop.eup %5526  ;;  %v3350_v54 = vadd.f32 1.0, %v5525_v57  ;;  %4925 = vmatprep.subr.bf16.mxu1 %v3459_v37  ;;  %v2532_v12 = vadd.f32 %v7433_v31, %v7650_v40  ;;  %v8226_v62 = vld [vmem:[#allocation82_spill] sm:$0xff]  ;;  %v8227_v37 = vld [vmem:[#allocation69_spill] sm:$0xff] }
 0x9b0   :  { %v5529_v28 = vpop.eup %5528  ;;  %v3352_v47 = vadd.f32 1.0, %v5527_v2  ;;  %4926 = vmatpush3.bf16.msra.mxu1 %v3451_v18  ;;  %v2601_v31 = vadd.f32 %v8226_v62, %v7650_v40  ;;  %v7674_v29 = vmax.f32 %v2593_v60, 0.0  ;;  %v8228_v2 = vld [vmem:[#allocation86_spill] sm:$0xff] }
 0x9b1   :  { %v5531_v26 = vpop.eup %5530  ;;  %5546 = vrcp.f32 %v3350_v54  ;;  %4927 = vmatprep.subr.bf16.mxu1 %v3460_v33  ;;  %v3444_v3 = vmul.f32 %v5529_v28, %v8215_v9  ;;  %v7678_v10 = vmax.f32 %v2532_v12, 0.0  ;;  %v2612_v4 = vadd.f32 %v8228_v2, %v7650_v40  ;;  %v8229_v33 = vld [vmem:[#allocation67_spill] sm:$0xff]  ;;  %v8246_v2 = vld [vmem:[#allocation94_spill] sm:$0xff] }
 0x9b2   :  { %v5533_v51 = vpop.eup %5532  ;;  %5548 = vrcp.f32 %v3352_v47  ;;  %v3442_v20 = vmul.f32 %v5531_v26, %v8217_v25  ;;  %v2537_v28 = vadd.f32 %v8229_v33, %v7650_v40  ;;  %v7690_v47 = vmax.f32 %v2601_v31, 0.0  ;;  %v8230_v26 = vld [vmem:[#allocation84_spill] sm:$0xff]  ;;  %v8247_v33 = vld [vmem:[#allocation74_spill] sm:$0xff] }
 0x9b3   :  { %v5535_v56 = vpop.eup %5534  ;;  %5550 = vrcp.f32 %v3335_v15  ;;  %v3443_v49 = vmul.f32 %v5533_v51, %v8211_v50  ;;  %v8245_v31 = vld [vmem:[#allocation76_spill] sm:$0xff] }
 0x9b4   :  { %v5537_v41 = vpop.eup %5536  ;;  %v3336_v34 = vadd.f32 1.0, %v5535_v56  ;;  %4928 = vmatpush3.bf16.msra.mxu1 %v3452_v52  ;;  %v3461_v44 = vpack.c.bf16 %v3442_v20, %v3441_v32  ;;  %v2609_v52 = vadd.f32 %v8230_v26, %v7650_v40  ;;  %v8231_v32 = vld [vmem:[#allocation73_spill] sm:$0xff] }
 0x9b5   :  { %v5539_v25 = vpop.eup %5538  ;;  %v3462_v53 = vpack.c.bf16 %v3444_v3, %v3443_v49  ;;  %v3427_v61 = vmul.f32 %v5537_v41, %v8206_v0  ;;  %v2548_v20 = vadd.f32 %v8231_v32, %v7650_v40  ;;  %v8232_v56 = vld [vmem:[#allocation85_spill] sm:$0xff]  ;;  %v7702_v41 = vmax.f32 %v2612_v4, 0.0  ;;  %v8234_v49 = vld [vmem:[#allocation71_spill] sm:$0xff] }
 0x9b6   :  { %5552 = vrcp.f32 %v3336_v34  ;;  %4929 = vmatprep.subr.bf16.mxu1 %v3461_v44  ;;  %v5541_v9 = vpop.eup %5540  ;;  %v3429_v14 = vmul.f32 %v5539_v25, %v8213_v16  ;;  %v8223_v16 = vld [vmem:[#allocation68_spill] sm:$0xff]  ;;  %v2620_v3 = vadd.f32 %v8232_v56, %v7650_v40  ;;  %v7707_v44 = vmax.f32 %v2537_v28, 0.0 }
 0x9b7   :  { %v5543_v35 = vpop.eup %5542  ;;  %v3454_v50 = vpack.c.bf16 %v3428_v30, %v3427_v61  ;;  %v3430_v63 = vmul.f32 %v5541_v9, %v8219_v8  ;;  %v2545_v59 = vadd.f32 %v8234_v49, %v7650_v40  ;;  %v8235_v30 = vld [vmem:[#allocation63_spill] sm:$0xff]  ;;  %v8237_v61 = vld [vmem:[#allocation72_spill] sm:$0xff]  ;;  %v2644_v4 = vadd.f32 %v8246_v2, %v7650_v40  ;;  %v8250_v49 = vld [vmem:[#allocation93_spill] sm:$0xff] }
 0x9b8   :  { %4930 = vmatpush3.bf16.msra.mxu1 %v3453_v58  ;;  %v5545_v7 = vpop.eup %5544  ;;  %v3445_v6 = vmul.f32 %v5543_v35, %v6938_v27  ;;  %v2604_v27 = vadd.f32 %v7463_v46, %v7650_v40  ;;  %v2540_v46 = vadd.f32 %v8227_v37, %v7650_v40  ;;  %v8236_v58 = vld [vmem:[#allocation83_spill] sm:$0xff]  ;;  %v2556_v35 = vadd.f32 %v8237_v61, %v7650_v40 }
 0x9b9   :  { %4931 = vmatprep.subr.bf16.mxu1 %v3462_v53  ;;  %v3447_v45 = vmul.f32 %v5545_v7, %v8216_v22  ;;  %v3455_v21 = vpack.c.bf16 %v3430_v63, %v3429_v14  ;;  %v2529_v22 = vadd.f32 %v8223_v16, %v7650_v40  ;;  %v2617_v25 = vadd.f32 %v8236_v58, %v7650_v40  ;;  %v8251_v61 = vld [vmem:[#allocation79_spill] sm:$0xff] }
 0x9ba   :  { %v7680_v18 = vmax.f32 %v2604_v27, 0.0  ;;  %v7694_v51 = vmax.f32 %v2540_v46, 0.0  ;;  %v7714_v53 = vmax.f32 %v2609_v52, 0.0  ;;  %v7720_v7 = vmax.f32 %v2548_v20, 0.0 }
 0x9bb   :  { %v5547_v11 = vpop.eup %5546  ;;  %v7688_v15 = vmax.f32 %v2529_v22, 0.0  ;;  %v7732_v14 = vmax.f32 %v2617_v25, 0.0  ;;  %v8243_v22 = vld [vmem:[#allocation75_spill] sm:$0xff]  ;;  %v2572_v37 = vadd.f32 %v8245_v31, %v7650_v40  ;;  %v2569_v28 = vadd.f32 %v8247_v33, %v7650_v40 }
 0x9bc   :  { %v5549_v36 = vpop.eup %5548  ;;  %4932 = vmatpush3.bf16.msra.mxu1 %v3454_v50  ;;  %v3446_v0 = vmul.f32 %v5547_v11, %v8220_v43  ;;  %v7666_v43 = vmax.f32 %v2596_v38, 0.0  ;;  %v2696_v34 = vpack.c.bf16 %v7680_v18, %v7690_v47  ;;  %v2688_v9 = vpack.c.bf16 %v7694_v51, %v7707_v44  ;;  %v8238_v11 = vld [vmem:[#allocation90_spill] sm:$0xff] }
 0x9bd   :  { %v3448_v5 = vmul.f32 %v5549_v36, %v8221_v13  ;;  %v5551_v42 = vpop.eup %5550  ;;  %v8224_v13 = vld [vmem:[#allocation45_spill] sm:$0xff]  ;;  %v2687_v17 = vpack.c.bf16 %v7678_v10, %v7688_v15  ;;  %v7722_v50 = vmax.f32 %v2620_v3, 0.0  ;;  %v2628_v63 = vadd.f32 %v8238_v11, %v7650_v40  ;;  %v8239_v38 = vld [vmem:[#allocation70_spill] sm:$0xff]  ;;  %v8252_v11 = vld [vmem:[#allocation91_spill] sm:$0xff] }
 0x9be   :  { %v3463_v8 = vpack.c.bf16 %v3446_v0, %v3445_v6  ;;  %v3431_v19 = vmul.f32 %v5551_v42, %v8224_v13  ;;  %v2695_v54 = vpack.c.bf16 %v7666_v43, %v7674_v29  ;;  %v2697_v36 = vpack.c.bf16 %v7702_v41, %v7714_v53  ;;  %v8249_v3 = vld [vmem:[#allocation81_spill] sm:$0xff] }
 0x9bf   :  { %v3464_v39 = vpack.c.bf16 %v3448_v5, %v3447_v45  ;;  %v2553_v6 = vadd.f32 %v8239_v38, %v7650_v40  ;;  %v7730_v0 = vmax.f32 %v2545_v59, 0.0  ;;  %v8240_v45 = vld [vmem:[#allocation88_spill] sm:$0xff]  ;;  %v7736_v42 = vmax.f32 %v2556_v35, 0.0 }
 0x9c0   :  { %v5553_v48 = vpop.eup %5552  ;;  %4933 = vmatprep.subr.bf16.mxu1 %v3463_v8  ;;  %v2625_v5 = vadd.f32 %v8240_v45, %v7650_v40  ;;  %v8241_v8 = vld [vmem:[#allocation77_spill] sm:$0xff]  ;;  %v2698_v27 = vpack.c.bf16 %v7722_v50, %v7732_v14  ;;  %v2561_v13 = vadd.f32 %v8243_v22, %v7650_v40  ;;  %v7776_v20 = vmax.f32 %v2572_v37, 0.0 }
 0x9c1   :  { %v3432_v24 = vmul.f32 %v5553_v48, %v8225_v23  ;;  %4934 = vmatpush3.bf16.msra.mxu1 %v3455_v21  ;;  %v2689_v60 = vpack.c.bf16 %v7720_v7, %v7730_v0  ;;  %v2564_v12 = vadd.f32 %v8241_v8, %v7650_v40  ;;  %v8242_v21 = vld [vmem:[#allocation89_spill] sm:$0xff]  ;;  %v7744_v48 = vmax.f32 %v2628_v63, 0.0 }
 0x9c2   :  { %4935 = vmatprep.subr.bf16.mxu1 %v3464_v39  ;;  %v2636_v39 = vadd.f32 %v8242_v21, %v7650_v40  ;;  %v7748_v16 = vmax.f32 %v2553_v6, 0.0  ;;  %v7770_v26 = vmax.f32 %v2561_v13, 0.0  ;;  %v2652_v59 = vadd.f32 %v8250_v49, %v7650_v40  ;;  %v8253_v6 = vld [vmem:[#allocation80_spill] sm:$0xff] }
 0x9c3   :  { %v3456_v57 = vpack.c.bf16 %v3432_v24, %v3431_v19  ;;  %v8244_v19 = vld [vmem:[#allocation87_spill] sm:$0xff]  ;;  %v7754_v24 = vmax.f32 %v2625_v5, 0.0  ;;  %v7760_v46 = vmax.f32 %v2564_v12, 0.0  ;;  %v7784_v58 = vmax.f32 %v2644_v4, 0.0  ;;  %v8254_v12 = vld [vmem:[#allocation78_spill] sm:$0xff] }
 0x9c4   :  { %v2633_v23 = vadd.f32 %v8244_v19, %v7650_v40  ;;  %v2690_v62 = vpack.c.bf16 %v7736_v42, %v7748_v16  ;;  %v2577_v35 = vadd.f32 %v8251_v61, %v7650_v40  ;;  %v2649_v63 = vadd.f32 %v8252_v11, %v7650_v40 }
 0x9c5   :  { %4936 = vmatpush3.bf16.msra.mxu1 %v3456_v57  ;;  %v7762_v57 = vmax.f32 %v2636_v39, 0.0  ;;  %v2691_v56 = vpack.c.bf16 %v7760_v46, %v7770_v26  ;;  %v2588_v45 = vadd.f32 %v8253_v6, %v7650_v40  ;;  %v2585_v21 = vadd.f32 %v8254_v12, %v7650_v40  ;;  %v5406_v6 = vld [vmem:[#allocation16] sm:$0xff]  }
 0x9c6   :  { %4943 = vmatprep.subr.bf16.mxu1 %v2695_v54  ;;  %v2699_v54 = vpack.c.bf16 %v7744_v48, %v7754_v24  ;;  %v7772_v52 = vmax.f32 %v2633_v23, 0.0  ;;  %v7808_v39 = vmax.f32 %v2577_v35, 0.0  ;;  %v8259_v12 = vld [vmem:[#allocation96_spill] sm:$0xff] }
 0x9c7   :  { %v7812_v22 = vmax.f32 %v2588_v45, 0.0  ;;  %v7818_v23 = vmax.f32 %v2585_v21, 0.0  ;;  %v8257_v45 = vmov 0.0   ;;  %v5408_v21 = vld [vmem:[#allocation16 + $0x10] sm:$0xff]  }
 0x9c8   :  { %3498 = vmatmul.mubr.bf16.vlgmr.msra.gmra.mrb[132].mxu1 %v8233_v55  ;;  %v2700_v25 = vpack.c.bf16 %v7762_v57, %v7772_v52 }
 0x9c9   :  { %4944 = vmatpush3.bf16.msra.mxu1 %v2687_v17  ;;  %3537 = vmatprep.mubr.bf16.mxu1 %v8235_v30  ;;  %v8248_v17 = vld [vmem:[#allocation92_spill] sm:$0xff] }
 0x9ca   :  { %4945 = vmatprep.subr.bf16.mxu1 %v2696_v34  ;;  %v2641_v32 = vadd.f32 %v8248_v17, %v7650_v40  ;;  %v2580_v34 = vadd.f32 %v8249_v3, %v7650_v40  ;;  %v2694_v40 = vpack.c.bf16 %v7812_v22, %v7818_v23  ;;  %v8256_v3 = vld [vmem:[#allocation65_spill] sm:$0xff] }
 0x9cc   :  { %v7800_v5 = vmax.f32 %v2580_v34, 0.0 }
 0x9cd   :  { %4946 = vmatpush3.bf16.msra.mxu1 %v2688_v9  ;;  %v7788_v9 = vmax.f32 %v2569_v28, 0.0 }
 0x9ce   :  { %4947 = vmatprep.subr.bf16.mxu1 %v2697_v36  ;;  %v7794_v36 = vmax.f32 %v2641_v32, 0.0  ;;  %v2693_v13 = vpack.c.bf16 %v7800_v5, %v7808_v39 }
 0x9cf   :  { %v2692_v38 = vpack.c.bf16 %v7776_v20, %v7788_v9 }
 0x9d0   :  { %v2701_v8 = vpack.c.bf16 %v7784_v58, %v7794_v36 }
 0x9d1   :  { %4948 = vmatpush3.bf16.msra.mxu1 %v2689_v60  ;;  %v7802_v60 = vmax.f32 %v2652_v59, 0.0 }
 0x9d2   :  { %4949 = vmatprep.subr.bf16.mxu1 %v2698_v27  ;;  %v7810_v27 = vmax.f32 %v2649_v63, 0.0 }
 0x9d4   :  { %v2702_v19 = vpack.c.bf16 %v7802_v60, %v7810_v27 }
 0x9d5   :  { %4950 = vmatpush3.bf16.msra.mxu1 %v2690_v62  ;;  %v8255_v62 = vld [vmem:[#allocation66_spill] sm:$0xff] }
 0x9d6   :  { %4951 = vmatprep.subr.bf16.mxu1 %v2699_v54 }
 0x9d9   :  { %4952 = vmatpush3.bf16.msra.mxu1 %v2691_v56 }
 0x9da   :  { %4953 = vmatprep.subr.bf16.mxu1 %v2700_v25 }
 0x9dd   :  { %4954 = vmatpush3.bf16.msra.mxu1 %v2692_v38 }
 0x9de   :  { %4955 = vmatprep.subr.bf16.mxu1 %v2701_v8  ;;  %v8258_v8 = vld [vmem:[#allocation95_spill] sm:$0xff] }
 0x9e1   :  { %4956 = vmatpush3.bf16.msra.mxu1 %v2693_v13  ;;  %v8260_v13 = vld [vmem:[#allocation97_spill] sm:$0xff] }
 0x9e2   :  { %4957 = vmatprep.subr.bf16.mxu1 %v2702_v19  ;;  %v8261_v19 = vld [vmem:[#allocation98_spill] sm:$0xff] }
 0x9e5   :  { %4958 = vmatpush3.bf16.msra.mxu1 %v2694_v40  ;;  %v5409_v40 = vld [vmem:[#allocation16 + $0x18] sm:$0xff]  }
 0x9e8   :  { %3538 = vmatmul.mubr.bf16.vlgmr.msra.gmra.mrb[136].mxu1 %v8233_v55 }
 0x9e9   :  { %5299 = vmatprep.mubr.msk.bf16.mxu1 %vm2915_vm2, %v8255_v62  ;;  %v5410_v62 = vld [vmem:[#allocation16 + $0x20] sm:$0xff]  }
 0xa9b   :  { %v4937_v31 = vpop.f32.mrb[132].mxu1 }
 0xa9c   :  { %v4938_v37 = vpop.f32.mrb[133].mxu1 }
 0xa9d   :  { %v7825_v2 = vadd.f32 %v4938_v37, %v4937_v31  ;;  %v4940_v4 = vpop.f32.mrb[134].mxu1  ;;  %v8262_v31 = vld [vmem:[#allocation99_spill] sm:$0xff]  ;;  %v8263_v37 = vld [vmem:[#allocation101_spill] sm:$0xff] }
 0xa9e   :  { %v4941_v54 = vpop.f32.mrb[135].mxu1  ;;  %v5411_v4 = vld [vmem:[#allocation16 + $0x28] sm:$0xff]  }
 0xa9f   :  { %v5412_v54 = vld [vmem:[#allocation16 + $0x30] sm:$0xff]  }
 0xabb   :  { %v4959_v33 = vpop.f32.mrb[136].mxu1 }
 0xabc   :  { %v4960_v28 = vpop.f32.mrb[137].mxu1 }
 0xabd   :  { %v4961_v17 = vadd.f32 %v4960_v28, %v4959_v33  ;;  %v4962_v32 = vpop.f32.mrb[138].mxu1  ;;  %v8264_v33 = vld [vmem:[#allocation103_spill] sm:$0xff]  ;;  %v8265_v28 = vld [vmem:[#allocation100_spill] sm:$0xff] }
 0xabe   :  { %v4963_v56 = vpop.f32.mrb[139].mxu1  ;;  %v8266_v32 = vld [vmem:[#allocation102_spill] sm:$0xff] }
 0xabf   :  { %v3545_v34 = vmul.f32 %v4961_v17, %v8256_v3  ;;  %v5413_v17 = vld [vmem:[#allocation16 + $0x38] sm:$0xff]   ;;  %v8267_v56 = vld [vmem:[#allocation104_spill] sm:$0xff]  ;;  %v8268_v3 = vld [vmem:[#allocation105_spill] sm:$0xff] }
 0xac1   :  { %v3546_v49 = vpack.c.bf16 %v3545_v34, %v3545_v34  ;;  %v8269_v34 = vld [vmem:[#allocation106_spill] sm:$0xff] }
 0xac3   :  { %5294 = vmatmul.mubr.bf16.vlgmr.msra.gmra.mrb[164].mxu0 %v3546_v49  ;;  %v8270_v49 = vld [vmem:[#allocation107_spill] sm:$0xff] }
 0xac4   :  { %4121 = vmatprep.mubr.bf16.mxu0 %v8235_v30  ;;  %v5407_v30 = vld [vmem:[#allocation16 + $0x8] sm:$0xff]  }
 0xb96   :  { %v3581_v59 = vpop.f32.mrb[164].mxu0 }
 0xb97   :  { %5554 = vtanh.f32 %v3581_v59  ;;  %v5295_v25 = vpop.f32.mrb[165].mxu0  ;;  %v8271_v59 = vld [vmem:[#allocation108_spill] sm:$0xff] }
 0xb98   :  { %v3584_v61 = vpop.f32.mrb[166].mxu0  ;;  %v8272_v25 = vld [vmem:[#allocation109_spill] sm:$0xff] }
 0xb99   :  { %v5296_v35 = vpop.f32.mrb[167].mxu0  ;;  %v4129_v61 = vpack.c.bf16 %v7825_v2, %v7825_v2 }
 0xba1   :  { %v5555_v11 = vpop.eup %5554 }
 0xba2   :  { %v3588_v63 = vpack.c.bf16 %v5555_v11, %v5555_v11 }
 0xba4   :  { %5372 = vmatprep.subr.msk.bf16.mxu1 %vm2964_vm3, %v3588_v63  ;;  %v3590_v38 = vsel %vm2964_vm3, %v3588_v63, 0 }
 0xba5   :  { %5298 = vmatpush3.bf16.msra.mxu1 %v3590_v38 }
 0xba6   :  { %5351 = vmatprep.subr.bf16.mxu1 %v8257_v45 }
 0xba8   :  { %5300 = vmatmul.mubr.msk.bf16.vlgmr.msra.gmra.mrb[140].mxu1 %vm2915_vm2, %v8258_v8 }
 0xba9   :  { %5303 = vmatprep.mubr.msk.bf16.mxu1 %vm2915_vm2, %v8259_v12  ;;  %5352 = vmatpush3.bf16.msra.mxu1 %v5406_v6 }
 0xbaa   :  { %5353 = vmatprep.subr.bf16.mxu1 %v8257_v45 }
 0xbad   :  { %5354 = vmatpush3.bf16.msra.mxu1 %v5407_v30 }
 0xbae   :  { %5355 = vmatprep.subr.bf16.mxu1 %v8257_v45 }
 0xbb0   :  { %5304 = vmatmul.mubr.msk.bf16.gmra.mrb[144].mxu1 %vm2915_vm2, %v8260_v13 }
 0xbb1   :  { %5307 = vmatprep.mubr.msk.bf16.mxu1 %vm2915_vm2, %v8261_v19  ;;  %5356 = vmatpush3.bf16.msra.mxu1 %v5408_v21 }
 0xbb2   :  { %5357 = vmatprep.subr.bf16.mxu1 %v8257_v45 }
 0xbb5   :  { %5358 = vmatpush3.bf16.msra.mxu1 %v5409_v40 }
 0xbb6   :  { %5359 = vmatprep.subr.bf16.mxu1 %v8257_v45 }
 0xbb8   :  { %5308 = vmatmul.mubr.msk.bf16.gmra.mrb[148].mxu1 %vm2915_vm2, %v8262_v31 }
 0xbb9   :  { %5311 = vmatprep.mubr.msk.bf16.mxu1 %vm2915_vm2, %v8263_v37  ;;  %5360 = vmatpush3.bf16.msra.mxu1 %v5410_v62 }
 0xbba   :  { %5361 = vmatprep.subr.bf16.mxu1 %v8257_v45 }
 0xbbd   :  { %5362 = vmatpush3.bf16.msra.mxu1 %v5411_v4 }
 0xbbe   :  { %5363 = vmatprep.subr.bf16.mxu1 %v8257_v45 }
 0xbc0   :  { %5312 = vmatmul.mubr.msk.bf16.gmra.mrb[152].mxu1 %vm2915_vm2, %v8264_v33 }
 0xbc1   :  { %5315 = vmatprep.mubr.msk.bf16.mxu1 %vm2915_vm2, %v8265_v28  ;;  %5364 = vmatpush3.bf16.msra.mxu1 %v5412_v54 }
 0xbc2   :  { %5365 = vmatprep.subr.bf16.mxu1 %v8257_v45 }
 0xbc5   :  { %5366 = vmatpush3.bf16.msra.mxu1 %v5413_v17 }
 0xbc8   :  { %5316 = vmatmul.mubr.msk.bf16.gmra.mrb[156].mxu1 %vm2915_vm2, %v8266_v32 }
 0xbc9   :  { %5319 = vmatprep.mubr.msk.bf16.mxu1 %vm2915_vm2, %v8267_v56 }
 0xbd0   :  { %5320 = vmatmul.mubr.msk.bf16.gmra.mrb[160].mxu1 %vm2915_vm2, %v8268_v3 }
 0xbd1   :  { %5323 = vmatprep.mubr.msk.bf16.mxu1 %vm2915_vm2, %v8269_v34 }
 0xbd8   :  { %5324 = vmatmul.mubr.msk.bf16.gmra.mrb[164].mxu1 %vm2915_vm2, %v8270_v49 }
 0xbd9   :  { %5327 = vmatprep.mubr.msk.bf16.mxu1 %vm2915_vm2, %v8271_v59 }
 0xbe0   :  { %5328 = vmatmul.mubr.msk.bf16.gmra.mrb[168].mxu1 %vm2915_vm2, %v8272_v25 }
 0xbe1   :  { %5367 = vmatprep.mubr.msk.bf16.mxu1 %vm5918_vm1, %v8257_v45 }
 0xbe8   :  { %5368 = vmatmul.mubr.bf16.vlgmr.msra.gmra.mrb[172].mxu1 %v4129_v61 }
 0xc7b   :  { %v5301_v35 = vpop.f32.mrb[140].mxu1 }
 0xc7c   :  { %v3755_v11 = vmul.f32 %v5301_v35, %v7707_v44  ;;  %v3626_v63 = vpop.f32.mrb[141].mxu1 }
 0xc7d   :  { %v5302_v38 = vpop.f32.mrb[142].mxu1  ;;  %v3753_v12 = vmul.f32 %v3626_v63, %v7688_v15 }
 0xc7e   :  { %v3756_v6 = vmul.f32 %v5302_v38, %v7694_v51  ;;  %3789 = vadd.xlane.f32.xlu0 %v3755_v11  ;;  %v3629_v8 = vpop.f32.mrb[143].mxu1 }
 0xc7f   :  { %v3754_v30 = vmul.f32 %v3629_v8, %v7678_v10 }
 0xc80   :  { %3791 = vadd.xlane.f32.xlu1 %v3756_v6 }
 0xc82   :  { %3785 = vadd.xlane.f32.xlu0 %v3753_v12 }
 0xc83   :  { %v5305_v21 = vpop.f32.mrb[144].mxu1 }
 0xc84   :  { %v3759_v13 = vmul.f32 %v5305_v21, %v7748_v16  ;;  %3787 = vadd.xlane.f32.xlu1 %v3754_v30  ;;  %v3642_v2 = vpop.f32.mrb[145].mxu1 }
 0xc85   :  { %v5306_v19 = vpop.f32.mrb[146].mxu1  ;;  %v3757_v31 = vmul.f32 %v3642_v2, %v7730_v0 }
 0xc86   :  { %v3760_v40 = vmul.f32 %v5306_v19, %v7736_v42  ;;  %3797 = vadd.xlane.f32.xlu0 %v3759_v13  ;;  %v3645_v62 = vpop.f32.mrb[147].mxu1 }
 0xc87   :  { %v3758_v37 = vmul.f32 %v3645_v62, %v7720_v7 }
 0xc88   :  { %3799 = vadd.xlane.f32.xlu1 %v3760_v40 }
 0xc8a   :  { %3793 = vadd.xlane.f32.xlu0 %v3757_v31 }
 0xc8b   :  { %v5309_v4 = vpop.f32.mrb[148].mxu1 }
 0xc8c   :  { %v3763_v54 = vmul.f32 %v5309_v4, %v7788_v9  ;;  %3795 = vadd.xlane.f32.xlu1 %v3758_v37  ;;  %v3658_v33 = vpop.f32.mrb[149].mxu1 }
 0xc8d   :  { %v5310_v28 = vpop.f32.mrb[150].mxu1  ;;  %v3761_v56 = vmul.f32 %v3658_v33, %v7770_v26 }
 0xc8e   :  { %v3764_v17 = vmul.f32 %v5310_v28, %v7776_v20  ;;  %3805 = vadd.xlane.f32.xlu0 %v3763_v54  ;;  %v3661_v32 = vpop.f32.mrb[151].mxu1 }
 0xc8f   :  { %v3762_v3 = vmul.f32 %v3661_v32, %v7760_v46 }
 0xc90   :  { %3807 = vadd.xlane.f32.xlu1 %v3764_v17 }
 0xc92   :  { %3801 = vadd.xlane.f32.xlu0 %v3761_v56 }
 0xc93   :  { %v5313_v34 = vpop.f32.mrb[152].mxu1 }
 0xc94   :  { %3803 = vadd.xlane.f32.xlu1 %v3762_v3  ;;  %v3674_v49 = vpop.f32.mrb[153].mxu1 }
 0xc95   :  { %v5314_v59 = vpop.f32.mrb[154].mxu1 }
 0xc96   :  { %v3677_v25 = vpop.f32.mrb[155].mxu1 }
 0xc9b   :  { %v5317_v61 = vpop.f32.mrb[156].mxu1 }
 0xc9c   :  { %v3771_v35 = vmul.f32 %v5317_v61, %v7690_v47  ;;  %v3690_v11 = vpop.f32.mrb[157].mxu1  ;;  %v3765_v61 = vmul.f32 %v3674_v49, %v7808_v39 }
 0xc9d   :  { %v5318_v63 = vpop.f32.mrb[158].mxu1  ;;  %v3769_v8 = vmul.f32 %v3690_v11, %v7674_v29 }
 0xc9e   :  { %v3772_v38 = vmul.f32 %v5318_v63, %v7680_v18  ;;  %3821 = vadd.xlane.f32.xlu0 %v3771_v35  ;;  %v3693_v6 = vpop.f32.mrb[159].mxu1  ;;  %v3766_v63 = vmul.f32 %v3677_v25, %v7800_v5  ;;  %v3767_v25 = vmul.f32 %v5313_v34, %v7818_v23 }
 0xc9f   :  { %v3770_v12 = vmul.f32 %v3693_v6, %v7666_v43 }
 0xca0   :  { %3823 = vadd.xlane.f32.xlu1 %v3772_v38 }
 0xca2   :  { %3817 = vadd.xlane.f32.xlu0 %v3769_v8 }
 0xca3   :  { %v5321_v30 = vpop.f32.mrb[160].mxu1 }
 0xca4   :  { %v3775_v21 = vmul.f32 %v5321_v30, %v7732_v14  ;;  %3819 = vadd.xlane.f32.xlu1 %v3770_v12  ;;  %v3706_v13 = vpop.f32.mrb[161].mxu1 }
 0xca5   :  { %v5322_v2 = vpop.f32.mrb[162].mxu1  ;;  %v3773_v62 = vmul.f32 %v3706_v13, %v7714_v53 }
 0xca6   :  { %v3776_v19 = vmul.f32 %v5322_v2, %v7722_v50  ;;  %3829 = vadd.xlane.f32.xlu0 %v3775_v21  ;;  %v3709_v40 = vpop.f32.mrb[163].mxu1 }
 0xca7   :  { %v3774_v31 = vmul.f32 %v3709_v40, %v7702_v41 }
 0xca8   :  { %3831 = vadd.xlane.f32.xlu1 %v3776_v19  ;;  %v3768_v19 = vmul.f32 %v5314_v59, %v7812_v22 }
 0xcaa   :  { %3825 = vadd.xlane.f32.xlu0 %v3773_v62 }
 0xcab   :  { %v5325_v37 = vpop.f32.mrb[164].mxu1 }
 0xcac   :  { %v3779_v4 = vmul.f32 %v5325_v37, %v7772_v52  ;;  %3827 = vadd.xlane.f32.xlu1 %v3774_v31  ;;  %v3722_v54 = vpop.f32.mrb[165].mxu1 }
 0xcad   :  { %v5326_v33 = vpop.f32.mrb[166].mxu1  ;;  %v3777_v32 = vmul.f32 %v3722_v54, %v7754_v24 }
 0xcae   :  { %v3780_v28 = vmul.f32 %v5326_v33, %v7762_v57  ;;  %3837 = vadd.xlane.f32.xlu0 %v3779_v4  ;;  %v3725_v17 = vpop.f32.mrb[167].mxu1 }
 0xcaf   :  { %v3778_v56 = vmul.f32 %v3725_v17, %v7744_v48 }
 0xcb0   :  { %3839 = vadd.xlane.f32.xlu1 %v3780_v28 }
 0xcb2   :  { %3833 = vadd.xlane.f32.xlu0 %v3777_v32 }
 0xcb3   :  { %v5329_v3 = vpop.f32.mrb[168].mxu1 }
 0xcb4   :  { %3835 = vadd.xlane.f32.xlu1 %v3778_v56  ;;  %v3738_v35 = vpop.f32.mrb[169].mxu1  ;;  %v3783_v30 = vmul.f32 %v5329_v3, %v7810_v27 }
 0xcb5   :  { %v5330_v11 = vpop.f32.mrb[170].mxu1  ;;  %v3781_v6 = vmul.f32 %v3738_v35, %v7794_v36 }
 0xcb6   :  { %3809 = vadd.xlane.f32.xlu0 %v3765_v61  ;;  %v3741_v38 = vpop.f32.mrb[171].mxu1  ;;  %v3784_v13 = vmul.f32 %v5330_v11, %v7802_v60 }
 0xcb7   :  { %v3782_v8 = vmul.f32 %v3741_v38, %v7784_v58 }
 0xcb8   :  { %3811 = vadd.xlane.f32.xlu1 %v3766_v63 }
 0xcba   :  { %3841 = vadd.xlane.f32.xlu0 %v3781_v6 }
 0xcbb   :  { %v7901_v12 = vpop.f32.mrb[172].mxu1 }
 0xcbc   :  { %8273 = vst [vmem:[#allocation36_spill] sm:$0xff] %v7901_v12  ;;  %v5369_v21 = vpop.f32.mrb[173].mxu1  ;;  %3843 = vadd.xlane.f32.xlu1 %v3782_v8 }
 0xcbd   :  { %v4336_v49 = vpop.f32.mrb[174].mxu1 }
 0xcbe   :  { %3845 = vadd.xlane.f32.xlu0 %v3783_v30  ;;  %v5370_v2 = vpop.f32.mrb[175].mxu1 }
 0xcc0   :  { %3847 = vadd.xlane.f32.xlu1 %v3784_v13 }
 0xcc2   :  { %3813 = vadd.xlane.f32.xlu0 %v3767_v25 }
 0xcc4   :  { %3815 = vadd.xlane.f32.xlu1 %v3768_v19 }
 0xd0b   :  { %v3790_v40 = vpop.xlane.xlu0 %3789 }
 0xd0c   :  { %v4505_v4 = vmul.f32 -1.442695, %v3790_v40 }
 0xd0d   :  { %v3792_v62 = vpop.xlane.xlu1 %3791 }
 0xd0e   :  { %v4506_v33 = vmul.f32 -1.442695, %v3792_v62  ;;  %5556 = vpow2.f32 %v4505_v4 }
 0xd0f   :  { %v3786_v31 = vpop.xlane.xlu0 %3785 }
 0xd10   :  { %v4503_v17 = vmul.f32 -1.442695, %v3786_v31  ;;  %5558 = vpow2.f32 %v4506_v33 }
 0xd11   :  { %v3788_v37 = vpop.xlane.xlu1 %3787 }
 0xd12   :  { %v4504_v32 = vmul.f32 -1.442695, %v3788_v37  ;;  %5560 = vpow2.f32 %v4503_v17 }
 0xd13   :  { %v3798_v54 = vpop.xlane.xlu0 %3797 }
 0xd14   :  { %v4509_v3 = vmul.f32 -1.442695, %v3798_v54  ;;  %5562 = vpow2.f32 %v4504_v32 }
 0xd15   :  { %v3800_v28 = vpop.xlane.xlu1 %3799 }
 0xd16   :  { %v4510_v61 = vmul.f32 -1.442695, %v3800_v28  ;;  %5564 = vpow2.f32 %v4509_v3 }
 0xd17   :  { %v3794_v56 = vpop.xlane.xlu0 %3793 }
 0xd18   :  { %v4507_v35 = vmul.f32 -1.442695, %v3794_v56  ;;  %5566 = vpow2.f32 %v4510_v61  ;;  %v5557_v6 = vpop.eup %5556 }
 0xd19   :  { %v3796_v34 = vpop.xlane.xlu1 %3795  ;;  %v3947_v13 = vadd.f32 1.0, %v5557_v6 }
 0xd1a   :  { %v4508_v63 = vmul.f32 -1.442695, %v3796_v34  ;;  %5568 = vpow2.f32 %v4507_v35  ;;  %v5559_v21 = vpop.eup %5558 }
 0xd1b   :  { %v3806_v59 = vpop.xlane.xlu0 %3805  ;;  %v3948_v40 = vadd.f32 1.0, %v5559_v21 }
 0xd1c   :  { %5570 = vpow2.f32 %v4508_v63  ;;  %v5561_v2 = vpop.eup %5560  ;;  %v4513_v31 = vmul.f32 -1.442695, %v3806_v59 }
 0xd1d   :  { %v3808_v11 = vpop.xlane.xlu1 %3807  ;;  %v3945_v37 = vadd.f32 1.0, %v5561_v2 }
 0xd1e   :  { %v4514_v8 = vmul.f32 -1.442695, %v3808_v11  ;;  %v5563_v19 = vpop.eup %5562 }
 0xd1f   :  { %v3802_v38 = vpop.xlane.xlu0 %3801  ;;  %v3946_v54 = vadd.f32 1.0, %v5563_v19 }
 0xd20   :  { %v4511_v49 = vmul.f32 -1.442695, %v3802_v38  ;;  %5572 = vpow2.f32 %v4514_v8  ;;  %v5565_v62 = vpop.eup %5564 }
 0xd21   :  { %v3804_v30 = vpop.xlane.xlu1 %3803  ;;  %v3951_v33 = vadd.f32 1.0, %v5565_v62 }
 0xd22   :  { %v4512_v25 = vmul.f32 -1.442695, %v3804_v30  ;;  %5574 = vpow2.f32 %v4511_v49  ;;  %v5567_v4 = vpop.eup %5566 }
 0xd23   :  { %5576 = vrcp.f32 %v3947_v13  ;;  %v3952_v17 = vadd.f32 1.0, %v5567_v4 }
 0xd24   :  { %5578 = vpow2.f32 %v4512_v25  ;;  %v5569_v28 = vpop.eup %5568 }
 0xd25   :  { %5580 = vrcp.f32 %v3948_v40  ;;  %v3949_v34 = vadd.f32 1.0, %v5569_v28 }
 0xd26   :  { %5582 = vpow2.f32 %v4513_v31  ;;  %v5571_v56 = vpop.eup %5570 }
 0xd27   :  { %5584 = vrcp.f32 %v3945_v37  ;;  %v3950_v11 = vadd.f32 1.0, %v5571_v56 }
 0xd28   :  { %5586 = vrcp.f32 %v3946_v54 }
 0xd29   :  { %5588 = vrcp.f32 %v3951_v33 }
 0xd2a   :  { %v5573_v59 = vpop.eup %5572 }
 0xd2b   :  { %v3822_v32 = vpop.xlane.xlu0 %3821  ;;  %v3956_v30 = vadd.f32 1.0, %v5573_v59 }
 0xd2c   :  { %v4521_v3 = vmul.f32 -1.442695, %v3822_v32  ;;  %v5575_v38 = vpop.eup %5574 }
 0xd2d   :  { %v3824_v61 = vpop.xlane.xlu1 %3823  ;;  %v7907_v8 = vpop.eup %5576  ;;  %v3953_v25 = vadd.f32 1.0, %v5575_v38 }
 0xd2e   :  { %5590 = vpow2.f32 %v4521_v3  ;;  %v4522_v35 = vmul.f32 -1.442695, %v3824_v61  ;;  %v5579_v49 = vpop.eup %5578 }
 0xd2f   :  { %5592 = vrcp.f32 %v3952_v17  ;;  %v3818_v63 = vpop.xlane.xlu0 %3817  ;;  %v7909_v2 = vpop.eup %5580  ;;  %v3954_v37 = vadd.f32 1.0, %v5579_v49 }
 0xd30   :  { %5594 = vpow2.f32 %v4522_v35  ;;  %v4519_v6 = vmul.f32 -1.442695, %v3818_v63  ;;  %v7911_v40 = vpop.eup %5582 }
 0xd31   :  { %5596 = vrcp.f32 %v3949_v34  ;;  %v3820_v21 = vpop.xlane.xlu1 %3819  ;;  %v7913_v31 = vpop.eup %5584 }
 0xd32   :  { %5598 = vpow2.f32 %v4519_v6  ;;  %v4520_v13 = vmul.f32 -1.442695, %v3820_v21  ;;  %v7915_v54 = vpop.eup %5586 }
 0xd33   :  { %5600 = vrcp.f32 %v3950_v11  ;;  %v3830_v19 = vpop.xlane.xlu0 %3829  ;;  %v7917_v28 = vpop.eup %5588 }
 0xd34   :  { %5602 = vpow2.f32 %v4520_v13  ;;  %v4525_v62 = vmul.f32 -1.442695, %v3830_v19 }
 0xd35   :  { %5604 = vrcp.f32 %v3956_v30  ;;  %v3832_v4 = vpop.xlane.xlu1 %3831 }
 0xd36   :  { %5606 = vpow2.f32 %v4525_v62  ;;  %v4526_v33 = vmul.f32 -1.442695, %v3832_v4 }
 0xd37   :  { %5608 = vrcp.f32 %v3953_v25  ;;  %v3826_v17 = vpop.xlane.xlu0 %3825 }
 0xd38   :  { %v5591_v32 = vpop.eup %5590  ;;  %5610 = vpow2.f32 %v4526_v33  ;;  %v4523_v56 = vmul.f32 -1.442695, %v3826_v17 }
 0xd39   :  { %v7919_v3 = vpop.eup %5592  ;;  %5612 = vrcp.f32 %v3954_v37  ;;  %v3963_v34 = vadd.f32 1.0, %v5591_v32  ;;  %v3828_v61 = vpop.xlane.xlu1 %3827 }
 0xd3a   :  { %v5595_v59 = vpop.eup %5594  ;;  %5614 = vpow2.f32 %v4523_v56  ;;  %v4524_v35 = vmul.f32 -1.442695, %v3828_v61 }
 0xd3b   :  { %v7921_v11 = vpop.eup %5596  ;;  %5616 = vrcp.f32 %v3963_v34  ;;  %v3964_v63 = vadd.f32 1.0, %v5595_v59  ;;  %v3838_v38 = vpop.xlane.xlu0 %3837 }
 0xd3c   :  { %v5599_v6 = vpop.eup %5598  ;;  %5618 = vpow2.f32 %v4524_v35  ;;  %v4529_v30 = vmul.f32 -1.442695, %v3838_v38 }
 0xd3d   :  { %v7923_v21 = vpop.eup %5600  ;;  %5620 = vrcp.f32 %v3964_v63  ;;  %v3961_v49 = vadd.f32 1.0, %v5599_v6  ;;  %v3840_v13 = vpop.xlane.xlu1 %3839 }
 0xd3e   :  { %v5603_v25 = vpop.eup %5602  ;;  %5622 = vpow2.f32 %v4529_v30  ;;  %v4530_v19 = vmul.f32 -1.442695, %v3840_v13 }
 0xd3f   :  { %v7925_v62 = vpop.eup %5604  ;;  %5624 = vrcp.f32 %v3961_v49  ;;  %v3962_v37 = vadd.f32 1.0, %v5603_v25  ;;  %v3834_v4 = vpop.xlane.xlu0 %3833 }
 0xd40   :  { %v5607_v33 = vpop.eup %5606  ;;  %5626 = vpow2.f32 %v4530_v19  ;;  %v4527_v17 = vmul.f32 -1.442695, %v3834_v4 }
 0xd41   :  { %v7927_v32 = vpop.eup %5608  ;;  %5628 = vrcp.f32 %v3962_v37  ;;  %v3967_v56 = vadd.f32 1.0, %v5607_v33  ;;  %v3836_v34 = vpop.xlane.xlu1 %3835 }
 0xd42   :  { %v5611_v61 = vpop.eup %5610  ;;  %5630 = vpow2.f32 %v4527_v17  ;;  %v4528_v59 = vmul.f32 -1.442695, %v3836_v34 }
 0xd43   :  { %v7929_v35 = vpop.eup %5612  ;;  %5632 = vrcp.f32 %v3967_v56  ;;  %v3968_v63 = vadd.f32 1.0, %v5611_v61  ;;  %v3810_v38 = vpop.xlane.xlu0 %3809 }
 0xd44   :  { %v5615_v6 = vpop.eup %5614  ;;  %5634 = vpow2.f32 %v4528_v59  ;;  %v4515_v30 = vmul.f32 -1.442695, %v3810_v38 }
 0xd45   :  { %v5617_v49 = vpop.eup %5616  ;;  %5636 = vrcp.f32 %v3968_v63  ;;  %v3965_v13 = vadd.f32 1.0, %v5615_v6  ;;  %v3812_v25 = vpop.xlane.xlu1 %3811 }
 0xd46   :  { %v5619_v19 = vpop.eup %5618  ;;  %5638 = vpow2.f32 %v4515_v30  ;;  %v4516_v37 = vmul.f32 -1.442695, %v3812_v25  ;;  %v4042_v30 = vmul.f32 %v7915_v54, %v7678_v10 }
 0xd47   :  { %v5621_v4 = vpop.eup %5620  ;;  %5640 = vrcp.f32 %v3965_v13  ;;  %v3966_v33 = vadd.f32 1.0, %v5619_v19  ;;  %v3842_v17 = vpop.xlane.xlu0 %3841 }
 0xd48   :  { %v5623_v34 = vpop.eup %5622  ;;  %5642 = vpow2.f32 %v4516_v37  ;;  %v4531_v12 = vmul.f32 -1.442695, %v3842_v17  ;;  %v4060_v13 = vmul.f32 %v5621_v4, %v7680_v18 }
 0xd49   :  { %v5625_v56 = vpop.eup %5624  ;;  %5644 = vrcp.f32 %v3966_v33  ;;  %v3971_v61 = vadd.f32 1.0, %v5623_v34  ;;  %v3844_v1 = vpop.xlane.xlu1 %3843  ;;  %v4041_v34 = vmul.f32 %v7913_v31, %v7688_v15 }
 0xd4a   :  { %v5627_v59 = vpop.eup %5626  ;;  %5646 = vpow2.f32 %v4531_v12  ;;  %v4532_v38 = vmul.f32 -1.442695, %v3844_v1  ;;  %v4057_v37 = vmul.f32 %v5625_v56, %v7674_v29  ;;  %v3955_v29 = vadd.f32 1.0, %v7911_v40 }
 0xd4b   :  { %v5629_v63 = vpop.eup %5628  ;;  %5648 = vrcp.f32 %v3971_v61  ;;  %v3972_v6 = vadd.f32 1.0, %v5627_v59  ;;  %v3846_v55 = vpop.xlane.xlu0 %3845  ;;  %v4044_v61 = vmul.f32 %v7909_v2, %v7694_v51  ;;  %v4073_v59 = vpack.c.bf16 %v4042_v30, %v4041_v34 }
 0xd4c   :  { %v5631_v25 = vpop.eup %5630  ;;  %5650 = vpow2.f32 %v4532_v38  ;;  %v4533_v19 = vmul.f32 -1.442695, %v3846_v55  ;;  %v4058_v33 = vmul.f32 %v5629_v63, %v7666_v43  ;;  %v4059_v55 = vmul.f32 %v5617_v49, %v7690_v47 }
 0xd4d   :  { %v5633_v17 = vpop.eup %5632  ;;  %5652 = vrcp.f32 %v3972_v6  ;;  %v3969_v12 = vadd.f32 1.0, %v5631_v25  ;;  %v3848_v1 = vpop.xlane.xlu1 %3847  ;;  %v4043_v51 = vmul.f32 %v7907_v8, %v7707_v44  ;;  %v4046_v25 = vmul.f32 %v7923_v21, %v7720_v7 }
 0xd4e   :  { %v5635_v10 = vpop.eup %5634  ;;  %5654 = vpow2.f32 %v4533_v19  ;;  %v4534_v18 = vmul.f32 -1.442695, %v3848_v1  ;;  %v4081_v54 = vpack.c.bf16 %v4058_v33, %v4057_v37  ;;  %v4082_v15 = vpack.c.bf16 %v4060_v13, %v4059_v55 }
 0xd4f   :  { %v5637_v4 = vpop.eup %5636  ;;  %5656 = vrcp.f32 %v3969_v12  ;;  %v3970_v43 = vadd.f32 1.0, %v5635_v10  ;;  %v3814_v56 = vpop.xlane.xlu0 %3813  ;;  %v4074_v40 = vpack.c.bf16 %v4044_v61, %v4043_v51  ;;  %v4045_v1 = vmul.f32 %v7921_v11, %v7730_v0 }
 0xd50   :  { %v5639_v38 = vpop.eup %5638  ;;  %5658 = vpow2.f32 %v4534_v18  ;;  %v4517_v63 = vmul.f32 -1.442695, %v3814_v56  ;;  %4991 = vmatprep.subr.bf16.mxu0 %v4081_v54  ;;  %v4064_v13 = vmul.f32 %v5637_v4, %v7722_v50  ;;  %v4063_v7 = vmul.f32 %v5633_v17, %v7732_v14 }
 0xd51   :  { %v5641_v2 = vpop.eup %5640  ;;  %5660 = vrcp.f32 %v3970_v43  ;;  %4992 = vmatpush3.bf16.msra.mxu0 %v4073_v59  ;;  %v3816_v31 = vpop.xlane.xlu1 %3815  ;;  %v3957_v37 = vadd.f32 1.0, %v5639_v38  ;;  %v4075_v10 = vpack.c.bf16 %v4046_v25, %v4045_v1  ;;  %v4047_v0 = vmul.f32 %v7917_v28, %v7748_v16 }
 0xd52   :  { %v5643_v47 = vpop.eup %5642  ;;  %5662 = vpow2.f32 %v4517_v63  ;;  %v4518_v49 = vmul.f32 -1.442695, %v3816_v31  ;;  %4993 = vmatprep.subr.bf16.mxu0 %v4082_v15  ;;  %v4061_v44 = vmul.f32 %v5641_v2, %v7714_v53  ;;  %v4048_v53 = vmul.f32 %v7919_v3, %v7736_v42 }
 0xd53   :  { %v5645_v6 = vpop.eup %5644  ;;  %5664 = vrcp.f32 %v3955_v29  ;;  %v3958_v30 = vadd.f32 1.0, %v5643_v47  ;;  %v4050_v42 = vmul.f32 %v7929_v35, %v7760_v46  ;;  %v4049_v16 = vmul.f32 %v7927_v32, %v7770_v26 }
 0xd54   :  { %v5647_v19 = vpop.eup %5646  ;;  %5666 = vpow2.f32 %v4518_v49  ;;  %v4062_v8 = vmul.f32 %v5645_v6, %v7702_v41  ;;  %v4084_v41 = vpack.c.bf16 %v4064_v13, %v4063_v7  ;;  %v4076_v4 = vpack.c.bf16 %v4048_v53, %v4047_v0 }
 0xd55   :  { %v5649_v33 = vpop.eup %5648  ;;  %v3973_v12 = vadd.f32 1.0, %v5647_v19  ;;  %4994 = vmatpush3.bf16.msra.mxu0 %v4074_v40  ;;  %5668 = vrcp.f32 %v3958_v30  ;;  %v4077_v35 = vpack.c.bf16 %v4050_v42, %v4049_v16 }
 0xd56   :  { %v5651_v34 = vpop.eup %5650  ;;  %v4083_v61 = vpack.c.bf16 %v4062_v8, %v4061_v44  ;;  %v4067_v15 = vmul.f32 %v5649_v33, %v7772_v52  ;;  %v8274_v44 = vld [vmem:[#allocation64_spill] sm:$0xff]  ;;  %v5420_v33 = vld [vmem:[#allocation17 + $0x30] sm:$0xff]  }
 0xd57   :  { %v5653_v21 = vpop.eup %5652  ;;  %5670 = vrcp.f32 %v3973_v12  ;;  %v3974_v50 = vadd.f32 1.0, %v5651_v34  ;;  %v5419_v8 = vld [vmem:[#allocation17 + $0x28] sm:$0xff]   ;;  %v5421_v12 = vld [vmem:[#allocation17 + $0x38] sm:$0xff]  }
 0xd58   :  { %v5655_v18 = vpop.eup %5654  ;;  %5672 = vrcp.f32 %v3957_v37  ;;  %4995 = vmatprep.subr.bf16.mxu0 %v4083_v61  ;;  %v4068_v56 = vmul.f32 %v5653_v21, %v7762_v57 }
 0xd59   :  { %v5657_v54 = vpop.eup %5656  ;;  %5674 = vrcp.f32 %v3974_v50  ;;  %v3975_v55 = vadd.f32 1.0, %v5655_v18  ;;  %4996 = vmatpush3.bf16.msra.mxu0 %v4075_v10  ;;  %v8275_v10 = vld [vmem:[#allocation32_spill] sm:$0xff]  ;;  %v8277_v18 = vld [vmem:[#allocation34_spill] sm:$0xff] }
 0xd5a   :  { %v5659_v11 = vpop.eup %5658  ;;  %4997 = vmatprep.subr.bf16.mxu0 %v4084_v41  ;;  %v4065_v29 = vmul.f32 %v5657_v54, %v7754_v24  ;;  %v4052_v24 = vmul.f32 %v7925_v62, %v7776_v20  ;;  %v4086_v57 = vpack.c.bf16 %v4068_v56, %v4067_v15  ;;  %v8276_v53 = vsub.s32 0, %v8275_v10 }
 0xd5b   :  { %v5661_v14 = vpop.eup %5660  ;;  %5676 = vrcp.f32 %v3975_v55  ;;  %v3976_v17 = vadd.f32 1.0, %v5659_v11  ;;  %v8278_v55 = vld [vmem:[#allocation36_spill] sm:$0xff] }
 0xd5c   :  { %v5663_v3 = vpop.eup %5662  ;;  %v4066_v43 = vmul.f32 %v5661_v14, %v7744_v48  ;;  %v4342_v41 = vrot.slane %v8277_v18, %v8276_v53 }
 0xd5d   :  { %v5665_v59 = vpop.eup %5664  ;;  %5678 = vrcp.f32 %v3976_v17  ;;  %v3959_v38 = vadd.f32 1.0, %v5663_v3  ;;  %4998 = vmatpush3.bf16.msra.mxu0 %v4076_v4 }
 0xd5e   :  { %v5667_v28 = vpop.eup %5666  ;;  %v4085_v63 = vpack.c.bf16 %v4066_v43, %v4065_v29  ;;  %v4051_v2 = vmul.f32 %v5665_v59, %v7788_v9 }
 0xd5f   :  { %5680 = vrcp.f32 %v3959_v38  ;;  %v3960_v46 = vadd.f32 1.0, %v5667_v28  ;;  %v5669_v48 = vpop.eup %5668 }
 0xd60   :  { %4999 = vmatprep.subr.bf16.mxu0 %v4085_v63  ;;  %v4078_v32 = vpack.c.bf16 %v4052_v24, %v4051_v2  ;;  %v4054_v52 = vmul.f32 %v5669_v48, %v7800_v5 }
 0xd61   :  { %v5671_v51 = vpop.eup %5670  ;;  %5682 = vrcp.f32 %v3960_v46  ;;  %5000 = vmatpush3.bf16.msra.mxu0 %v4077_v35 }
 0xd62   :  { %v5673_v31 = vpop.eup %5672  ;;  %5001 = vmatprep.subr.bf16.mxu0 %v4086_v57  ;;  %v4069_v47 = vmul.f32 %v5671_v51, %v7794_v36 }
 0xd63   :  { %v5675_v26 = vpop.eup %5674  ;;  %v4053_v20 = vmul.f32 %v5673_v31, %v7808_v39  ;;  %v5414_v39 = vld [vmem:[#allocation17] sm:$0xff]  }
 0xd64   :  { %v4070_v49 = vmul.f32 %v5675_v26, %v7784_v58 }
 0xd65   :  { %v5677_v40 = vpop.eup %5676  ;;  %5002 = vmatpush3.bf16.msra.mxu0 %v4078_v32  ;;  %v4079_v30 = vpack.c.bf16 %v4054_v52, %v4053_v20 }
 0xd66   :  { %v4087_v62 = vpack.c.bf16 %v4070_v49, %v4069_v47  ;;  %v4071_v9 = vmul.f32 %v5677_v40, %v7810_v27  ;;  %v5415_v27 = vld [vmem:[#allocation17 + $0x8] sm:$0xff]  }
 0xd67   :  { %v5679_v6 = vpop.eup %5678 }
 0xd68   :  { %5003 = vmatprep.subr.bf16.mxu0 %v4087_v62  ;;  %v4072_v25 = vmul.f32 %v5679_v6, %v7802_v60  ;;  %v5416_v60 = vld [vmem:[#allocation17 + $0x10] sm:$0xff]  }
 0xd69   :  { %v5681_v13 = vpop.eup %5680  ;;  %5004 = vmatpush3.bf16.msra.mxu0 %v4079_v30 }
 0xd6a   :  { %v4088_v19 = vpack.c.bf16 %v4072_v25, %v4071_v9  ;;  %v4055_v36 = vmul.f32 %v5681_v13, %v7818_v23  ;;  %v5418_v23 = vld [vmem:[#allocation17 + $0x20] sm:$0xff]  }
 0xd6b   :  { %v5683_v5 = vpop.eup %5682 }
 0xd6c   :  { %5005 = vmatprep.subr.bf16.mxu0 %v4088_v19  ;;  %v4056_v58 = vmul.f32 %v5683_v5, %v7812_v22  ;;  %v5417_v22 = vld [vmem:[#allocation17 + $0x18] sm:$0xff]  }
 0xd6e   :  { %v4080_v37 = vpack.c.bf16 %v4056_v58, %v4055_v36 }
 0xd70   :  { %5006 = vmatpush3.bf16.msra.mxu0 %v4080_v37 }
 0xd71   :  { %5331 = vmatprep.subr.bf16.mxu0 %v8257_v45 }
 0xd73   :  { %4122 = vmatmul.mubr.bf16.vlgmr.msra.gmra.mrb[168].mxu0 %v8274_v44 }
 0xd74   :  { %5332 = vmatpush3.bf16.msra.mxu0 %v5414_v39  ;;  %5347 = vmatprep.mubr.msk.bf16.mxu0 %vm5918_vm1, %v8257_v45 }
 0xd75   :  { %5333 = vmatprep.subr.bf16.mxu0 %v8257_v45 }
 0xd78   :  { %5334 = vmatpush3.bf16.msra.mxu0 %v5415_v27 }
 0xd79   :  { %5335 = vmatprep.subr.bf16.mxu0 %v8257_v45 }
 0xd7c   :  { %5336 = vmatpush3.bf16.msra.mxu0 %v5416_v60 }
 0xd7d   :  { %5337 = vmatprep.subr.bf16.mxu0 %v8257_v45 }
 0xd80   :  { %5338 = vmatpush3.bf16.msra.mxu0 %v5417_v22 }
 0xd81   :  { %5339 = vmatprep.subr.bf16.mxu0 %v8257_v45 }
 0xd84   :  { %5340 = vmatpush3.bf16.msra.mxu0 %v5418_v23 }
 0xd85   :  { %5341 = vmatprep.subr.bf16.mxu0 %v8257_v45 }
 0xd88   :  { %5342 = vmatpush3.bf16.msra.mxu0 %v5419_v8 }
 0xd89   :  { %5343 = vmatprep.subr.bf16.mxu0 %v8257_v45 }
 0xd8c   :  { %5344 = vmatpush3.bf16.msra.mxu0 %v5420_v33 }
 0xd8d   :  { %5345 = vmatprep.subr.bf16.mxu0 %v8257_v45 }
 0xd90   :  { %5346 = vmatpush3.bf16.msra.mxu0 %v5421_v12 }
 0xe46   :  { %v5007_v1 = vpop.f32.mrb[168].mxu0 }
 0xe47   :  { %v5008_v34 = vpop.f32.mrb[169].mxu0 }
 0xe48   :  { %v5009_v61 = vadd.f32 %v5008_v34, %v5007_v1  ;;  %v5010_v7 = vpop.f32.mrb[170].mxu0 }
 0xe49   :  { %v5011_v21 = vpop.f32.mrb[171].mxu0 }
 0xe4a   :  { %v4146_v50 = vpack.c.bf16 %v5009_v61, %v5009_v61 }
 0xe4c   :  { %5348 = vmatmul.mubr.bf16.vlgmr.msra.gmra.mrb[172].mxu0 %v4146_v50 }
 0xf1f   :  { %v4245_v54 = vpop.f32.mrb[172].mxu0 }
 0xf20   :  { %v4334_v0 = vadd.f32 %v8278_v55, %v4245_v54  ;;  %v5349_v11 = vpop.f32.mrb[173].mxu0 }
 0xf21   :  { %v4248_v45 = vpop.f32.mrb[174].mxu0 }
 0xf22   :  { %v4343_v14 = vadd.f32 %v4342_v41, %v4334_v0  ;;  %v5350_v17 = vpop.f32.mrb[175].mxu0 }
 0xf24   :  { %4344 = vst [vmem:[#allocation19] sm:$0x3] %v4343_v14 }
 0xf25   :  { %5871 = shalt.err (!%p5868_p12)
}
 0xf26   :  { %s5872_s10 = scalar_lea.hbm %s8014_s12, 32 }
 0xf27   :  { %p5873_p13 = scmp.ne.s32.totalorder %s8014_s12, %s5872_s10  ;;  %p5876_p0 = scmp.lt.u32.totalorder %s5872_s10, %s8014_s12 }
 0xf29   :  { %p5878_p1 = pnand %p5876_p0, %p5873_p13 }
 0xf2b   :  { %5881 = shalt.err (!%p5878_p1)
}
 0xf2c   :  { %4354 = dma.vmem_to_hbm [thread:$0]  %s4352_s19, 32, %s8014_s12, [#allocation7]  }
 0xf2d   :  { %5896 = dma.done.wait [#allocation7], 32  }
 0xf2e   :  { %5897 = vsyncadd [#allocation7], 4294967264 }
 0xf2f   :  { %4358 = vsyncpa [#allocation6], 1 }
 0xf30   :  { %4359 = vsyncpa [#allocation9], 1 }
 0xf31   :  { %4360 = vsyncpa [#allocation12], 1 }
 0xf32   :  { %4361 = vsyncpa [#allocation15], 1 }
 0xf33   :  { %4362 = vsyncpa [#allocation18], 1 }
 0xf34   :  { %4363 = vsyncpa [#allocation7], 1 }
 0xf35   :  { %4364 = vsyncmov [#allocation4] }
 0xf38   :  { %s4365_s28 = vpop.sfrf %4364 }
 0xf39   :  { %p4551_p2 = scmp.ne.s32.totalorder %s4365_s28, 0 }
 0xf3b   :  { %4369 = shalt.err (%p4551_p2)  }
 0xf3c   :  { %4371 = vsyncmov [#allocation4 + $0x1] }
 0xf3f   :  { %s4372_s5 = vpop.sfrf %4371 }
 0xf40   :  { %p4552_p3 = scmp.ne.s32.totalorder %s4372_s5, 0 }
 0xf42   :  { %4376 = shalt.err (%p4552_p3)  }

</bundles_post_ra>
